<compile_context>
chip_gen: v7x
topology: tpu7x:2x2x1
jax: 0.10.0
libtpu: 0.0.40
codegen_flags: <defaults>
</compile_context>

<pallas_src>
import functools
import math

import jax
import jax.numpy as jnp
from jax import lax
from jax.experimental import pallas as pl

COMPUTE_DTYPE = jnp.bfloat16   # MXU operand dtype (accumulation stays f32)


# ---------------------------------------------------------------------------
# Pallas kernels (single full-array block per call; everything VMEM resident)
# ---------------------------------------------------------------------------
def _mm_bias_act_kernel(x_ref, w_ref, b_ref, o_ref, *, act):
    acc = jnp.dot(x_ref[...], w_ref[...], preferred_element_type=jnp.float32)
    acc = acc + b_ref[...]
    if act == "relu":
        acc = jnp.maximum(acc, 0.0)
    elif act == "sigmoid":
        acc = 1.0 / (1.0 + jnp.exp(-acc))          # exp on EUP, f32 epilogue
    o_ref[...] = acc


def matmul_bias_act(x, w, b, act="none"):
    """out = act(x @ w + b).  x:(M,K), w:(K,N) bf16 (pre-laid-out), b:(1,N) f32.

    One full-array block (no grid): tm = M is the maximal tile, no padding
    copies, no post-slices; output is written with its exact (M, N) shape.
    """
    M, K = x.shape
    K2, N = w.shape
    assert K == K2
    return pl.pallas_call(
        functools.partial(_mm_bias_act_kernel, act=act),
        out_shape=jax.ShapeDtypeStruct((M, N), jnp.float32),
    )(x.astype(w.dtype), w, b)


def _latent_kernel(h_ref, eps_ref, wmu_ref, bmu_ref, wlv_ref, blv_ref,
                   wd_ref, bd_ref, mu_ref, lv_ref, hd_ref):
    # fc_mu + fc_logvar + reparameterize + fc_decoder, fused (h read once).
    h = h_ref[...]
    mu = jnp.dot(h, wmu_ref[...], preferred_element_type=jnp.float32) + bmu_ref[...]
    lv = jnp.dot(h, wlv_ref[...], preferred_element_type=jnp.float32) + blv_ref[...]
    z = mu + eps_ref[...] * jnp.exp(0.5 * lv)
    hd = jnp.dot(z.astype(wd_ref.dtype), wd_ref[...],
                 preferred_element_type=jnp.float32) + bd_ref[...]
    mu_ref[...] = mu
    lv_ref[...] = lv
    hd_ref[...] = hd


def latent_block(h, eps, fp):
    B = h.shape[0]
    L = fp["fc_mu_w"].shape[1]
    F = fp["fc_dec_w"].shape[1]
    return pl.pallas_call(
        _latent_kernel,
        out_shape=(jax.ShapeDtypeStruct((B, L), jnp.float32),
                   jax.ShapeDtypeStruct((B, L), jnp.float32),
                   jax.ShapeDtypeStruct((B, F), jnp.float32)),
    )(h.astype(COMPUTE_DTYPE), eps.astype(jnp.float32),
      fp["fc_mu_w"], fp["fc_mu_b"],
      fp["fc_logvar_w"], fp["fc_logvar_b"],
      fp["fc_dec_w"], fp["fc_dec_b"])


# ---------------------------------------------------------------------------
# Lane-dense patch extraction (XLA glue, channel-last, no 6-D transposes)
# ---------------------------------------------------------------------------
def _patches(x_nhwc, k, stride, pad):
    """im2col with patch column order (kh, kw, c).  Returns ((B*Ho*Wo, k*k*C), Ho, Wo)."""
    B, H, W, C = x_nhwc.shape
    Ho = (H + 2 * pad - k) // stride + 1
    Wo = (W + 2 * pad - k) // stride + 1
    xp = jnp.pad(x_nhwc, ((0, 0), (pad, pad), (pad, pad), (0, 0)))
    taps = []
    for kh in range(k):
        for kw in range(k):
            taps.append(xp[:, kh:kh + stride * Ho:stride,
                           kw:kw + stride * Wo:stride, :])
    p = jnp.concatenate(taps, axis=-1)              # (B, Ho, Wo, k*k*C)
    return p.reshape(B * Ho * Wo, k * k * C), Ho, Wo


def conv2d(x_nhwc, wm, b, act):
    """Conv2d(k=4, s=2, p=1) as one Pallas matmul+bias+act. wm: (16*IC, OC)."""
    B = x_nhwc.shape[0]
    OC = wm.shape[1]
    p, Ho, Wo = _patches(x_nhwc, 4, 2, 1)
    out = matmul_bias_act(p, wm, b, act)            # (B*Ho*Wo, OC)
    return out.reshape(B, Ho, Wo, OC)


def conv_transpose2d(x_nhwc, wm, b, act):
    """ConvTranspose2d(k=4, s=2, p=1) via sub-pixel (phase) decomposition.

    One Pallas matmul (M, 9*IC) @ (9*IC, 4*OC) produces all 4 output phases;
    no zero-dilation, no kernel flip at runtime.
    """
    B, H, W, _ = x_nhwc.shape
    OC = wm.shape[1] // 4
    p, _, _ = _patches(x_nhwc, 3, 1, 1)             # 3x3 stride-1 neighborhood
    o = matmul_bias_act(p, wm, b, act)              # (B*H*W, 4*OC)
    o = o.reshape(B, H, W, 2, 2, OC)
    o = o.transpose(0, 1, 3, 2, 4, 5).reshape(B, 2 * H, 2 * W, OC)
    return o


# ---------------------------------------------------------------------------
# Parameters: PyTorch-layout init + one-time preprocessing into kernel layout
# ---------------------------------------------------------------------------
def _init_conv(key, oc, ic, k):
    k1, k2 = jax.random.split(key)
    bound = 1.0 / math.sqrt(ic * k * k)
    w = jax.random.uniform(k1, (oc, ic, k, k), jnp.float32, -bound, bound)
    b = jax.random.uniform(k2, (oc,), jnp.float32, -bound, bound)
    return w, b


def _init_convT(key, ic, oc, k):
    k1, k2 = jax.random.split(key)
    bound = 1.0 / math.sqrt(ic * k * k)
    w = jax.random.uniform(k1, (ic, oc, k, k), jnp.float32, -bound, bound)
    b = jax.random.uniform(k2, (oc,), jnp.float32, -bound, bound)
    return w, b


def _init_linear(key, out_f, in_f):
    k1, k2 = jax.random.split(key)
    bound = 1.0 / math.sqrt(in_f)
    w = jax.random.uniform(k1, (out_f, in_f), jnp.float32, -bound, bound)
    b = jax.random.uniform(k2, (out_f,), jnp.float32, -bound, bound)
    return w, b


def init_params(key, in_channels=1, latent_dim=20):
    ks = jax.random.split(key, 9)
    flat = 128 * 4 * 4
    p = {}
    p["enc1_w"], p["enc1_b"] = _init_conv(ks[0], 32, in_channels, 4)
    p["enc2_w"], p["enc2_b"] = _init_conv(ks[1], 64, 32, 4)
    p["enc3_w"], p["enc3_b"] = _init_conv(ks[2], 128, 64, 4)
    p["fc_mu_w"], p["fc_mu_b"] = _init_linear(ks[3], latent_dim, flat)
    p["fc_logvar_w"], p["fc_logvar_b"] = _init_linear(ks[4], latent_dim, flat)
    p["fc_dec_w"], p["fc_dec_b"] = _init_linear(ks[5], flat, latent_dim)
    p["dec1_w"], p["dec1_b"] = _init_convT(ks[6], 128, 64, 4)
    p["dec2_w"], p["dec2_b"] = _init_convT(ks[7], 64, 32, 4)
    p["dec3_w"], p["dec3_b"] = _init_convT(ks[8], 32, in_channels, 4)
    return p


# ConvT(k=4,s=2,p=1): output phase `rho`, padded-input offset `d` -> kernel tap.
_PHASE_TAP_TO_K = {(0, 0): 3, (0, 1): 1, (1, 1): 2, (1, 2): 0}


def _prep_conv(w, b):
    # (OC, IC, kh, kw) -> (kh*kw*IC, OC), matching (kh, kw, c) patch columns.
    OC, IC, k, _ = w.shape
    wm = jnp.transpose(w, (2, 3, 1, 0)).reshape(k * k * IC, OC)
    return wm.astype(COMPUTE_DTYPE), b.reshape(1, OC).astype(jnp.float32)


def _prep_convT(w, b):
    # (IC, OC, 4, 4) -> (9*IC, 4*OC): rows ordered (dr, dc, ic) over the 3x3
    # stride-1 neighborhood, columns ordered (phase_r, phase_c, oc).
    IC, OC, k, _ = w.shape
    wt = jnp.zeros((3, 3, IC, 2, 2, OC), jnp.float32)
    for (pr, dr), kh in _PHASE_TAP_TO_K.items():
        for (pc, dc), kw in _PHASE_TAP_TO_K.items():
            wt = wt.at[dr, dc, :, pr, pc, :].set(w[:, :, kh, kw])
    bt = jnp.tile(b.reshape(1, 1, 1, OC), (1, 2, 2, 1)).reshape(1, 4 * OC)
    return wt.reshape(9 * IC, 4 * OC).astype(COMPUTE_DTYPE), bt.astype(jnp.float32)


def prepare_params(p, latent_dim=20):
    """One-time weight preprocessing (hoisted out of the forward pass)."""
    fp = {}
    for n in ("enc1", "enc2", "enc3"):
        fp[n + "_w"], fp[n + "_b"] = _prep_conv(p[n + "_w"], p[n + "_b"])

    # fc_mu / fc_logvar: permute the flattened input dim (c,i,j)->(i,j,c)
    # (PyTorch flattens NCHW, we flatten NHWC) and pre-transpose for x @ W.
    def fc_in(w):
        L = w.shape[0]
        return (jnp.transpose(w.reshape(L, 128, 4, 4), (2, 3, 1, 0))
                .reshape(128 * 16, L).astype(COMPUTE_DTYPE))

    fp["fc_mu_w"] = fc_in(p["fc_mu_w"])
    fp["fc_mu_b"] = p["fc_mu_b"].reshape(1, -1).astype(jnp.float32)
    fp["fc_logvar_w"] = fc_in(p["fc_logvar_w"])
    fp["fc_logvar_b"] = p["fc_logvar_b"].reshape(1, -1).astype(jnp.float32)

    # fc_decoder: permute the flattened OUTPUT dim (c,i,j)->(i,j,c), transpose.
    wd, bd = p["fc_dec_w"], p["fc_dec_b"]           # (2048, L), (2048,)
    L = wd.shape[1]
    fp["fc_dec_w"] = (jnp.transpose(wd.reshape(128, 4, 4, L), (3, 1, 2, 0))
                      .reshape(L, 2048).astype(COMPUTE_DTYPE))
    fp["fc_dec_b"] = (jnp.transpose(bd.reshape(128, 4, 4), (1, 2, 0))
                      .reshape(1, 2048).astype(jnp.float32))

    for n in ("dec1", "dec2", "dec3"):
        fp[n + "_w"], fp[n + "_b"] = _prep_convT(p[n + "_w"], p[n + "_b"])
    return fp


# ---------------------------------------------------------------------------
# Forward pass (mirrors ConvVAE.forward; eps supplied instead of randn_like)
# ---------------------------------------------------------------------------
def convvae_forward(fp, x, eps):
    """x: (B, C_in, 32, 32) NCHW, eps: (B, latent_dim)."""
    B = x.shape[0]
    h = jnp.transpose(x, (0, 2, 3, 1))                           # NHWC once
    # encoder
    h = conv2d(h, fp["enc1_w"], fp["enc1_b"], "relu")            # (B,16,16,32)
    h = conv2d(h, fp["enc2_w"], fp["enc2_b"], "relu")            # (B,8,8,64)
    h = conv2d(h, fp["enc3_w"], fp["enc3_b"], "relu")            # (B,4,4,128)
    h = h.reshape(B, 4 * 4 * 128)                                # (i,j,c) flatten
    # latent heads + reparameterization + fc_decoder (one fused kernel)
    mu, logvar, hd = latent_block(h, eps, fp)
    d = hd.reshape(B, 4, 4, 128)                                 # NHWC unflatten
    # decoder
    d = conv_transpose2d(d, fp["dec1_w"], fp["dec1_b"], "relu")      # (B,8,8,64)
    d = conv_transpose2d(d, fp["dec2_w"], fp["dec2_b"], "relu")      # (B,16,16,32)
    d = conv_transpose2d(d, fp["dec3_w"], fp["dec3_b"], "sigmoid")   # (B,32,32,Cin)
    x_recon = jnp.transpose(d, (0, 3, 1, 2))                     # back to NCHW
    return x_recon, mu, logvar


# ---------------------------------------------------------------------------
# Pure-JAX reference of the PyTorch module (for correctness verification)
# ---------------------------------------------------------------------------
def reference_forward(p, x, eps):
    def conv(x, w, b):
        y = lax.conv_general_dilated(x, w, (2, 2), [(1, 1), (1, 1)],
                                     dimension_numbers=("NCHW", "OIHW", "NCHW"))
        return jnp.maximum(y + b[None, :, None, None], 0.0)

    def convT(x, w, b, act):
        wc = jnp.flip(w, (2, 3)).transpose(1, 0, 2, 3)
        y = lax.conv_general_dilated(x, wc, (1, 1), [(2, 2), (2, 2)],
                                     lhs_dilation=(2, 2),
                                     dimension_numbers=("NCHW", "OIHW", "NCHW"))
        y = y + b[None, :, None, None]
        return jnp.maximum(y, 0.0) if act == "relu" else jax.nn.sigmoid(y)

    B = x.shape[0]
    h = conv(x, p["enc1_w"], p["enc1_b"])
    h = conv(h, p["enc2_w"], p["enc2_b"])
    h = conv(h, p["enc3_w"], p["enc3_b"])
    h = h.reshape(B, -1)
    mu = h @ p["fc_mu_w"].T + p["fc_mu_b"]
    logvar = h @ p["fc_logvar_w"].T + p["fc_logvar_b"]
    z = mu + eps * jnp.exp(0.5 * logvar)
    hd = z @ p["fc_dec_w"].T + p["fc_dec_b"]
    d = hd.reshape(B, 128, 4, 4)
    d = convT(d, p["dec1_w"], p["dec1_b"], "relu")
    d = convT(d, p["dec2_w"], p["dec2_b"], "relu")
    d = convT(d, p["dec3_w"], p["dec3_b"], "sigmoid")
    return d, mu, logvar


if __name__ == "__main__":
    import numpy as np

    key = jax.random.PRNGKey(0)
    k_x, k_eps, k_p = jax.random.split(key, 3)

    B, IN_CH, LATENT = 2, 1, 20                     # architecture needs 32x32 input
    x = jax.random.normal(k_x, (B, IN_CH, 32, 32), jnp.float32)   # NCHW
    eps = jax.random.normal(k_eps, (B, LATENT), jnp.float32)

    params = init_params(k_p, IN_CH, LATENT)        # PyTorch-layout weights
    fused_params = prepare_params(params, LATENT)   # one-time kernel layouts

    fwd = jax.jit(convvae_forward)
    x_recon, mu, logvar = fwd(fused_params, x, eps)
    jax.block_until_ready((x_recon, mu, logvar))

    # shape / range checks
    assert x_recon.shape == (B, IN_CH, 32, 32)
    assert mu.shape == (B, LATENT) and logvar.shape == (B, LATENT)
    assert bool(jnp.all(x_recon >= 0.0)) and bool(jnp.all(x_recon <= 1.0))

    # numerical check against the pure-JAX reference (bf16 matmul tolerance)
    xr_ref, mu_ref, lv_ref = jax.jit(reference_forward)(params, x, eps)
    np.testing.assert_allclose(np.asarray(mu), np.asarray(mu_ref), rtol=3e-2, atol=3e-2)
    np.testing.assert_allclose(np.asarray(logvar), np.asarray(lv_ref), rtol=3e-2, atol=3e-2)
    np.testing.assert_allclose(np.asarray(x_recon), np.asarray(xr_ref), rtol=3e-2, atol=3e-2)

    print("KERNEL_OK")
</pallas_src>

<mosaic_0001>
module attributes {stable_mosaic.version = 11 : i64} {
  func.func @_mm_bias_act_kernel(%arg0: memref<512x16xbf16, #tpu.memory_space<vmem>>, %arg1: memref<16x32xbf16, #tpu.memory_space<vmem>>, %arg2: memref<1x32xf32, #tpu.memory_space<vmem>>, %arg3: memref<512x32xf32, #tpu.memory_space<vmem>>) attributes {dimension_semantics = [], scalar_prefetch = 0 : i64, scratch_operands = 0 : i64, tpu.core_type = #tpu.core_type<tc>} {
    %c0 = arith.constant 0 : index
    %c0_0 = arith.constant 0 : index
    %0 = vector.load %arg0[%c0, %c0_0] : memref<512x16xbf16, #tpu.memory_space<vmem>>, vector<512x16xbf16>
    %c0_1 = arith.constant 0 : index
    %c0_2 = arith.constant 0 : index
    %1 = vector.load %arg1[%c0_1, %c0_2] : memref<16x32xbf16, #tpu.memory_space<vmem>>, vector<16x32xbf16>
    %cst = arith.constant dense<0.000000e+00> : vector<512x32xf32>
    %2 = tpu.matmul %0, %1, %cst {dimension_numbers = #tpu.dot_dimension_numbers<[1], [0], [0], [1], [0, 0, 1, 1], [], []>} : vector<512x16xbf16>, vector<16x32xbf16>, vector<512x32xf32> -> vector<512x32xf32>
    %c0_3 = arith.constant 0 : index
    %c0_4 = arith.constant 0 : index
    %3 = vector.load %arg2[%c0_3, %c0_4] : memref<1x32xf32, #tpu.memory_space<vmem>>, vector<1x32xf32>
    %4 = vector.broadcast %3 : vector<1x32xf32> to vector<512x32xf32>
    %5 = arith.addf %2, %4 : vector<512x32xf32>
    %cst_5 = arith.constant 0.000000e+00 : f32
    %6 = vector.broadcast %cst_5 : f32 to vector<512x32xf32>
    %7 = arith.maximumf %5, %6 : vector<512x32xf32>
    %c0_6 = arith.constant 0 : index
    %c0_7 = arith.constant 0 : index
    %8 = vector.load %arg3[%c0_6, %c0_7] : memref<512x32xf32, #tpu.memory_space<vmem>>, vector<512x32xf32>
    tpu.vector_store %arg3[%c0_6, %c0_7], %7 {strides = array<i32>} : memref<512x32xf32, #tpu.memory_space<vmem>>, vector<512x32xf32>,
    return
  }
}

module attributes {stable_mosaic.version = 11 : i64} {
  func.func @_mm_bias_act_kernel(%arg0: memref<128x512xbf16, #tpu.memory_space<vmem>>, %arg1: memref<512x64xbf16, #tpu.memory_space<vmem>>, %arg2: memref<1x64xf32, #tpu.memory_space<vmem>>, %arg3: memref<128x64xf32, #tpu.memory_space<vmem>>) attributes {dimension_semantics = [], scalar_prefetch = 0 : i64, scratch_operands = 0 : i64, tpu.core_type = #tpu.core_type<tc>} {
    %c0 = arith.constant 0 : index
    %c0_0 = arith.constant 0 : index
    %0 = vector.load %arg0[%c0, %c0_0] : memref<128x512xbf16, #tpu.memory_space<vmem>>, vector<128x512xbf16>
    %c0_1 = arith.constant 0 : index
    %c0_2 = arith.constant 0 : index
    %1 = vector.load %arg1[%c0_1, %c0_2] : memref<512x64xbf16, #tpu.memory_space<vmem>>, vector<512x64xbf16>
    %cst = arith.constant dense<0.000000e+00> : vector<128x64xf32>
    %2 = tpu.matmul %0, %1, %cst {dimension_numbers = #tpu.dot_dimension_numbers<[1], [0], [0], [1], [0, 0, 1, 1], [], []>} : vector<128x512xbf16>, vector<512x64xbf16>, vector<128x64xf32> -> vector<128x64xf32>
    %c0_3 = arith.constant 0 : index
    %c0_4 = arith.constant 0 : index
    %3 = vector.load %arg2[%c0_3, %c0_4] : memref<1x64xf32, #tpu.memory_space<vmem>>, vector<1x64xf32>
    %4 = vector.broadcast %3 : vector<1x64xf32> to vector<128x64xf32>
    %5 = arith.addf %2, %4 : vector<128x64xf32>
    %cst_5 = arith.constant 0.000000e+00 : f32
    %6 = vector.broadcast %cst_5 : f32 to vector<128x64xf32>
    %7 = arith.maximumf %5, %6 : vector<128x64xf32>
    %c0_6 = arith.constant 0 : index
    %c0_7 = arith.constant 0 : index
    %8 = vector.load %arg3[%c0_6, %c0_7] : memref<128x64xf32, #tpu.memory_space<vmem>>, vector<128x64xf32>
    tpu.vector_store %arg3[%c0_6, %c0_7], %7 {strides = array<i32>} : memref<128x64xf32, #tpu.memory_space<vmem>>, vector<128x64xf32>,
    return
  }
}

module attributes {stable_mosaic.version = 11 : i64} {
  func.func @_mm_bias_act_kernel(%arg0: memref<32x1024xbf16, #tpu.memory_space<vmem>>, %arg1: memref<1024x128xbf16, #tpu.memory_space<vmem>>, %arg2: memref<1x128xf32, #tpu.memory_space<vmem>>, %arg3: memref<32x128xf32, #tpu.memory_space<vmem>>) attributes {dimension_semantics = [], scalar_prefetch = 0 : i64, scratch_operands = 0 : i64, tpu.core_type = #tpu.core_type<tc>} {
    %c0 = arith.constant 0 : index
    %c0_0 = arith.constant 0 : index
    %0 = vector.load %arg0[%c0, %c0_0] : memref<32x1024xbf16, #tpu.memory_space<vmem>>, vector<32x1024xbf16>
    %c0_1 = arith.constant 0 : index
    %c0_2 = arith.constant 0 : index
    %1 = vector.load %arg1[%c0_1, %c0_2] : memref<1024x128xbf16, #tpu.memory_space<vmem>>, vector<1024x128xbf16>
    %cst = arith.constant dense<0.000000e+00> : vector<32x128xf32>
    %2 = tpu.matmul %0, %1, %cst {dimension_numbers = #tpu.dot_dimension_numbers<[1], [0], [0], [1], [0, 0, 1, 1], [], []>} : vector<32x1024xbf16>, vector<1024x128xbf16>, vector<32x128xf32> -> vector<32x128xf32>
    %c0_3 = arith.constant 0 : index
    %c0_4 = arith.constant 0 : index
    %3 = vector.load %arg2[%c0_3, %c0_4] : memref<1x128xf32, #tpu.memory_space<vmem>>, vector<1x128xf32>
    %4 = vector.broadcast %3 : vector<1x128xf32> to vector<32x128xf32>
    %5 = arith.addf %2, %4 : vector<32x128xf32>
    %cst_5 = arith.constant 0.000000e+00 : f32
    %6 = vector.broadcast %cst_5 : f32 to vector<32x128xf32>
    %7 = arith.maximumf %5, %6 : vector<32x128xf32>
    %c0_6 = arith.constant 0 : index
    %c0_7 = arith.constant 0 : index
    %8 = vector.load %arg3[%c0_6, %c0_7] : memref<32x128xf32, #tpu.memory_space<vmem>>, vector<32x128xf32>
    tpu.vector_store %arg3[%c0_6, %c0_7], %7 {strides = array<i32>} : memref<32x128xf32, #tpu.memory_space<vmem>>, vector<32x128xf32>,
    return
  }
}

module attributes {stable_mosaic.version = 11 : i64} {
  func.func @_latent_kernel(%arg0: memref<2x2048xbf16, #tpu.memory_space<vmem>>, %arg1: memref<2x20xf32, #tpu.memory_space<vmem>>, %arg2: memref<2048x20xbf16, #tpu.memory_space<vmem>>, %arg3: memref<1x20xf32, #tpu.memory_space<vmem>>, %arg4: memref<2048x20xbf16, #tpu.memory_space<vmem>>, %arg5: memref<1x20xf32, #tpu.memory_space<vmem>>, %arg6: memref<20x2048xbf16, #tpu.memory_space<vmem>>, %arg7: memref<1x2048xf32, #tpu.memory_space<vmem>>, %arg8: memref<2x20xf32, #tpu.memory_space<vmem>>, %arg9: memref<2x20xf32, #tpu.memory_space<vmem>>, %arg10: memref<2x2048xf32, #tpu.memory_space<vmem>>) attributes {dimension_semantics = [], scalar_prefetch = 0 : i64, scratch_operands = 0 : i64, tpu.core_type = #tpu.core_type<tc>} {
    %c0 = arith.constant 0 : index
    %c0_0 = arith.constant 0 : index
    %0 = vector.load %arg0[%c0, %c0_0] : memref<2x2048xbf16, #tpu.memory_space<vmem>>, vector<2x2048xbf16>
    %c0_1 = arith.constant 0 : index
    %c0_2 = arith.constant 0 : index
    %1 = vector.load %arg2[%c0_1, %c0_2] : memref<2048x20xbf16, #tpu.memory_space<vmem>>, vector<2048x20xbf16>
    %cst = arith.constant dense<0.000000e+00> : vector<2x20xf32>
    %2 = tpu.matmul %0, %1, %cst {dimension_numbers = #tpu.dot_dimension_numbers<[1], [0], [0], [1], [0, 0, 1, 1], [], []>} : vector<2x2048xbf16>, vector<2048x20xbf16>, vector<2x20xf32> -> vector<2x20xf32>
    %c0_3 = arith.constant 0 : index
    %c0_4 = arith.constant 0 : index
    %3 = vector.load %arg3[%c0_3, %c0_4] : memref<1x20xf32, #tpu.memory_space<vmem>>, vector<1x20xf32>
    %4 = vector.broadcast %3 : vector<1x20xf32> to vector<2x20xf32>
    %5 = arith.addf %2, %4 : vector<2x20xf32>
    %c0_5 = arith.constant 0 : index
    %c0_6 = arith.constant 0 : index
    %6 = vector.load %arg4[%c0_5, %c0_6] : memref<2048x20xbf16, #tpu.memory_space<vmem>>, vector<2048x20xbf16>
    %cst_7 = arith.constant dense<0.000000e+00> : vector<2x20xf32>
    %7 = tpu.matmul %0, %6, %cst_7 {dimension_numbers = #tpu.dot_dimension_numbers<[1], [0], [0], [1], [0, 0, 1, 1], [], []>} : vector<2x2048xbf16>, vector<2048x20xbf16>, vector<2x20xf32> -> vector<2x20xf32>
    %c0_8 = arith.constant 0 : index
    %c0_9 = arith.constant 0 : index
    %8 = vector.load %arg5[%c0_8, %c0_9] : memref<1x20xf32, #tpu.memory_space<vmem>>, vector<1x20xf32>
    %9 = vector.broadcast %8 : vector<1x20xf32> to vector<2x20xf32>
    %10 = arith.addf %7, %9 : vector<2x20xf32>
    %c0_10 = arith.constant 0 : index
    %c0_11 = arith.constant 0 : index
    %11 = vector.load %arg1[%c0_10, %c0_11] : memref<2x20xf32, #tpu.memory_space<vmem>>, vector<2x20xf32>
    %cst_12 = arith.constant 5.000000e-01 : f32
    %12 = vector.broadcast %cst_12 : f32 to vector<2x20xf32>
    %13 = arith.mulf %12, %10 : vector<2x20xf32>
    %14 = math.exp %13 : vector<2x20xf32>
    %15 = arith.mulf %11, %14 : vector<2x20xf32>
    %16 = arith.addf %5, %15 : vector<2x20xf32>
    %17 = arith.truncf %16 : vector<2x20xf32> to vector<2x20xbf16>
    %c0_13 = arith.constant 0 : index
    %c0_14 = arith.constant 0 : index
    %18 = vector.load %arg6[%c0_13, %c0_14] : memref<20x2048xbf16, #tpu.memory_space<vmem>>, vector<20x2048xbf16>
    %cst_15 = arith.constant dense<0.000000e+00> : vector<2x2048xf32>
    %19 = tpu.matmul %17, %18, %cst_15 {dimension_numbers = #tpu.dot_dimension_numbers<[1], [0], [0], [1], [0, 0, 1, 1], [], []>} : vector<2x20xbf16>, vector<20x2048xbf16>, vector<2x2048xf32> -> vector<2x2048xf32>
    %c0_16 = arith.constant 0 : index
    %c0_17 = arith.constant 0 : index
    %20 = vector.load %arg7[%c0_16, %c0_17] : memref<1x2048xf32, #tpu.memory_space<vmem>>, vector<1x2048xf32>
    %21 = vector.broadcast %20 : vector<1x2048xf32> to vector<2x2048xf32>
    %22 = arith.addf %19, %21 : vector<2x2048xf32>
    %c0_18 = arith.constant 0 : index
    %c0_19 = arith.constant 0 : index
    %23 = vector.load %arg8[%c0_18, %c0_19] : memref<2x20xf32, #tpu.memory_space<vmem>>, vector<2x20xf32>
    tpu.vector_store %arg8[%c0_18, %c0_19], %5 {strides = array<i32>} : memref<2x20xf32, #tpu.memory_space<vmem>>, vector<2x20xf32>,
    %c0_20 = arith.constant 0 : index
    %c0_21 = arith.constant 0 : index
    %24 = vector.load %arg9[%c0_20, %c0_21] : memref<2x20xf32, #tpu.memory_space<vmem>>, vector<2x20xf32>
    tpu.vector_store %arg9[%c0_20, %c0_21], %10 {strides = array<i32>} : memref<2x20xf32, #tpu.memory_space<vmem>>, vector<2x20xf32>,
    %c0_22 = arith.constant 0 : index
    %c0_23 = arith.constant 0 : index
    %25 = vector.load %arg10[%c0_22, %c0_23] : memref<2x2048xf32, #tpu.memory_space<vmem>>, vector<2x2048xf32>
    tpu.vector_store %arg10[%c0_22, %c0_23], %22 {strides = array<i32>} : memref<2x2048xf32, #tpu.memory_space<vmem>>, vector<2x2048xf32>,
    return
  }
}

module attributes {stable_mosaic.version = 11 : i64} {
  func.func @_mm_bias_act_kernel(%arg0: memref<32x1152xbf16, #tpu.memory_space<vmem>>, %arg1: memref<1152x256xbf16, #tpu.memory_space<vmem>>, %arg2: memref<1x256xf32, #tpu.memory_space<vmem>>, %arg3: memref<32x256xf32, #tpu.memory_space<vmem>>) attributes {dimension_semantics = [], scalar_prefetch = 0 : i64, scratch_operands = 0 : i64, tpu.core_type = #tpu.core_type<tc>} {
    %c0 = arith.constant 0 : index
    %c0_0 = arith.constant 0 : index
    %0 = vector.load %arg0[%c0, %c0_0] : memref<32x1152xbf16, #tpu.memory_space<vmem>>, vector<32x1152xbf16>
    %c0_1 = arith.constant 0 : index
    %c0_2 = arith.constant 0 : index
    %1 = vector.load %arg1[%c0_1, %c0_2] : memref<1152x256xbf16, #tpu.memory_space<vmem>>, vector<1152x256xbf16>
    %cst = arith.constant dense<0.000000e+00> : vector<32x256xf32>
    %2 = tpu.matmul %0, %1, %cst {dimension_numbers = #tpu.dot_dimension_numbers<[1], [0], [0], [1], [0, 0, 1, 1], [], []>} : vector<32x1152xbf16>, vector<1152x256xbf16>, vector<32x256xf32> -> vector<32x256xf32>
    %c0_3 = arith.constant 0 : index
    %c0_4 = arith.constant 0 : index
    %3 = vector.load %arg2[%c0_3, %c0_4] : memref<1x256xf32, #tpu.memory_space<vmem>>, vector<1x256xf32>
    %4 = vector.broadcast %3 : vector<1x256xf32> to vector<32x256xf32>
    %5 = arith.addf %2, %4 : vector<32x256xf32>
    %cst_5 = arith.constant 0.000000e+00 : f32
    %6 = vector.broadcast %cst_5 : f32 to vector<32x256xf32>
    %7 = arith.maximumf %5, %6 : vector<32x256xf32>
    %c0_6 = arith.constant 0 : index
    %c0_7 = arith.constant 0 : index
    %8 = vector.load %arg3[%c0_6, %c0_7] : memref<32x256xf32, #tpu.memory_space<vmem>>, vector<32x256xf32>
    tpu.vector_store %arg3[%c0_6, %c0_7], %7 {strides = array<i32>} : memref<32x256xf32, #tpu.memory_space<vmem>>, vector<32x256xf32>,
    return
  }
}

module attributes {stable_mosaic.version = 11 : i64} {
  func.func @_mm_bias_act_kernel(%arg0: memref<128x576xbf16, #tpu.memory_space<vmem>>, %arg1: memref<576x128xbf16, #tpu.memory_space<vmem>>, %arg2: memref<1x128xf32, #tpu.memory_space<vmem>>, %arg3: memref<128x128xf32, #tpu.memory_space<vmem>>) attributes {dimension_semantics = [], scalar_prefetch = 0 : i64, scratch_operands = 0 : i64, tpu.core_type = #tpu.core_type<tc>} {
    %c0 = arith.constant 0 : index
    %c0_0 = arith.constant 0 : index
    %0 = vector.load %arg0[%c0, %c0_0] : memref<128x576xbf16, #tpu.memory_space<vmem>>, vector<128x576xbf16>
    %c0_1 = arith.constant 0 : index
    %c0_2 = arith.constant 0 : index
    %1 = vector.load %arg1[%c0_1, %c0_2] : memref<576x128xbf16, #tpu.memory_space<vmem>>, vector<576x128xbf16>
    %cst = arith.constant dense<0.000000e+00> : vector<128x128xf32>
    %2 = tpu.matmul %0, %1, %cst {dimension_numbers = #tpu.dot_dimension_numbers<[1], [0], [0], [1], [0, 0, 1, 1], [], []>} : vector<128x576xbf16>, vector<576x128xbf16>, vector<128x128xf32> -> vector<128x128xf32>
    %c0_3 = arith.constant 0 : index
    %c0_4 = arith.constant 0 : index
    %3 = vector.load %arg2[%c0_3, %c0_4] : memref<1x128xf32, #tpu.memory_space<vmem>>, vector<1x128xf32>
    %4 = vector.broadcast %3 : vector<1x128xf32> to vector<128x128xf32>
    %5 = arith.addf %2, %4 : vector<128x128xf32>
    %cst_5 = arith.constant 0.000000e+00 : f32
    %6 = vector.broadcast %cst_5 : f32 to vector<128x128xf32>
    %7 = arith.maximumf %5, %6 : vector<128x128xf32>
    %c0_6 = arith.constant 0 : index
    %c0_7 = arith.constant 0 : index
    %8 = vector.load %arg3[%c0_6, %c0_7] : memref<128x128xf32, #tpu.memory_space<vmem>>, vector<128x128xf32>
    tpu.vector_store %arg3[%c0_6, %c0_7], %7 {strides = array<i32>} : memref<128x128xf32, #tpu.memory_space<vmem>>, vector<128x128xf32>,
    return
  }
}

module attributes {stable_mosaic.version = 11 : i64} {
  func.func @_mm_bias_act_kernel(%arg0: memref<512x288xbf16, #tpu.memory_space<vmem>>, %arg1: memref<288x4xbf16, #tpu.memory_space<vmem>>, %arg2: memref<1x4xf32, #tpu.memory_space<vmem>>, %arg3: memref<512x4xf32, #tpu.memory_space<vmem>>) attributes {dimension_semantics = [], scalar_prefetch = 0 : i64, scratch_operands = 0 : i64, tpu.core_type = #tpu.core_type<tc>} {
    %c0 = arith.constant 0 : index
    %c0_0 = arith.constant 0 : index
    %0 = vector.load %arg0[%c0, %c0_0] : memref<512x288xbf16, #tpu.memory_space<vmem>>, vector<512x288xbf16>
    %c0_1 = arith.constant 0 : index
    %c0_2 = arith.constant 0 : index
    %1 = vector.load %arg1[%c0_1, %c0_2] : memref<288x4xbf16, #tpu.memory_space<vmem>>, vector<288x4xbf16>
    %cst = arith.constant dense<0.000000e+00> : vector<512x4xf32>
    %2 = tpu.matmul %0, %1, %cst {dimension_numbers = #tpu.dot_dimension_numbers<[1], [0], [0], [1], [0, 0, 1, 1], [], []>} : vector<512x288xbf16>, vector<288x4xbf16>, vector<512x4xf32> -> vector<512x4xf32>
    %c0_3 = arith.constant 0 : index
    %c0_4 = arith.constant 0 : index
    %3 = vector.load %arg2[%c0_3, %c0_4] : memref<1x4xf32, #tpu.memory_space<vmem>>, vector<1x4xf32>
    %4 = vector.broadcast %3 : vector<1x4xf32> to vector<512x4xf32>
    %5 = arith.addf %2, %4 : vector<512x4xf32>
    %cst_5 = arith.constant 0.000000e+00 : f32
    %6 = vector.broadcast %cst_5 : f32 to vector<512x4xf32>
    %7 = arith.subf %6, %5 : vector<512x4xf32>
    %8 = math.exp %7 : vector<512x4xf32>
    %cst_6 = arith.constant 1.000000e+00 : f32
    %9 = vector.broadcast %cst_6 : f32 to vector<512x4xf32>
    %10 = arith.addf %9, %8 : vector<512x4xf32>
    %cst_7 = arith.constant 1.000000e+00 : f32
    %11 = vector.broadcast %cst_7 : f32 to vector<512x4xf32>
    %12 = arith.divf %11, %10 : vector<512x4xf32>
    %c0_8 = arith.constant 0 : index
    %c0_9 = arith.constant 0 : index
    %13 = vector.load %arg3[%c0_8, %c0_9] : memref<512x4xf32, #tpu.memory_space<vmem>>, vector<512x4xf32>
    tpu.vector_store %arg3[%c0_8, %c0_9], %12 {strides = array<i32>} : memref<512x4xf32, #tpu.memory_space<vmem>>, vector<512x4xf32>,
    return
  }
}

</mosaic_0001>

<bundles_post_ra>
// kernel: convvae_forward.7
= control target key start
LH: loop header
LB: loop body
LE: loop exit
PB: predicated region body
PF: predicated region fallthrough
CT: control target
= control target key end

     0   :  { %vm254_vm0 = vcmask 130048   ;;  %vm704_vm1 = vcmask 261120   ;;  %s1449_s1 = inlined_call_operand.vmem [shape: bf16[16,32], index: 1, kind: input, shape index: {}]   ;;  %s1450_s0 = inlined_call_operand.vmem [shape: bf16[512,16], index: 0, kind: input, shape index: {}]   ;;  %s1451_s2 = inlined_call_operand.vmem [shape: f32[1,32], index: 2, kind: input, shape index: {}]   ;;  %s1452_s3 = inlined_call_operand.vmem [shape: f32[512,32], index: 3, kind: output, shape index: {}]  }
   0x1   :  { %v940_v0 = vld [vmem:[%s1449_s1] sm:$0xff]   ;;  %v943_v3 = vld [vmem:[%s1450_s0 + $0x8] sm:$0xff]   ;;  %v945_v5 = vld [vmem:[%s1450_s0 + $0x10] sm:$0xff]  }
   0x2   :  { %v941_v1 = vld [vmem:[%s1450_s0] sm:$0xff]   ;;  %872 = vmatprep.subr.bf16.mxu0 %v940_v0  ;;  %938 = vmatprep.subr.bf16.mxu1 %v940_v0  ;;  %v944_v4 = vld [vmem:[%s1450_s0 + $0x88] sm:$0xff]   ;;  %v946_v6 = vld [vmem:[%s1450_s0 + $0x90] sm:$0xff]  }
   0x3   :  { %v942_v2 = vld [vmem:[%s1450_s0 + $0x80] sm:$0xff]   ;;  %873 = vmatpush3.bf16.msra.mxu0 %v940_v0  ;;  %939 = vmatpush3.bf16.msra.mxu1 %v940_v0  ;;  %v947_v7 = vld [vmem:[%s1450_s0 + $0x18] sm:$0xff]   ;;  %v951_v11 = vld [vmem:[%s1450_s0 + $0x28] sm:$0xff]  }
   0x4   :  { %874 = vmatprep.mubr.msk.bf16.mxu0 %vm254_vm0, %v941_v1  ;;  %906 = vmatprep.mubr.msk.bf16.mxu1 %vm254_vm0, %v942_v2  ;;  %v948_v8 = vld [vmem:[%s1450_s0 + $0x98] sm:$0xff]   ;;  %v949_v9 = vld [vmem:[%s1450_s0 + $0x20] sm:$0xff]   ;;  %v952_v12 = vld [vmem:[%s1450_s0 + $0xa8] sm:$0xff]  }
   0x5   :  { %v950_v10 = vld [vmem:[%s1450_s0 + $0xa0] sm:$0xff]   ;;  %v953_v13 = vld [vmem:[%s1450_s0 + $0x30] sm:$0xff]   ;;  %v955_v15 = vld [vmem:[%s1450_s0 + $0x38] sm:$0xff]  }
   0x6   :  { %875 = vmatmul.mubr.msk.bf16.vlgmr.msra.gmra.mrb[0].mxu0 %vm254_vm0, %v943_v3  ;;  %907 = vmatmul.mubr.msk.bf16.vlgmr.msra.gmra.mrb[0].mxu1 %vm254_vm0, %v944_v4  ;;  %v954_v14 = vld [vmem:[%s1450_s0 + $0xb0] sm:$0xff]   ;;  %v956_v16 = vld [vmem:[%s1450_s0 + $0xb8] sm:$0xff]   ;;  %v957_v17 = vld [vmem:[%s1450_s0 + $0x40] sm:$0xff]  }
   0x7   :  { %878 = vmatprep.mubr.msk.bf16.mxu0 %vm254_vm0, %v945_v5  ;;  %910 = vmatprep.mubr.msk.bf16.mxu1 %vm254_vm0, %v946_v6  ;;  %v958_v18 = vld [vmem:[%s1450_s0 + $0xc0] sm:$0xff]   ;;  %v959_v19 = vld [vmem:[%s1450_s0 + $0x48] sm:$0xff]   ;;  %v961_v21 = vld [vmem:[%s1450_s0 + $0x50] sm:$0xff]  }
   0x8   :  { %v960_v20 = vld [vmem:[%s1450_s0 + $0xc8] sm:$0xff]   ;;  %v962_v22 = vld [vmem:[%s1450_s0 + $0xd0] sm:$0xff]   ;;  %v963_v23 = vld [vmem:[%s1450_s0 + $0x58] sm:$0xff]  }
   0x9   :  { %v964_v24 = vld [vmem:[%s1450_s0 + $0xd8] sm:$0xff]   ;;  %v965_v25 = vld [vmem:[%s1450_s0 + $0x60] sm:$0xff]   ;;  %v967_v27 = vld [vmem:[%s1450_s0 + $0x68] sm:$0xff]  }
   0xa   :  { %v966_v26 = vld [vmem:[%s1450_s0 + $0xe0] sm:$0xff]   ;;  %v968_v28 = vld [vmem:[%s1450_s0 + $0xe8] sm:$0xff]   ;;  %v969_v29 = vld [vmem:[%s1450_s0 + $0x70] sm:$0xff]  }
   0xb   :  { %v970_v30 = vld [vmem:[%s1450_s0 + $0xf0] sm:$0xff]   ;;  %v971_v31 = vld [vmem:[%s1450_s0 + $0x78] sm:$0xff]   ;;  %v1127_v33 = vld [vmem:[%s1451_s2] ss:$0 sm:$0xff] }
   0xc   :  { %v972_v32 = vld [vmem:[%s1450_s0 + $0xf8] sm:$0xff]  }
   0xe   :  { %879 = vmatmul.mubr.msk.bf16.gmra.mrb[4].mxu0 %vm254_vm0, %v947_v7  ;;  %911 = vmatmul.mubr.msk.bf16.gmra.mrb[4].mxu1 %vm254_vm0, %v948_v8 }
   0xf   :  { %882 = vmatprep.mubr.msk.bf16.mxu0 %vm254_vm0, %v949_v9  ;;  %914 = vmatprep.mubr.msk.bf16.mxu1 %vm254_vm0, %v950_v10 }
  0x16   :  { %883 = vmatmul.mubr.msk.bf16.gmra.mrb[8].mxu0 %vm254_vm0, %v951_v11  ;;  %915 = vmatmul.mubr.msk.bf16.gmra.mrb[8].mxu1 %vm254_vm0, %v952_v12 }
  0x17   :  { %886 = vmatprep.mubr.msk.bf16.mxu0 %vm254_vm0, %v953_v13  ;;  %918 = vmatprep.mubr.msk.bf16.mxu1 %vm254_vm0, %v954_v14 }
  0x1e   :  { %887 = vmatmul.mubr.msk.bf16.gmra.mrb[12].mxu0 %vm254_vm0, %v955_v15  ;;  %919 = vmatmul.mubr.msk.bf16.gmra.mrb[12].mxu1 %vm254_vm0, %v956_v16 }
  0x1f   :  { %890 = vmatprep.mubr.msk.bf16.mxu0 %vm254_vm0, %v957_v17  ;;  %922 = vmatprep.mubr.msk.bf16.mxu1 %vm254_vm0, %v958_v18 }
  0x26   :  { %891 = vmatmul.mubr.msk.bf16.gmra.mrb[16].mxu0 %vm254_vm0, %v959_v19  ;;  %923 = vmatmul.mubr.msk.bf16.gmra.mrb[16].mxu1 %vm254_vm0, %v960_v20 }
  0x27   :  { %894 = vmatprep.mubr.msk.bf16.mxu0 %vm254_vm0, %v961_v21  ;;  %926 = vmatprep.mubr.msk.bf16.mxu1 %vm254_vm0, %v962_v22 }
  0x2e   :  { %895 = vmatmul.mubr.msk.bf16.gmra.mrb[20].mxu0 %vm254_vm0, %v963_v23  ;;  %927 = vmatmul.mubr.msk.bf16.gmra.mrb[20].mxu1 %vm254_vm0, %v964_v24 }
  0x2f   :  { %898 = vmatprep.mubr.msk.bf16.mxu0 %vm254_vm0, %v965_v25  ;;  %930 = vmatprep.mubr.msk.bf16.mxu1 %vm254_vm0, %v966_v26 }
  0x36   :  { %899 = vmatmul.mubr.msk.bf16.gmra.mrb[24].mxu0 %vm254_vm0, %v967_v27  ;;  %931 = vmatmul.mubr.msk.bf16.gmra.mrb[24].mxu1 %vm254_vm0, %v968_v28 }
  0x37   :  { %902 = vmatprep.mubr.msk.bf16.mxu0 %vm254_vm0, %v969_v29  ;;  %934 = vmatprep.mubr.msk.bf16.mxu1 %vm254_vm0, %v970_v30 }
  0x3e   :  { %903 = vmatmul.mubr.msk.bf16.gmra.mrb[28].mxu0 %vm254_vm0, %v971_v31  ;;  %935 = vmatmul.mubr.msk.bf16.gmra.mrb[28].mxu1 %vm254_vm0, %v972_v32 }
  0xd9   :  { %v876_v34 = vpop.f32.mrb[0].mxu0  ;;  %v908_v35 = vpop.f32.mrb[0].mxu1 }
  0xda   :  { %v394_v36 = vadd.f32 %v876_v34, %v1127_v33  ;;  %v522_v37 = vadd.f32 %v908_v35, %v1127_v33  ;;  %v385_v38 = vpop.f32.mrb[1].mxu0  ;;  %v513_v39 = vpop.f32.mrb[1].mxu1 }
  0xdb   :  { %v386_v40 = vadd.f32 %v1127_v33, %v385_v38  ;;  %v514_v41 = vadd.f32 %v1127_v33, %v513_v39  ;;  %v877_v42 = vpop.f32.mrb[2].mxu0  ;;  %v909_v43 = vpop.f32.mrb[2].mxu1 }
  0xdc   :  { %v642_v44 = vmax.f32 %v394_v36, 0.0  ;;  %v674_v45 = vmax.f32 %v522_v37, 0.0  ;;  %v397_v46 = vadd.f32 %v877_v42, %v1127_v33  ;;  %v525_v47 = vadd.f32 %v909_v43, %v1127_v33  ;;  %v388_v48 = vpop.f32.mrb[3].mxu0  ;;  %v516_v49 = vpop.f32.mrb[3].mxu1 }
  0xdd   :  { %v640_v50 = vmax.f32 %v386_v40, 0.0  ;;  %v672_v51 = vmax.f32 %v514_v41, 0.0  ;;  %v389_v52 = vadd.f32 %v1127_v33, %v388_v48  ;;  %v517_v53 = vadd.f32 %v1127_v33, %v516_v49 }
  0xde   :  { %707 = vst.msk [vmem:[%s1452_s3 + $0x10] sm:$0xff] %vm704_vm1, %v642_v44  ;;  %739 = vst.msk [vmem:[%s1452_s3 + $0x110] sm:$0xff] %vm704_vm1, %v674_v45  ;;  %v643_v54 = vmax.f32 %v397_v46, 0.0  ;;  %v675_v55 = vmax.f32 %v525_v47, 0.0 }
  0xdf   :  { %705 = vst.msk [vmem:[%s1452_s3] sm:$0xff] %vm704_vm1, %v640_v50  ;;  %737 = vst.msk [vmem:[%s1452_s3 + $0x100] sm:$0xff] %vm704_vm1, %v672_v51  ;;  %v641_v56 = vmax.f32 %v389_v52, 0.0  ;;  %v673_v57 = vmax.f32 %v517_v53, 0.0 }
  0xe0   :  { %708 = vst.msk [vmem:[%s1452_s3 + $0x18] sm:$0xff] %vm704_vm1, %v643_v54  ;;  %740 = vst.msk [vmem:[%s1452_s3 + $0x118] sm:$0xff] %vm704_vm1, %v675_v55 }
  0xe1   :  { %706 = vst.msk [vmem:[%s1452_s3 + $0x8] sm:$0xff] %vm704_vm1, %v641_v56  ;;  %738 = vst.msk [vmem:[%s1452_s3 + $0x108] sm:$0xff] %vm704_vm1, %v673_v57  ;;  %v880_v58 = vpop.f32.mrb[4].mxu0  ;;  %v912_v59 = vpop.f32.mrb[4].mxu1 }
  0xe2   :  { %v410_v60 = vadd.f32 %v880_v58, %v1127_v33  ;;  %v538_v61 = vadd.f32 %v912_v59, %v1127_v33  ;;  %v401_v62 = vpop.f32.mrb[5].mxu0  ;;  %v529_v63 = vpop.f32.mrb[5].mxu1 }
  0xe3   :  { %v402_v0 = vadd.f32 %v1127_v33, %v401_v62  ;;  %v530_v1 = vadd.f32 %v1127_v33, %v529_v63  ;;  %v881_v2 = vpop.f32.mrb[6].mxu0  ;;  %v913_v3 = vpop.f32.mrb[6].mxu1 }
  0xe4   :  { %v646_v4 = vmax.f32 %v410_v60, 0.0  ;;  %v678_v5 = vmax.f32 %v538_v61, 0.0  ;;  %v413_v6 = vadd.f32 %v881_v2, %v1127_v33  ;;  %v541_v7 = vadd.f32 %v913_v3, %v1127_v33  ;;  %v404_v8 = vpop.f32.mrb[7].mxu0  ;;  %v532_v9 = vpop.f32.mrb[7].mxu1 }
  0xe5   :  { %v644_v10 = vmax.f32 %v402_v0, 0.0  ;;  %v676_v11 = vmax.f32 %v530_v1, 0.0  ;;  %v405_v12 = vadd.f32 %v1127_v33, %v404_v8  ;;  %v533_v13 = vadd.f32 %v1127_v33, %v532_v9 }
  0xe6   :  { %711 = vst.msk [vmem:[%s1452_s3 + $0x30] sm:$0xff] %vm704_vm1, %v646_v4  ;;  %743 = vst.msk [vmem:[%s1452_s3 + $0x130] sm:$0xff] %vm704_vm1, %v678_v5  ;;  %v647_v14 = vmax.f32 %v413_v6, 0.0  ;;  %v679_v15 = vmax.f32 %v541_v7, 0.0 }
  0xe7   :  { %709 = vst.msk [vmem:[%s1452_s3 + $0x20] sm:$0xff] %vm704_vm1, %v644_v10  ;;  %741 = vst.msk [vmem:[%s1452_s3 + $0x120] sm:$0xff] %vm704_vm1, %v676_v11  ;;  %v645_v16 = vmax.f32 %v405_v12, 0.0  ;;  %v677_v17 = vmax.f32 %v533_v13, 0.0 }
  0xe8   :  { %712 = vst.msk [vmem:[%s1452_s3 + $0x38] sm:$0xff] %vm704_vm1, %v647_v14  ;;  %744 = vst.msk [vmem:[%s1452_s3 + $0x138] sm:$0xff] %vm704_vm1, %v679_v15 }
  0xe9   :  { %710 = vst.msk [vmem:[%s1452_s3 + $0x28] sm:$0xff] %vm704_vm1, %v645_v16  ;;  %742 = vst.msk [vmem:[%s1452_s3 + $0x128] sm:$0xff] %vm704_vm1, %v677_v17  ;;  %v884_v18 = vpop.f32.mrb[8].mxu0  ;;  %v916_v19 = vpop.f32.mrb[8].mxu1 }
  0xea   :  { %v426_v20 = vadd.f32 %v884_v18, %v1127_v33  ;;  %v554_v21 = vadd.f32 %v916_v19, %v1127_v33  ;;  %v417_v22 = vpop.f32.mrb[9].mxu0  ;;  %v545_v23 = vpop.f32.mrb[9].mxu1 }
  0xeb   :  { %v418_v24 = vadd.f32 %v1127_v33, %v417_v22  ;;  %v546_v25 = vadd.f32 %v1127_v33, %v545_v23  ;;  %v885_v26 = vpop.f32.mrb[10].mxu0  ;;  %v917_v27 = vpop.f32.mrb[10].mxu1 }
  0xec   :  { %v650_v28 = vmax.f32 %v426_v20, 0.0  ;;  %v682_v29 = vmax.f32 %v554_v21, 0.0  ;;  %v429_v30 = vadd.f32 %v885_v26, %v1127_v33  ;;  %v557_v31 = vadd.f32 %v917_v27, %v1127_v33  ;;  %v420_v32 = vpop.f32.mrb[11].mxu0  ;;  %v548_v34 = vpop.f32.mrb[11].mxu1 }
  0xed   :  { %v648_v35 = vmax.f32 %v418_v24, 0.0  ;;  %v680_v36 = vmax.f32 %v546_v25, 0.0  ;;  %v421_v37 = vadd.f32 %v1127_v33, %v420_v32  ;;  %v549_v38 = vadd.f32 %v1127_v33, %v548_v34 }
  0xee   :  { %715 = vst.msk [vmem:[%s1452_s3 + $0x50] sm:$0xff] %vm704_vm1, %v650_v28  ;;  %747 = vst.msk [vmem:[%s1452_s3 + $0x150] sm:$0xff] %vm704_vm1, %v682_v29  ;;  %v651_v39 = vmax.f32 %v429_v30, 0.0  ;;  %v683_v40 = vmax.f32 %v557_v31, 0.0 }
  0xef   :  { %713 = vst.msk [vmem:[%s1452_s3 + $0x40] sm:$0xff] %vm704_vm1, %v648_v35  ;;  %745 = vst.msk [vmem:[%s1452_s3 + $0x140] sm:$0xff] %vm704_vm1, %v680_v36  ;;  %v649_v41 = vmax.f32 %v421_v37, 0.0  ;;  %v681_v42 = vmax.f32 %v549_v38, 0.0 }
  0xf0   :  { %716 = vst.msk [vmem:[%s1452_s3 + $0x58] sm:$0xff] %vm704_vm1, %v651_v39  ;;  %748 = vst.msk [vmem:[%s1452_s3 + $0x158] sm:$0xff] %vm704_vm1, %v683_v40 }
  0xf1   :  { %714 = vst.msk [vmem:[%s1452_s3 + $0x48] sm:$0xff] %vm704_vm1, %v649_v41  ;;  %746 = vst.msk [vmem:[%s1452_s3 + $0x148] sm:$0xff] %vm704_vm1, %v681_v42  ;;  %v888_v43 = vpop.f32.mrb[12].mxu0  ;;  %v920_v44 = vpop.f32.mrb[12].mxu1 }
  0xf2   :  { %v442_v45 = vadd.f32 %v888_v43, %v1127_v33  ;;  %v570_v46 = vadd.f32 %v920_v44, %v1127_v33  ;;  %v433_v47 = vpop.f32.mrb[13].mxu0  ;;  %v561_v48 = vpop.f32.mrb[13].mxu1 }
  0xf3   :  { %v434_v49 = vadd.f32 %v1127_v33, %v433_v47  ;;  %v562_v50 = vadd.f32 %v1127_v33, %v561_v48  ;;  %v889_v51 = vpop.f32.mrb[14].mxu0  ;;  %v921_v52 = vpop.f32.mrb[14].mxu1 }
  0xf4   :  { %v654_v53 = vmax.f32 %v442_v45, 0.0  ;;  %v686_v54 = vmax.f32 %v570_v46, 0.0  ;;  %v445_v55 = vadd.f32 %v889_v51, %v1127_v33  ;;  %v573_v56 = vadd.f32 %v921_v52, %v1127_v33  ;;  %v436_v57 = vpop.f32.mrb[15].mxu0  ;;  %v564_v58 = vpop.f32.mrb[15].mxu1 }
  0xf5   :  { %v652_v59 = vmax.f32 %v434_v49, 0.0  ;;  %v684_v60 = vmax.f32 %v562_v50, 0.0  ;;  %v437_v61 = vadd.f32 %v1127_v33, %v436_v57  ;;  %v565_v62 = vadd.f32 %v1127_v33, %v564_v58 }
  0xf6   :  { %719 = vst.msk [vmem:[%s1452_s3 + $0x70] sm:$0xff] %vm704_vm1, %v654_v53  ;;  %751 = vst.msk [vmem:[%s1452_s3 + $0x170] sm:$0xff] %vm704_vm1, %v686_v54  ;;  %v655_v63 = vmax.f32 %v445_v55, 0.0  ;;  %v687_v0 = vmax.f32 %v573_v56, 0.0 }
  0xf7   :  { %717 = vst.msk [vmem:[%s1452_s3 + $0x60] sm:$0xff] %vm704_vm1, %v652_v59  ;;  %749 = vst.msk [vmem:[%s1452_s3 + $0x160] sm:$0xff] %vm704_vm1, %v684_v60  ;;  %v653_v1 = vmax.f32 %v437_v61, 0.0  ;;  %v685_v2 = vmax.f32 %v565_v62, 0.0 }
  0xf8   :  { %720 = vst.msk [vmem:[%s1452_s3 + $0x78] sm:$0xff] %vm704_vm1, %v655_v63  ;;  %752 = vst.msk [vmem:[%s1452_s3 + $0x178] sm:$0xff] %vm704_vm1, %v687_v0 }
  0xf9   :  { %718 = vst.msk [vmem:[%s1452_s3 + $0x68] sm:$0xff] %vm704_vm1, %v653_v1  ;;  %750 = vst.msk [vmem:[%s1452_s3 + $0x168] sm:$0xff] %vm704_vm1, %v685_v2  ;;  %v892_v3 = vpop.f32.mrb[16].mxu0  ;;  %v924_v4 = vpop.f32.mrb[16].mxu1 }
  0xfa   :  { %v458_v5 = vadd.f32 %v892_v3, %v1127_v33  ;;  %v586_v6 = vadd.f32 %v924_v4, %v1127_v33  ;;  %v449_v7 = vpop.f32.mrb[17].mxu0  ;;  %v577_v8 = vpop.f32.mrb[17].mxu1 }
  0xfb   :  { %v450_v9 = vadd.f32 %v1127_v33, %v449_v7  ;;  %v578_v10 = vadd.f32 %v1127_v33, %v577_v8  ;;  %v893_v11 = vpop.f32.mrb[18].mxu0  ;;  %v925_v12 = vpop.f32.mrb[18].mxu1 }
  0xfc   :  { %v658_v13 = vmax.f32 %v458_v5, 0.0  ;;  %v690_v14 = vmax.f32 %v586_v6, 0.0  ;;  %v461_v15 = vadd.f32 %v893_v11, %v1127_v33  ;;  %v589_v16 = vadd.f32 %v925_v12, %v1127_v33  ;;  %v452_v17 = vpop.f32.mrb[19].mxu0  ;;  %v580_v18 = vpop.f32.mrb[19].mxu1 }
  0xfd   :  { %v656_v19 = vmax.f32 %v450_v9, 0.0  ;;  %v688_v20 = vmax.f32 %v578_v10, 0.0  ;;  %v453_v21 = vadd.f32 %v1127_v33, %v452_v17  ;;  %v581_v22 = vadd.f32 %v1127_v33, %v580_v18 }
  0xfe   :  { %723 = vst.msk [vmem:[%s1452_s3 + $0x90] sm:$0xff] %vm704_vm1, %v658_v13  ;;  %755 = vst.msk [vmem:[%s1452_s3 + $0x190] sm:$0xff] %vm704_vm1, %v690_v14  ;;  %v659_v23 = vmax.f32 %v461_v15, 0.0  ;;  %v691_v24 = vmax.f32 %v589_v16, 0.0 }
  0xff   :  { %721 = vst.msk [vmem:[%s1452_s3 + $0x80] sm:$0xff] %vm704_vm1, %v656_v19  ;;  %753 = vst.msk [vmem:[%s1452_s3 + $0x180] sm:$0xff] %vm704_vm1, %v688_v20  ;;  %v657_v25 = vmax.f32 %v453_v21, 0.0  ;;  %v689_v26 = vmax.f32 %v581_v22, 0.0 }
 0x100   :  { %724 = vst.msk [vmem:[%s1452_s3 + $0x98] sm:$0xff] %vm704_vm1, %v659_v23  ;;  %756 = vst.msk [vmem:[%s1452_s3 + $0x198] sm:$0xff] %vm704_vm1, %v691_v24 }
 0x101   :  { %722 = vst.msk [vmem:[%s1452_s3 + $0x88] sm:$0xff] %vm704_vm1, %v657_v25  ;;  %754 = vst.msk [vmem:[%s1452_s3 + $0x188] sm:$0xff] %vm704_vm1, %v689_v26  ;;  %v896_v27 = vpop.f32.mrb[20].mxu0  ;;  %v928_v28 = vpop.f32.mrb[20].mxu1 }
 0x102   :  { %v474_v29 = vadd.f32 %v896_v27, %v1127_v33  ;;  %v602_v30 = vadd.f32 %v928_v28, %v1127_v33  ;;  %v465_v31 = vpop.f32.mrb[21].mxu0  ;;  %v593_v32 = vpop.f32.mrb[21].mxu1 }
 0x103   :  { %v466_v34 = vadd.f32 %v1127_v33, %v465_v31  ;;  %v594_v35 = vadd.f32 %v1127_v33, %v593_v32  ;;  %v897_v36 = vpop.f32.mrb[22].mxu0  ;;  %v929_v37 = vpop.f32.mrb[22].mxu1 }
 0x104   :  { %v662_v38 = vmax.f32 %v474_v29, 0.0  ;;  %v694_v39 = vmax.f32 %v602_v30, 0.0  ;;  %v477_v40 = vadd.f32 %v897_v36, %v1127_v33  ;;  %v605_v41 = vadd.f32 %v929_v37, %v1127_v33  ;;  %v468_v42 = vpop.f32.mrb[23].mxu0  ;;  %v596_v43 = vpop.f32.mrb[23].mxu1 }
 0x105   :  { %v660_v44 = vmax.f32 %v466_v34, 0.0  ;;  %v692_v45 = vmax.f32 %v594_v35, 0.0  ;;  %v469_v46 = vadd.f32 %v1127_v33, %v468_v42  ;;  %v597_v47 = vadd.f32 %v1127_v33, %v596_v43 }
 0x106   :  { %727 = vst.msk [vmem:[%s1452_s3 + $0xb0] sm:$0xff] %vm704_vm1, %v662_v38  ;;  %759 = vst.msk [vmem:[%s1452_s3 + $0x1b0] sm:$0xff] %vm704_vm1, %v694_v39  ;;  %v663_v48 = vmax.f32 %v477_v40, 0.0  ;;  %v695_v49 = vmax.f32 %v605_v41, 0.0 }
 0x107   :  { %725 = vst.msk [vmem:[%s1452_s3 + $0xa0] sm:$0xff] %vm704_vm1, %v660_v44  ;;  %757 = vst.msk [vmem:[%s1452_s3 + $0x1a0] sm:$0xff] %vm704_vm1, %v692_v45  ;;  %v661_v50 = vmax.f32 %v469_v46, 0.0  ;;  %v693_v51 = vmax.f32 %v597_v47, 0.0 }
 0x108   :  { %728 = vst.msk [vmem:[%s1452_s3 + $0xb8] sm:$0xff] %vm704_vm1, %v663_v48  ;;  %760 = vst.msk [vmem:[%s1452_s3 + $0x1b8] sm:$0xff] %vm704_vm1, %v695_v49 }
 0x109   :  { %726 = vst.msk [vmem:[%s1452_s3 + $0xa8] sm:$0xff] %vm704_vm1, %v661_v50  ;;  %758 = vst.msk [vmem:[%s1452_s3 + $0x1a8] sm:$0xff] %vm704_vm1, %v693_v51  ;;  %v900_v52 = vpop.f32.mrb[24].mxu0  ;;  %v932_v53 = vpop.f32.mrb[24].mxu1 }
 0x10a   :  { %v490_v54 = vadd.f32 %v900_v52, %v1127_v33  ;;  %v618_v55 = vadd.f32 %v932_v53, %v1127_v33  ;;  %v481_v56 = vpop.f32.mrb[25].mxu0  ;;  %v609_v57 = vpop.f32.mrb[25].mxu1 }
 0x10b   :  { %v482_v58 = vadd.f32 %v1127_v33, %v481_v56  ;;  %v610_v59 = vadd.f32 %v1127_v33, %v609_v57  ;;  %v901_v60 = vpop.f32.mrb[26].mxu0  ;;  %v933_v61 = vpop.f32.mrb[26].mxu1 }
 0x10c   :  { %v666_v62 = vmax.f32 %v490_v54, 0.0  ;;  %v698_v63 = vmax.f32 %v618_v55, 0.0  ;;  %v493_v0 = vadd.f32 %v901_v60, %v1127_v33  ;;  %v621_v1 = vadd.f32 %v933_v61, %v1127_v33  ;;  %v484_v2 = vpop.f32.mrb[27].mxu0  ;;  %v612_v3 = vpop.f32.mrb[27].mxu1 }
 0x10d   :  { %v664_v4 = vmax.f32 %v482_v58, 0.0  ;;  %v696_v5 = vmax.f32 %v610_v59, 0.0  ;;  %v485_v6 = vadd.f32 %v1127_v33, %v484_v2  ;;  %v613_v7 = vadd.f32 %v1127_v33, %v612_v3 }
 0x10e   :  { %731 = vst.msk [vmem:[%s1452_s3 + $0xd0] sm:$0xff] %vm704_vm1, %v666_v62  ;;  %763 = vst.msk [vmem:[%s1452_s3 + $0x1d0] sm:$0xff] %vm704_vm1, %v698_v63  ;;  %v667_v8 = vmax.f32 %v493_v0, 0.0  ;;  %v699_v9 = vmax.f32 %v621_v1, 0.0 }
 0x10f   :  { %729 = vst.msk [vmem:[%s1452_s3 + $0xc0] sm:$0xff] %vm704_vm1, %v664_v4  ;;  %761 = vst.msk [vmem:[%s1452_s3 + $0x1c0] sm:$0xff] %vm704_vm1, %v696_v5  ;;  %v665_v10 = vmax.f32 %v485_v6, 0.0  ;;  %v697_v11 = vmax.f32 %v613_v7, 0.0 }
 0x110   :  { %732 = vst.msk [vmem:[%s1452_s3 + $0xd8] sm:$0xff] %vm704_vm1, %v667_v8  ;;  %764 = vst.msk [vmem:[%s1452_s3 + $0x1d8] sm:$0xff] %vm704_vm1, %v699_v9 }
 0x111   :  { %730 = vst.msk [vmem:[%s1452_s3 + $0xc8] sm:$0xff] %vm704_vm1, %v665_v10  ;;  %762 = vst.msk [vmem:[%s1452_s3 + $0x1c8] sm:$0xff] %vm704_vm1, %v697_v11  ;;  %v904_v12 = vpop.f32.mrb[28].mxu0  ;;  %v936_v13 = vpop.f32.mrb[28].mxu1 }
 0x112   :  { %v506_v14 = vadd.f32 %v904_v12, %v1127_v33  ;;  %v634_v15 = vadd.f32 %v936_v13, %v1127_v33  ;;  %v497_v16 = vpop.f32.mrb[29].mxu0  ;;  %v625_v17 = vpop.f32.mrb[29].mxu1 }
 0x113   :  { %v498_v18 = vadd.f32 %v1127_v33, %v497_v16  ;;  %v626_v19 = vadd.f32 %v1127_v33, %v625_v17  ;;  %v905_v20 = vpop.f32.mrb[30].mxu0  ;;  %v937_v21 = vpop.f32.mrb[30].mxu1 }
 0x114   :  { %v670_v22 = vmax.f32 %v506_v14, 0.0  ;;  %v702_v23 = vmax.f32 %v634_v15, 0.0  ;;  %v509_v24 = vadd.f32 %v905_v20, %v1127_v33  ;;  %v637_v25 = vadd.f32 %v937_v21, %v1127_v33  ;;  %v500_v26 = vpop.f32.mrb[31].mxu0  ;;  %v628_v27 = vpop.f32.mrb[31].mxu1 }
 0x115   :  { %v668_v28 = vmax.f32 %v498_v18, 0.0  ;;  %v700_v29 = vmax.f32 %v626_v19, 0.0  ;;  %v501_v30 = vadd.f32 %v1127_v33, %v500_v26  ;;  %v629_v31 = vadd.f32 %v1127_v33, %v628_v27 }
 0x116   :  { %735 = vst.msk [vmem:[%s1452_s3 + $0xf0] sm:$0xff] %vm704_vm1, %v670_v22  ;;  %767 = vst.msk [vmem:[%s1452_s3 + $0x1f0] sm:$0xff] %vm704_vm1, %v702_v23  ;;  %v671_v32 = vmax.f32 %v509_v24, 0.0  ;;  %v703_v34 = vmax.f32 %v637_v25, 0.0 }
 0x117   :  { %733 = vst.msk [vmem:[%s1452_s3 + $0xe0] sm:$0xff] %vm704_vm1, %v668_v28  ;;  %765 = vst.msk [vmem:[%s1452_s3 + $0x1e0] sm:$0xff] %vm704_vm1, %v700_v29  ;;  %v669_v33 = vmax.f32 %v501_v30, 0.0  ;;  %v701_v35 = vmax.f32 %v629_v31, 0.0 }
 0x118   :  { %736 = vst.msk [vmem:[%s1452_s3 + $0xf8] sm:$0xff] %vm704_vm1, %v671_v32  ;;  %768 = vst.msk [vmem:[%s1452_s3 + $0x1f8] sm:$0xff] %vm704_vm1, %v703_v34 }
 0x119   :  { %734 = vst.msk [vmem:[%s1452_s3 + $0xe8] sm:$0xff] %vm704_vm1, %v669_v33  ;;  %766 = vst.msk [vmem:[%s1452_s3 + $0x1e8] sm:$0xff] %vm704_vm1, %v701_v35 }

// kernel: convvae_forward.8
= control target key start
LH: loop header
LB: loop body
LE: loop exit
PB: predicated region body
PF: predicated region fallthrough
CT: control target
= control target key end

     0   :  { %vm680_vm0 = vcmask 523264   ;;  %s1271_s1 = inlined_call_operand.vmem [shape: bf16[512,64], index: 1, kind: input, shape index: {}]   ;;  %s1272_s0 = inlined_call_operand.vmem [shape: bf16[128,512], index: 0, kind: input, shape index: {}]   ;;  %s1273_s2 = inlined_call_operand.vmem [shape: f32[1,64], index: 2, kind: input, shape index: {}]   ;;  %s1274_s3 = inlined_call_operand.vmem [shape: f32[128,64], index: 3, kind: output, shape index: {}]  }
   0x1   :  { %v894_v0 = vld [vmem:[%s1271_s1 + $0x40] sm:$0xff]   ;;  %v898_v4 = vld [vmem:[%s1271_s1 + $0x48] sm:$0xff]   ;;  %v902_v8 = vld [vmem:[%s1271_s1 + $0x50] sm:$0xff]  }
   0x2   :  { %v895_v1 = vld [vmem:[%s1271_s1 + $0xc0] sm:$0xff]   ;;  %766 = vmatprep.subr.bf16.mxu0 %v894_v0  ;;  %v899_v5 = vld [vmem:[%s1271_s1 + $0xc8] sm:$0xff]   ;;  %v903_v9 = vld [vmem:[%s1271_s1 + $0xd0] sm:$0xff]  }
   0x3   :  { %v896_v2 = vld [vmem:[%s1271_s1] sm:$0xff]   ;;  %830 = vmatprep.subr.bf16.mxu1 %v895_v1  ;;  %v900_v6 = vld [vmem:[%s1271_s1 + $0x8] sm:$0xff]   ;;  %v904_v10 = vld [vmem:[%s1271_s1 + $0x10] sm:$0xff]  }
   0x4   :  { %v897_v3 = vld [vmem:[%s1271_s1 + $0x80] sm:$0xff]   ;;  %767 = vmatpush3.bf16.msra.mxu0 %v896_v2  ;;  %v901_v7 = vld [vmem:[%s1271_s1 + $0x88] sm:$0xff]   ;;  %v905_v11 = vld [vmem:[%s1271_s1 + $0x90] sm:$0xff]  }
   0x5   :  { %831 = vmatpush3.bf16.msra.mxu1 %v897_v3  ;;  %768 = vmatprep.subr.bf16.mxu0 %v898_v4  ;;  %v906_v12 = vld [vmem:[%s1271_s1 + $0x58] sm:$0xff]   ;;  %v910_v16 = vld [vmem:[%s1271_s1 + $0x60] sm:$0xff]   ;;  %v914_v20 = vld [vmem:[%s1271_s1 + $0x68] sm:$0xff]  }
   0x6   :  { %832 = vmatprep.subr.bf16.mxu1 %v899_v5  ;;  %v907_v13 = vld [vmem:[%s1271_s1 + $0xd8] sm:$0xff]   ;;  %v911_v17 = vld [vmem:[%s1271_s1 + $0xe0] sm:$0xff]   ;;  %v915_v21 = vld [vmem:[%s1271_s1 + $0xe8] sm:$0xff]  }
   0x7   :  { %v908_v14 = vld [vmem:[%s1271_s1 + $0x18] sm:$0xff]   ;;  %v912_v18 = vld [vmem:[%s1271_s1 + $0x20] sm:$0xff]   ;;  %v916_v22 = vld [vmem:[%s1271_s1 + $0x28] sm:$0xff]  }
   0x8   :  { %769 = vmatpush3.bf16.msra.mxu0 %v900_v6  ;;  %v909_v15 = vld [vmem:[%s1271_s1 + $0x98] sm:$0xff]   ;;  %v913_v19 = vld [vmem:[%s1271_s1 + $0xa0] sm:$0xff]   ;;  %v917_v23 = vld [vmem:[%s1271_s1 + $0xa8] sm:$0xff]  }
   0x9   :  { %833 = vmatpush3.bf16.msra.mxu1 %v901_v7  ;;  %770 = vmatprep.subr.bf16.mxu0 %v902_v8  ;;  %v918_v24 = vld [vmem:[%s1271_s1 + $0x70] sm:$0xff]   ;;  %v922_v28 = vld [vmem:[%s1271_s1 + $0x78] sm:$0xff]   ;;  %v1189_v2 = vld [vmem:[%s1273_s2] ss:$0 sm:$0xff] }
   0xa   :  { %834 = vmatprep.subr.bf16.mxu1 %v903_v9  ;;  %v919_v25 = vld [vmem:[%s1271_s1 + $0xf0] sm:$0xff]   ;;  %v923_v29 = vld [vmem:[%s1271_s1 + $0xf8] sm:$0xff]  }
   0xb   :  { %v920_v26 = vld [vmem:[%s1271_s1 + $0x30] sm:$0xff]   ;;  %v924_v30 = vld [vmem:[%s1271_s1 + $0x38] sm:$0xff]  }
   0xc   :  { %771 = vmatpush3.bf16.msra.mxu0 %v904_v10  ;;  %v921_v27 = vld [vmem:[%s1271_s1 + $0xb0] sm:$0xff]   ;;  %v925_v31 = vld [vmem:[%s1271_s1 + $0xb8] sm:$0xff]  }
   0xd   :  { %835 = vmatpush3.bf16.msra.mxu1 %v905_v11  ;;  %772 = vmatprep.subr.bf16.mxu0 %v906_v12  ;;  %v926_v32 = vld [vmem:[%s1272_s0] ss:$16 sps:$4 sm:$0xff]   ;;  %v928_v33 = vld [vmem:[%s1272_s0 + $0x4] ss:$16 sps:$4 sm:$0xff]   ;;  %v929_v34 = vld [vmem:[%s1272_s0 + $0x8] ss:$16 sps:$4 sm:$0xff]  }
   0xe   :  { %836 = vmatprep.subr.bf16.mxu1 %v907_v13  ;;  %v931_v35 = vld [vmem:[%s1272_s0 + $0xc] ss:$16 sps:$4 sm:$0xff]   ;;  %502 = vmatprep.mubr.bf16.mxu0 %v928_v33  ;;  %v932_v36 = vld [vmem:[%s1272_s0 + $0x24] ss:$16 sps:$4 sm:$0xff]   ;;  %v936_v38 = vld [vmem:[%s1272_s0 + $0x20] ss:$16 sps:$4 sm:$0xff]  }
   0xf   :  { %599 = vmatprep.mubr.bf16.mxu1 %v931_v35  ;;  %v934_v37 = vld [vmem:[%s1272_s0 + $0x2c] ss:$16 sps:$4 sm:$0xff]   ;;  %v937_v39 = vld [vmem:[%s1272_s0 + $0x28] ss:$16 sps:$4 sm:$0xff]   ;;  %v938_v40 = vld [vmem:[%s1272_s0 + $0x44] ss:$16 sps:$4 sm:$0xff]  }
  0x10   :  { %773 = vmatpush3.bf16.msra.mxu0 %v908_v14  ;;  %v940_v41 = vld [vmem:[%s1272_s0 + $0x4c] ss:$16 sps:$4 sm:$0xff]   ;;  %v942_v42 = vld [vmem:[%s1272_s0 + $0x40] ss:$16 sps:$4 sm:$0xff]   ;;  %v943_v43 = vld [vmem:[%s1272_s0 + $0x48] ss:$16 sps:$4 sm:$0xff]  }
  0x11   :  { %837 = vmatpush3.bf16.msra.mxu1 %v909_v15  ;;  %774 = vmatprep.subr.bf16.mxu0 %v910_v16  ;;  %v944_v44 = vld [vmem:[%s1272_s0 + $0x64] ss:$16 sps:$4 sm:$0xff]   ;;  %v946_v45 = vld [vmem:[%s1272_s0 + $0x6c] ss:$16 sps:$4 sm:$0xff]   ;;  %v948_v46 = vld [vmem:[%s1272_s0 + $0x60] ss:$16 sps:$4 sm:$0xff]  }
  0x12   :  { %838 = vmatprep.subr.bf16.mxu1 %v911_v17  ;;  %v949_v47 = vld [vmem:[%s1272_s0 + $0x68] ss:$16 sps:$4 sm:$0xff]   ;;  %v950_v48 = vld [vmem:[%s1272_s0 + $0x84] ss:$16 sps:$4 sm:$0xff]   ;;  %v952_v49 = vld [vmem:[%s1272_s0 + $0x8c] ss:$16 sps:$4 sm:$0xff]  }
  0x13   :  { %v954_v50 = vld [vmem:[%s1272_s0 + $0x80] ss:$16 sps:$4 sm:$0xff]   ;;  %v955_v51 = vld [vmem:[%s1272_s0 + $0x88] ss:$16 sps:$4 sm:$0xff]   ;;  %v956_v52 = vld [vmem:[%s1272_s0 + $0xa4] ss:$16 sps:$4 sm:$0xff]  }
  0x14   :  { %775 = vmatpush3.bf16.msra.mxu0 %v912_v18  ;;  %v958_v53 = vld [vmem:[%s1272_s0 + $0xac] ss:$16 sps:$4 sm:$0xff]   ;;  %v960_v54 = vld [vmem:[%s1272_s0 + $0xa0] ss:$16 sps:$4 sm:$0xff]   ;;  %v961_v55 = vld [vmem:[%s1272_s0 + $0xa8] ss:$16 sps:$4 sm:$0xff]  }
  0x15   :  { %839 = vmatpush3.bf16.msra.mxu1 %v913_v19  ;;  %776 = vmatprep.subr.bf16.mxu0 %v914_v20  ;;  %v962_v56 = vld [vmem:[%s1272_s0 + $0xc4] ss:$16 sps:$4 sm:$0xff]   ;;  %v964_v57 = vld [vmem:[%s1272_s0 + $0xcc] ss:$16 sps:$4 sm:$0xff]   ;;  %v966_v58 = vld [vmem:[%s1272_s0 + $0xc0] ss:$16 sps:$4 sm:$0xff]  }
  0x16   :  { %840 = vmatprep.subr.bf16.mxu1 %v915_v21  ;;  %v967_v59 = vld [vmem:[%s1272_s0 + $0xc8] ss:$16 sps:$4 sm:$0xff]   ;;  %v968_v60 = vld [vmem:[%s1272_s0 + $0xe4] ss:$16 sps:$4 sm:$0xff]   ;;  %v970_v61 = vld [vmem:[%s1272_s0 + $0xec] ss:$16 sps:$4 sm:$0xff]  }
  0x17   :  { %v972_v62 = vld [vmem:[%s1272_s0 + $0xe0] ss:$16 sps:$4 sm:$0xff]   ;;  %v973_v63 = vld [vmem:[%s1272_s0 + $0xe8] ss:$16 sps:$4 sm:$0xff]  }
  0x18   :  { %777 = vmatpush3.bf16.msra.mxu0 %v916_v22 }
  0x19   :  { %841 = vmatpush3.bf16.msra.mxu1 %v917_v23  ;;  %778 = vmatprep.subr.bf16.mxu0 %v918_v24 }
  0x1a   :  { %842 = vmatprep.subr.bf16.mxu1 %v919_v25 }
  0x1c   :  { %779 = vmatpush3.bf16.msra.mxu0 %v920_v26 }
  0x1d   :  { %843 = vmatpush3.bf16.msra.mxu1 %v921_v27  ;;  %780 = vmatprep.subr.bf16.mxu0 %v922_v28 }
  0x1e   :  { %844 = vmatprep.subr.bf16.mxu1 %v923_v29 }
  0x20   :  { %781 = vmatpush3.bf16.msra.mxu0 %v924_v30 }
  0x21   :  { %845 = vmatpush3.bf16.msra.mxu1 %v925_v31 }
  0x23   :  { %503 = vmatmul.mubr.bf16.vlgmr.msra.gmra.mrb[0].mxu0 %v926_v32 }
  0x24   :  { %600 = vmatmul.mubr.bf16.vlgmr.msra.gmra.mrb[0].mxu1 %v929_v34  ;;  %510 = vmatprep.mubr.bf16.mxu0 %v932_v36 }
  0x25   :  { %607 = vmatprep.mubr.bf16.mxu1 %v934_v37 }
  0x2b   :  { %511 = vmatmul.mubr.bf16.gmra.mrb[4].mxu0 %v936_v38 }
  0x2c   :  { %608 = vmatmul.mubr.bf16.gmra.mrb[4].mxu1 %v937_v39  ;;  %518 = vmatprep.mubr.bf16.mxu0 %v938_v40 }
  0x2d   :  { %615 = vmatprep.mubr.bf16.mxu1 %v940_v41 }
  0x33   :  { %519 = vmatmul.mubr.bf16.gmra.mrb[8].mxu0 %v942_v42 }
  0x34   :  { %616 = vmatmul.mubr.bf16.gmra.mrb[8].mxu1 %v943_v43  ;;  %526 = vmatprep.mubr.bf16.mxu0 %v944_v44 }
  0x35   :  { %623 = vmatprep.mubr.bf16.mxu1 %v946_v45 }
  0x3b   :  { %527 = vmatmul.mubr.bf16.gmra.mrb[12].mxu0 %v948_v46 }
  0x3c   :  { %624 = vmatmul.mubr.bf16.gmra.mrb[12].mxu1 %v949_v47  ;;  %534 = vmatprep.mubr.bf16.mxu0 %v950_v48 }
  0x3d   :  { %631 = vmatprep.mubr.bf16.mxu1 %v952_v49 }
  0x43   :  { %535 = vmatmul.mubr.bf16.gmra.mrb[16].mxu0 %v954_v50 }
  0x44   :  { %632 = vmatmul.mubr.bf16.gmra.mrb[16].mxu1 %v955_v51  ;;  %542 = vmatprep.mubr.bf16.mxu0 %v956_v52 }
  0x45   :  { %639 = vmatprep.mubr.bf16.mxu1 %v958_v53 }
  0x4b   :  { %543 = vmatmul.mubr.bf16.gmra.mrb[20].mxu0 %v960_v54 }
  0x4c   :  { %640 = vmatmul.mubr.bf16.gmra.mrb[20].mxu1 %v961_v55  ;;  %550 = vmatprep.mubr.bf16.mxu0 %v962_v56 }
  0x4d   :  { %647 = vmatprep.mubr.bf16.mxu1 %v964_v57 }
  0x53   :  { %551 = vmatmul.mubr.bf16.gmra.mrb[24].mxu0 %v966_v58 }
  0x54   :  { %648 = vmatmul.mubr.bf16.gmra.mrb[24].mxu1 %v967_v59  ;;  %558 = vmatprep.mubr.bf16.mxu0 %v968_v60 }
  0x55   :  { %655 = vmatprep.mubr.bf16.mxu1 %v970_v61 }
  0x5b   :  { %559 = vmatmul.mubr.bf16.gmra.mrb[28].mxu0 %v972_v62 }
  0x5c   :  { %656 = vmatmul.mubr.bf16.gmra.mrb[28].mxu1 %v973_v63 }
  0xf6   :  { %v782_v0 = vpop.f32.mrb[0].mxu0 }
  0xf7   :  { %v846_v1 = vpop.f32.mrb[0].mxu1  ;;  %v783_v3 = vpop.f32.mrb[1].mxu0 }
  0xf8   :  { %v784_v4 = vadd.f32 %v783_v3, %v782_v0  ;;  %v847_v5 = vpop.f32.mrb[1].mxu1  ;;  %v785_v6 = vpop.f32.mrb[2].mxu0 }
  0xf9   :  { %v848_v7 = vadd.f32 %v847_v5, %v846_v1  ;;  %v849_v8 = vpop.f32.mrb[2].mxu1  ;;  %v786_v9 = vpop.f32.mrb[3].mxu0 }
  0xfa   :  { %v505_v10 = vadd.f32 %v784_v4, %v1189_v2  ;;  %v787_v11 = vadd.f32 %v786_v9, %v785_v6  ;;  %v850_v12 = vpop.f32.mrb[3].mxu1 }
  0xfb   :  { %v851_v13 = vadd.f32 %v850_v12, %v849_v8 }
  0xfc   :  { %v602_v14 = vadd.f32 %v848_v7, %v505_v10  ;;  %v508_v15 = vadd.f32 %v787_v11, %v1189_v2 }
  0xfe   :  { %v664_v16 = vmax.f32 %v602_v14, 0.0  ;;  %v605_v17 = vadd.f32 %v851_v13, %v508_v15  ;;  %v788_v18 = vpop.f32.mrb[4].mxu0 }
  0xff   :  { %v852_v19 = vpop.f32.mrb[4].mxu1  ;;  %v789_v20 = vpop.f32.mrb[5].mxu0 }
 0x100   :  { %681 = vst.msk [vmem:[%s1274_s3] sm:$0xff] %vm680_vm0, %v664_v16  ;;  %v665_v21 = vmax.f32 %v605_v17, 0.0  ;;  %v790_v22 = vadd.f32 %v789_v20, %v788_v18  ;;  %v853_v23 = vpop.f32.mrb[5].mxu1  ;;  %v791_v24 = vpop.f32.mrb[6].mxu0 }
 0x101   :  { %v854_v25 = vadd.f32 %v853_v23, %v852_v19  ;;  %v855_v26 = vpop.f32.mrb[6].mxu1  ;;  %v792_v27 = vpop.f32.mrb[7].mxu0 }
 0x102   :  { %682 = vst.msk [vmem:[%s1274_s3 + $0x8] sm:$0xff] %vm680_vm0, %v665_v21  ;;  %v513_v28 = vadd.f32 %v790_v22, %v1189_v2  ;;  %v793_v29 = vadd.f32 %v792_v27, %v791_v24  ;;  %v856_v30 = vpop.f32.mrb[7].mxu1 }
 0x103   :  { %v857_v31 = vadd.f32 %v856_v30, %v855_v26 }
 0x104   :  { %v610_v32 = vadd.f32 %v854_v25, %v513_v28  ;;  %v516_v33 = vadd.f32 %v793_v29, %v1189_v2 }
 0x106   :  { %v666_v34 = vmax.f32 %v610_v32, 0.0  ;;  %v613_v35 = vadd.f32 %v857_v31, %v516_v33  ;;  %v794_v36 = vpop.f32.mrb[8].mxu0 }
 0x107   :  { %v858_v37 = vpop.f32.mrb[8].mxu1  ;;  %v795_v38 = vpop.f32.mrb[9].mxu0 }
 0x108   :  { %683 = vst.msk [vmem:[%s1274_s3 + $0x10] sm:$0xff] %vm680_vm0, %v666_v34  ;;  %v667_v39 = vmax.f32 %v613_v35, 0.0  ;;  %v796_v40 = vadd.f32 %v795_v38, %v794_v36  ;;  %v859_v41 = vpop.f32.mrb[9].mxu1  ;;  %v797_v42 = vpop.f32.mrb[10].mxu0 }
 0x109   :  { %v860_v43 = vadd.f32 %v859_v41, %v858_v37  ;;  %v861_v44 = vpop.f32.mrb[10].mxu1  ;;  %v798_v45 = vpop.f32.mrb[11].mxu0 }
 0x10a   :  { %684 = vst.msk [vmem:[%s1274_s3 + $0x18] sm:$0xff] %vm680_vm0, %v667_v39  ;;  %v521_v46 = vadd.f32 %v796_v40, %v1189_v2  ;;  %v799_v47 = vadd.f32 %v798_v45, %v797_v42  ;;  %v862_v48 = vpop.f32.mrb[11].mxu1 }
 0x10b   :  { %v863_v49 = vadd.f32 %v862_v48, %v861_v44 }
 0x10c   :  { %v618_v50 = vadd.f32 %v860_v43, %v521_v46  ;;  %v524_v51 = vadd.f32 %v799_v47, %v1189_v2 }
 0x10e   :  { %v668_v52 = vmax.f32 %v618_v50, 0.0  ;;  %v621_v53 = vadd.f32 %v863_v49, %v524_v51  ;;  %v800_v54 = vpop.f32.mrb[12].mxu0 }
 0x10f   :  { %v864_v55 = vpop.f32.mrb[12].mxu1  ;;  %v801_v56 = vpop.f32.mrb[13].mxu0 }
 0x110   :  { %685 = vst.msk [vmem:[%s1274_s3 + $0x20] sm:$0xff] %vm680_vm0, %v668_v52  ;;  %v669_v57 = vmax.f32 %v621_v53, 0.0  ;;  %v802_v58 = vadd.f32 %v801_v56, %v800_v54  ;;  %v865_v59 = vpop.f32.mrb[13].mxu1  ;;  %v803_v60 = vpop.f32.mrb[14].mxu0 }
 0x111   :  { %v866_v61 = vadd.f32 %v865_v59, %v864_v55  ;;  %v867_v62 = vpop.f32.mrb[14].mxu1  ;;  %v804_v63 = vpop.f32.mrb[15].mxu0 }
 0x112   :  { %686 = vst.msk [vmem:[%s1274_s3 + $0x28] sm:$0xff] %vm680_vm0, %v669_v57  ;;  %v529_v0 = vadd.f32 %v802_v58, %v1189_v2  ;;  %v805_v1 = vadd.f32 %v804_v63, %v803_v60  ;;  %v868_v3 = vpop.f32.mrb[15].mxu1 }
 0x113   :  { %v869_v4 = vadd.f32 %v868_v3, %v867_v62 }
 0x114   :  { %v626_v5 = vadd.f32 %v866_v61, %v529_v0  ;;  %v532_v6 = vadd.f32 %v805_v1, %v1189_v2 }
 0x116   :  { %v670_v7 = vmax.f32 %v626_v5, 0.0  ;;  %v629_v8 = vadd.f32 %v869_v4, %v532_v6  ;;  %v806_v9 = vpop.f32.mrb[16].mxu0 }
 0x117   :  { %v870_v10 = vpop.f32.mrb[16].mxu1  ;;  %v807_v11 = vpop.f32.mrb[17].mxu0 }
 0x118   :  { %687 = vst.msk [vmem:[%s1274_s3 + $0x30] sm:$0xff] %vm680_vm0, %v670_v7  ;;  %v671_v12 = vmax.f32 %v629_v8, 0.0  ;;  %v808_v13 = vadd.f32 %v807_v11, %v806_v9  ;;  %v871_v14 = vpop.f32.mrb[17].mxu1  ;;  %v809_v15 = vpop.f32.mrb[18].mxu0 }
 0x119   :  { %v872_v16 = vadd.f32 %v871_v14, %v870_v10  ;;  %v873_v17 = vpop.f32.mrb[18].mxu1  ;;  %v810_v18 = vpop.f32.mrb[19].mxu0 }
 0x11a   :  { %688 = vst.msk [vmem:[%s1274_s3 + $0x38] sm:$0xff] %vm680_vm0, %v671_v12  ;;  %v537_v19 = vadd.f32 %v808_v13, %v1189_v2  ;;  %v811_v20 = vadd.f32 %v810_v18, %v809_v15  ;;  %v874_v21 = vpop.f32.mrb[19].mxu1 }
 0x11b   :  { %v875_v22 = vadd.f32 %v874_v21, %v873_v17 }
 0x11c   :  { %v634_v23 = vadd.f32 %v872_v16, %v537_v19  ;;  %v540_v24 = vadd.f32 %v811_v20, %v1189_v2 }
 0x11e   :  { %v672_v25 = vmax.f32 %v634_v23, 0.0  ;;  %v637_v26 = vadd.f32 %v875_v22, %v540_v24  ;;  %v812_v27 = vpop.f32.mrb[20].mxu0 }
 0x11f   :  { %v876_v28 = vpop.f32.mrb[20].mxu1  ;;  %v813_v29 = vpop.f32.mrb[21].mxu0 }
 0x120   :  { %689 = vst.msk [vmem:[%s1274_s3 + $0x40] sm:$0xff] %vm680_vm0, %v672_v25  ;;  %v673_v30 = vmax.f32 %v637_v26, 0.0  ;;  %v814_v31 = vadd.f32 %v813_v29, %v812_v27  ;;  %v877_v32 = vpop.f32.mrb[21].mxu1  ;;  %v815_v33 = vpop.f32.mrb[22].mxu0 }
 0x121   :  { %v878_v34 = vadd.f32 %v877_v32, %v876_v28  ;;  %v879_v35 = vpop.f32.mrb[22].mxu1  ;;  %v816_v36 = vpop.f32.mrb[23].mxu0 }
 0x122   :  { %690 = vst.msk [vmem:[%s1274_s3 + $0x48] sm:$0xff] %vm680_vm0, %v673_v30  ;;  %v545_v37 = vadd.f32 %v814_v31, %v1189_v2  ;;  %v817_v38 = vadd.f32 %v816_v36, %v815_v33  ;;  %v880_v39 = vpop.f32.mrb[23].mxu1 }
 0x123   :  { %v881_v40 = vadd.f32 %v880_v39, %v879_v35 }
 0x124   :  { %v642_v41 = vadd.f32 %v878_v34, %v545_v37  ;;  %v548_v42 = vadd.f32 %v817_v38, %v1189_v2 }
 0x126   :  { %v674_v43 = vmax.f32 %v642_v41, 0.0  ;;  %v645_v44 = vadd.f32 %v881_v40, %v548_v42  ;;  %v818_v45 = vpop.f32.mrb[24].mxu0 }
 0x127   :  { %v882_v46 = vpop.f32.mrb[24].mxu1  ;;  %v819_v47 = vpop.f32.mrb[25].mxu0 }
 0x128   :  { %691 = vst.msk [vmem:[%s1274_s3 + $0x50] sm:$0xff] %vm680_vm0, %v674_v43  ;;  %v675_v48 = vmax.f32 %v645_v44, 0.0  ;;  %v820_v49 = vadd.f32 %v819_v47, %v818_v45  ;;  %v883_v50 = vpop.f32.mrb[25].mxu1  ;;  %v821_v51 = vpop.f32.mrb[26].mxu0 }
 0x129   :  { %v884_v52 = vadd.f32 %v883_v50, %v882_v46  ;;  %v885_v53 = vpop.f32.mrb[26].mxu1  ;;  %v822_v54 = vpop.f32.mrb[27].mxu0 }
 0x12a   :  { %692 = vst.msk [vmem:[%s1274_s3 + $0x58] sm:$0xff] %vm680_vm0, %v675_v48  ;;  %v553_v55 = vadd.f32 %v820_v49, %v1189_v2  ;;  %v823_v56 = vadd.f32 %v822_v54, %v821_v51  ;;  %v886_v57 = vpop.f32.mrb[27].mxu1 }
 0x12b   :  { %v887_v58 = vadd.f32 %v886_v57, %v885_v53 }
 0x12c   :  { %v650_v59 = vadd.f32 %v884_v52, %v553_v55  ;;  %v556_v60 = vadd.f32 %v823_v56, %v1189_v2 }
 0x12e   :  { %v676_v61 = vmax.f32 %v650_v59, 0.0  ;;  %v653_v62 = vadd.f32 %v887_v58, %v556_v60  ;;  %v824_v63 = vpop.f32.mrb[28].mxu0 }
 0x12f   :  { %v888_v0 = vpop.f32.mrb[28].mxu1  ;;  %v825_v1 = vpop.f32.mrb[29].mxu0 }
 0x130   :  { %693 = vst.msk [vmem:[%s1274_s3 + $0x60] sm:$0xff] %vm680_vm0, %v676_v61  ;;  %v677_v3 = vmax.f32 %v653_v62, 0.0  ;;  %v826_v4 = vadd.f32 %v825_v1, %v824_v63  ;;  %v889_v5 = vpop.f32.mrb[29].mxu1  ;;  %v827_v6 = vpop.f32.mrb[30].mxu0 }
 0x131   :  { %v890_v7 = vadd.f32 %v889_v5, %v888_v0  ;;  %v891_v8 = vpop.f32.mrb[30].mxu1  ;;  %v828_v9 = vpop.f32.mrb[31].mxu0 }
 0x132   :  { %694 = vst.msk [vmem:[%s1274_s3 + $0x68] sm:$0xff] %vm680_vm0, %v677_v3  ;;  %v561_v10 = vadd.f32 %v826_v4, %v1189_v2  ;;  %v829_v11 = vadd.f32 %v828_v9, %v827_v6  ;;  %v892_v12 = vpop.f32.mrb[31].mxu1 }
 0x133   :  { %v893_v13 = vadd.f32 %v892_v12, %v891_v8 }
 0x134   :  { %v658_v14 = vadd.f32 %v890_v7, %v561_v10  ;;  %v564_v15 = vadd.f32 %v829_v11, %v1189_v2 }
 0x136   :  { %v678_v16 = vmax.f32 %v658_v14, 0.0  ;;  %v661_v17 = vadd.f32 %v893_v13, %v564_v15 }
 0x138   :  { %695 = vst.msk [vmem:[%s1274_s3 + $0x70] sm:$0xff] %vm680_vm0, %v678_v16  ;;  %v679_v18 = vmax.f32 %v661_v17, 0.0 }
 0x13a   :  { %696 = vst.msk [vmem:[%s1274_s3 + $0x78] sm:$0xff] %vm680_vm0, %v679_v18 }

// kernel: convvae_forward.9
= control target key start
LH: loop header
LB: loop body
LE: loop exit
PB: predicated region body
PF: predicated region fallthrough
CT: control target
= control target key end

     0   :  { %s1370_s1 = inlined_call_operand.vmem [shape: bf16[1024,128], index: 1, kind: input, shape index: {}]   ;;  %s1371_s0 = inlined_call_operand.vmem [shape: bf16[32,1024], index: 0, kind: input, shape index: {}]   ;;  %s1372_s2 = inlined_call_operand.vmem [shape: f32[1,128], index: 2, kind: input, shape index: {}]   ;;  %s1373_s3 = inlined_call_operand.vmem [shape: f32[32,128], index: 3, kind: output, shape index: {}]  }
   0x1   :  { %v1031_v0 = vld [vmem:[%s1370_s1 + $0x40] sm:$0xff]   ;;  %v1035_v4 = vld [vmem:[%s1370_s1 + $0x48] sm:$0xff]   ;;  %v1039_v8 = vld [vmem:[%s1370_s1 + $0x50] sm:$0xff]  }
   0x2   :  { %v1032_v1 = vld [vmem:[%s1370_s1 + $0xc0] sm:$0xff]   ;;  %919 = vmatprep.subr.bf16.mxu0 %v1031_v0  ;;  %v1036_v5 = vld [vmem:[%s1370_s1 + $0xc8] sm:$0xff]   ;;  %v1040_v9 = vld [vmem:[%s1370_s1 + $0xd0] sm:$0xff]  }
   0x3   :  { %v1033_v2 = vld [vmem:[%s1370_s1] sm:$0xff]   ;;  %947 = vmatprep.subr.bf16.mxu1 %v1032_v1  ;;  %v1037_v6 = vld [vmem:[%s1370_s1 + $0x8] sm:$0xff]   ;;  %v1041_v10 = vld [vmem:[%s1370_s1 + $0x10] sm:$0xff]  }
   0x4   :  { %v1034_v3 = vld [vmem:[%s1370_s1 + $0x80] sm:$0xff]   ;;  %920 = vmatpush3.bf16.msra.mxu0 %v1033_v2  ;;  %v1038_v7 = vld [vmem:[%s1370_s1 + $0x88] sm:$0xff]   ;;  %v1042_v11 = vld [vmem:[%s1370_s1 + $0x90] sm:$0xff]  }
   0x5   :  { %948 = vmatpush3.bf16.msra.mxu1 %v1034_v3  ;;  %921 = vmatprep.subr.bf16.mxu0 %v1035_v4  ;;  %v1043_v12 = vld [vmem:[%s1370_s1 + $0x58] sm:$0xff]   ;;  %v1047_v16 = vld [vmem:[%s1370_s1 + $0x60] sm:$0xff]   ;;  %v1051_v20 = vld [vmem:[%s1370_s1 + $0x68] sm:$0xff]  }
   0x6   :  { %949 = vmatprep.subr.bf16.mxu1 %v1036_v5  ;;  %v1044_v13 = vld [vmem:[%s1370_s1 + $0xd8] sm:$0xff]   ;;  %v1048_v17 = vld [vmem:[%s1370_s1 + $0xe0] sm:$0xff]   ;;  %v1052_v21 = vld [vmem:[%s1370_s1 + $0xe8] sm:$0xff]  }
   0x7   :  { %v1045_v14 = vld [vmem:[%s1370_s1 + $0x18] sm:$0xff]   ;;  %v1049_v18 = vld [vmem:[%s1370_s1 + $0x20] sm:$0xff]   ;;  %v1053_v22 = vld [vmem:[%s1370_s1 + $0x28] sm:$0xff]  }
   0x8   :  { %922 = vmatpush3.bf16.msra.mxu0 %v1037_v6  ;;  %v1046_v15 = vld [vmem:[%s1370_s1 + $0x98] sm:$0xff]   ;;  %v1050_v19 = vld [vmem:[%s1370_s1 + $0xa0] sm:$0xff]   ;;  %v1054_v23 = vld [vmem:[%s1370_s1 + $0xa8] sm:$0xff]  }
   0x9   :  { %950 = vmatpush3.bf16.msra.mxu1 %v1038_v7  ;;  %923 = vmatprep.subr.bf16.mxu0 %v1039_v8  ;;  %v1055_v24 = vld [vmem:[%s1370_s1 + $0x70] sm:$0xff]   ;;  %v1059_v28 = vld [vmem:[%s1370_s1 + $0x78] sm:$0xff]   ;;  %v15_v32 = vld [vmem:[%s1371_s0] sm:$0xff] }
   0xa   :  { %951 = vmatprep.subr.bf16.mxu1 %v1040_v9  ;;  %v1056_v25 = vld [vmem:[%s1370_s1 + $0xf0] sm:$0xff]   ;;  %v1060_v29 = vld [vmem:[%s1370_s1 + $0xf8] sm:$0xff]   ;;  %v19_v33 = vld [vmem:[%s1371_s0 + $0x20] sm:$0xff] }
   0xb   :  { %v1057_v26 = vld [vmem:[%s1370_s1 + $0x30] sm:$0xff]   ;;  %v1061_v30 = vld [vmem:[%s1370_s1 + $0x38] sm:$0xff]   ;;  %v16_v34 = vld [vmem:[%s1371_s0 + $0x8] sm:$0xff]  ;;  %v839_v35 = vcombine.low %v15_v32, %v19_v33  ;;  %v840_v36 = vcombine.high %v15_v32, %v19_v33 }
   0xc   :  { %924 = vmatpush3.bf16.msra.mxu0 %v1041_v10  ;;  %v1058_v27 = vld [vmem:[%s1370_s1 + $0xb0] sm:$0xff]   ;;  %v1062_v31 = vld [vmem:[%s1370_s1 + $0xb8] sm:$0xff]   ;;  %v20_v37 = vld [vmem:[%s1371_s0 + $0x28] sm:$0xff] }
   0xd   :  { %952 = vmatpush3.bf16.msra.mxu1 %v1042_v11  ;;  %925 = vmatprep.subr.bf16.mxu0 %v1043_v12  ;;  %v841_v38 = vcombine.low %v16_v34, %v20_v37  ;;  %v842_v39 = vcombine.high %v16_v34, %v20_v37  ;;  %v1063_v40 = vld [vmem:[%s1370_s1 + $0x140] sm:$0xff]   ;;  %v1067_v44 = vld [vmem:[%s1370_s1 + $0x148] sm:$0xff]   ;;  %v1071_v48 = vld [vmem:[%s1370_s1 + $0x150] sm:$0xff]  }
   0xe   :  { %953 = vmatprep.subr.bf16.mxu1 %v1044_v13  ;;  %662 = vmatprep.mubr.bf16.mxu0 %v840_v36  ;;  %v1064_v41 = vld [vmem:[%s1370_s1 + $0x1c0] sm:$0xff]   ;;  %v1068_v45 = vld [vmem:[%s1370_s1 + $0x1c8] sm:$0xff]   ;;  %v1072_v49 = vld [vmem:[%s1370_s1 + $0x1d0] sm:$0xff]  }
   0xf   :  { %711 = vmatprep.mubr.bf16.mxu1 %v842_v39  ;;  %v1065_v42 = vld [vmem:[%s1370_s1 + $0x100] sm:$0xff]   ;;  %v1069_v46 = vld [vmem:[%s1370_s1 + $0x108] sm:$0xff]   ;;  %v1073_v50 = vld [vmem:[%s1370_s1 + $0x110] sm:$0xff]  }
  0x10   :  { %926 = vmatpush3.bf16.msra.mxu0 %v1045_v14  ;;  %v1066_v43 = vld [vmem:[%s1370_s1 + $0x180] sm:$0xff]   ;;  %v1070_v47 = vld [vmem:[%s1370_s1 + $0x188] sm:$0xff]   ;;  %v1074_v51 = vld [vmem:[%s1370_s1 + $0x190] sm:$0xff]  }
  0x11   :  { %954 = vmatpush3.bf16.msra.mxu1 %v1046_v15  ;;  %927 = vmatprep.subr.bf16.mxu0 %v1047_v16  ;;  %v1075_v52 = vld [vmem:[%s1370_s1 + $0x158] sm:$0xff]   ;;  %v1079_v56 = vld [vmem:[%s1370_s1 + $0x160] sm:$0xff]   ;;  %v1083_v63 = vld [vmem:[%s1370_s1 + $0x168] sm:$0xff]  }
  0x12   :  { %955 = vmatprep.subr.bf16.mxu1 %v1048_v17  ;;  %v1076_v53 = vld [vmem:[%s1370_s1 + $0x1d8] sm:$0xff]   ;;  %v1080_v57 = vld [vmem:[%s1370_s1 + $0x1e0] sm:$0xff]   ;;  %v1084_v1 = vld [vmem:[%s1370_s1 + $0x1e8] sm:$0xff]  }
  0x13   :  { %v1077_v54 = vld [vmem:[%s1370_s1 + $0x118] sm:$0xff]   ;;  %v1081_v58 = vld [vmem:[%s1370_s1 + $0x120] sm:$0xff]   ;;  %v1085_v2 = vld [vmem:[%s1370_s1 + $0x128] sm:$0xff]  }
  0x14   :  { %928 = vmatpush3.bf16.msra.mxu0 %v1049_v18  ;;  %v1078_v55 = vld [vmem:[%s1370_s1 + $0x198] sm:$0xff]   ;;  %v1082_v59 = vld [vmem:[%s1370_s1 + $0x1a0] sm:$0xff]   ;;  %v1086_v3 = vld [vmem:[%s1370_s1 + $0x1a8] sm:$0xff]  }
  0x15   :  { %956 = vmatpush3.bf16.msra.mxu1 %v1050_v19  ;;  %929 = vmatprep.subr.bf16.mxu0 %v1051_v20  ;;  %v23_v60 = vld [vmem:[%s1371_s0 + $0x40] sm:$0xff]  ;;  %v24_v4 = vld [vmem:[%s1371_s0 + $0x48] sm:$0xff]  ;;  %v1087_v8 = vld [vmem:[%s1370_s1 + $0x170] sm:$0xff]  }
  0x16   :  { %957 = vmatprep.subr.bf16.mxu1 %v1052_v21  ;;  %v27_v61 = vld [vmem:[%s1371_s0 + $0x60] sm:$0xff]  ;;  %v28_v5 = vld [vmem:[%s1371_s0 + $0x68] sm:$0xff]  ;;  %v1088_v9 = vld [vmem:[%s1370_s1 + $0x1f0] sm:$0xff]  }
  0x17   :  { %v848_v62 = vcombine.high %v23_v60, %v27_v61  ;;  %v847_v0 = vcombine.low %v23_v60, %v27_v61  ;;  %v850_v6 = vcombine.high %v24_v4, %v28_v5  ;;  %v849_v7 = vcombine.low %v24_v4, %v28_v5  ;;  %v1089_v10 = vld [vmem:[%s1370_s1 + $0x130] sm:$0xff]   ;;  %v1091_v12 = vld [vmem:[%s1370_s1 + $0x178] sm:$0xff]   ;;  %v838_v34 = vld [vmem:[%s1372_s2] ss:$0 sm:$0xff] }
  0x18   :  { %930 = vmatpush3.bf16.msra.mxu0 %v1053_v22  ;;  %v1090_v11 = vld [vmem:[%s1370_s1 + $0x1b0] sm:$0xff]   ;;  %v1092_v13 = vld [vmem:[%s1370_s1 + $0x1f8] sm:$0xff]  }
  0x19   :  { %958 = vmatpush3.bf16.msra.mxu1 %v1054_v23  ;;  %931 = vmatprep.subr.bf16.mxu0 %v1055_v24  ;;  %v1093_v14 = vld [vmem:[%s1370_s1 + $0x138] sm:$0xff]   ;;  %v17_v16 = vld [vmem:[%s1371_s0 + $0x10] sm:$0xff] }
  0x1a   :  { %959 = vmatprep.subr.bf16.mxu1 %v1056_v25  ;;  %v1094_v15 = vld [vmem:[%s1370_s1 + $0x1b8] sm:$0xff]   ;;  %v21_v17 = vld [vmem:[%s1371_s0 + $0x30] sm:$0xff] }
  0x1b   :  { %v18_v18 = vld [vmem:[%s1371_s0 + $0x18] sm:$0xff]  ;;  %v843_v20 = vcombine.low %v17_v16, %v21_v17  ;;  %v844_v21 = vcombine.high %v17_v16, %v21_v17  ;;  %v25_v24 = vld [vmem:[%s1371_s0 + $0x50] sm:$0xff] }
  0x1c   :  { %932 = vmatpush3.bf16.msra.mxu0 %v1057_v26  ;;  %v22_v19 = vld [vmem:[%s1371_s0 + $0x38] sm:$0xff]  ;;  %v29_v25 = vld [vmem:[%s1371_s0 + $0x70] sm:$0xff] }
  0x1d   :  { %960 = vmatpush3.bf16.msra.mxu1 %v1058_v27  ;;  %933 = vmatprep.subr.bf16.mxu0 %v1059_v28  ;;  %v845_v22 = vcombine.low %v18_v18, %v22_v19  ;;  %v846_v23 = vcombine.high %v18_v18, %v22_v19  ;;  %v26_v26 = vld [vmem:[%s1371_s0 + $0x58] sm:$0xff]  ;;  %v852_v27 = vcombine.high %v25_v24, %v29_v25 }
  0x1e   :  { %961 = vmatprep.subr.bf16.mxu1 %v1060_v29  ;;  %v30_v28 = vld [vmem:[%s1371_s0 + $0x78] sm:$0xff] }
  0x1f   :  { %v854_v29 = vcombine.high %v26_v26, %v30_v28 }
  0x20   :  { %934 = vmatpush3.bf16.msra.mxu0 %v1061_v30  ;;  %v851_v30 = vcombine.low %v25_v24, %v29_v25 }
  0x21   :  { %962 = vmatpush3.bf16.msra.mxu1 %v1062_v31  ;;  %975 = vmatprep.subr.bf16.mxu0 %v1063_v40  ;;  %v853_v31 = vcombine.low %v26_v26, %v30_v28 }
  0x22   :  { %1003 = vmatprep.subr.bf16.mxu1 %v1064_v41 }
  0x23   :  { %663 = vmatmul.mubr.bf16.vlgmr.msra.gmra.mrb[0].mxu0 %v839_v35 }
  0x24   :  { %712 = vmatmul.mubr.bf16.vlgmr.msra.gmra.mrb[0].mxu1 %v841_v38  ;;  %976 = vmatpush3.bf16.msra.mxu0 %v1065_v42 }
  0x25   :  { %1004 = vmatpush3.bf16.msra.mxu1 %v1066_v43  ;;  %977 = vmatprep.subr.bf16.mxu0 %v1067_v44 }
  0x26   :  { %1005 = vmatprep.subr.bf16.mxu1 %v1068_v45  ;;  %670 = vmatprep.mubr.bf16.mxu0 %v848_v62 }
  0x27   :  { %719 = vmatprep.mubr.bf16.mxu1 %v850_v6 }
  0x28   :  { %978 = vmatpush3.bf16.msra.mxu0 %v1069_v46 }
  0x29   :  { %1006 = vmatpush3.bf16.msra.mxu1 %v1070_v47  ;;  %979 = vmatprep.subr.bf16.mxu0 %v1071_v48 }
  0x2a   :  { %1007 = vmatprep.subr.bf16.mxu1 %v1072_v49 }
  0x2b   :  { %671 = vmatmul.mubr.bf16.gmra.mrb[4].mxu0 %v847_v0 }
  0x2c   :  { %980 = vmatpush3.bf16.msra.mxu0 %v1073_v50  ;;  %720 = vmatmul.mubr.bf16.gmra.mrb[4].mxu1 %v849_v7 }
  0x2d   :  { %1008 = vmatpush3.bf16.msra.mxu1 %v1074_v51  ;;  %981 = vmatprep.subr.bf16.mxu0 %v1075_v52 }
  0x2e   :  { %1009 = vmatprep.subr.bf16.mxu1 %v1076_v53  ;;  %760 = vmatprep.mubr.bf16.mxu0 %v844_v21 }
  0x2f   :  { %809 = vmatprep.mubr.bf16.mxu1 %v846_v23 }
  0x30   :  { %982 = vmatpush3.bf16.msra.mxu0 %v1077_v54 }
  0x31   :  { %1010 = vmatpush3.bf16.msra.mxu1 %v1078_v55  ;;  %983 = vmatprep.subr.bf16.mxu0 %v1079_v56 }
  0x32   :  { %1011 = vmatprep.subr.bf16.mxu1 %v1080_v57 }
  0x34   :  { %984 = vmatpush3.bf16.msra.mxu0 %v1081_v58 }
  0x35   :  { %1012 = vmatpush3.bf16.msra.mxu1 %v1082_v59  ;;  %985 = vmatprep.subr.bf16.mxu0 %v1083_v63 }
  0x36   :  { %1013 = vmatprep.subr.bf16.mxu1 %v1084_v1 }
  0x38   :  { %986 = vmatpush3.bf16.msra.mxu0 %v1085_v2 }
  0x39   :  { %1014 = vmatpush3.bf16.msra.mxu1 %v1086_v3  ;;  %987 = vmatprep.subr.bf16.mxu0 %v1087_v8 }
  0x3a   :  { %1015 = vmatprep.subr.bf16.mxu1 %v1088_v9 }
  0x3c   :  { %988 = vmatpush3.bf16.msra.mxu0 %v1089_v10 }
  0x3d   :  { %1016 = vmatpush3.bf16.msra.mxu1 %v1090_v11  ;;  %989 = vmatprep.subr.bf16.mxu0 %v1091_v12 }
  0x3e   :  { %1017 = vmatprep.subr.bf16.mxu1 %v1092_v13 }
  0x40   :  { %990 = vmatpush3.bf16.msra.mxu0 %v1093_v14 }
  0x41   :  { %1018 = vmatpush3.bf16.msra.mxu1 %v1094_v15 }
  0x43   :  { %761 = vmatmul.mubr.bf16.vlgmr.msra.gmra.mrb[8].mxu0 %v843_v20 }
  0x44   :  { %810 = vmatmul.mubr.bf16.vlgmr.msra.gmra.mrb[8].mxu1 %v845_v22  ;;  %768 = vmatprep.mubr.bf16.mxu0 %v852_v27 }
  0x45   :  { %817 = vmatprep.mubr.bf16.mxu1 %v854_v29 }
  0x4b   :  { %769 = vmatmul.mubr.bf16.gmra.mrb[12].mxu0 %v851_v30 }
  0x4c   :  { %818 = vmatmul.mubr.bf16.gmra.mrb[12].mxu1 %v853_v31 }
  0xf6   :  { %v935_v32 = vpop.f32.mrb[0].mxu0 }
  0xf7   :  { %v963_v33 = vpop.f32.mrb[0].mxu1  ;;  %v936_v35 = vpop.f32.mrb[1].mxu0 }
  0xf8   :  { %v937_v36 = vadd.f32 %v936_v35, %v935_v32  ;;  %v964_v37 = vpop.f32.mrb[1].mxu1  ;;  %v938_v38 = vpop.f32.mrb[2].mxu0 }
  0xf9   :  { %v965_v39 = vadd.f32 %v964_v37, %v963_v33  ;;  %v966_v40 = vpop.f32.mrb[2].mxu1  ;;  %v939_v41 = vpop.f32.mrb[3].mxu0 }
  0xfa   :  { %v665_v42 = vadd.f32 %v937_v36, %v838_v34  ;;  %v940_v43 = vadd.f32 %v939_v41, %v938_v38  ;;  %v967_v44 = vpop.f32.mrb[3].mxu1 }
  0xfb   :  { %v968_v45 = vadd.f32 %v967_v44, %v966_v40 }
  0xfc   :  { %v714_v46 = vadd.f32 %v965_v39, %v665_v42  ;;  %v668_v47 = vadd.f32 %v940_v43, %v838_v34 }
  0xfe   :  { %v717_v48 = vadd.f32 %v968_v45, %v668_v47  ;;  %v941_v49 = vpop.f32.mrb[4].mxu0 }
  0xff   :  { %v942_v50 = vpop.f32.mrb[5].mxu0  ;;  %v969_v56 = vpop.f32.mrb[4].mxu1 }
 0x100   :  { %v943_v51 = vadd.f32 %v942_v50, %v941_v49  ;;  %v944_v52 = vpop.f32.mrb[6].mxu0  ;;  %v970_v57 = vpop.f32.mrb[5].mxu1 }
 0x101   :  { %v945_v53 = vpop.f32.mrb[7].mxu0  ;;  %v971_v59 = vadd.f32 %v970_v57, %v969_v56  ;;  %v972_v60 = vpop.f32.mrb[6].mxu1 }
 0x102   :  { %v946_v54 = vadd.f32 %v945_v53, %v944_v52  ;;  %v673_v55 = vadd.f32 %v943_v51, %v838_v34  ;;  %v973_v61 = vpop.f32.mrb[7].mxu1 }
 0x103   :  { %v974_v63 = vadd.f32 %v973_v61, %v972_v60 }
 0x104   :  { %v676_v58 = vadd.f32 %v946_v54, %v838_v34  ;;  %v722_v62 = vadd.f32 %v971_v59, %v673_v55 }
 0x106   :  { %v725_v0 = vadd.f32 %v974_v63, %v676_v58 }
 0x116   :  { %v991_v1 = vpop.f32.mrb[8].mxu0 }
 0x117   :  { %v1019_v2 = vpop.f32.mrb[8].mxu1  ;;  %v992_v3 = vpop.f32.mrb[9].mxu0 }
 0x118   :  { %v1020_v4 = vpop.f32.mrb[9].mxu1  ;;  %v993_v5 = vadd.f32 %v992_v3, %v991_v1  ;;  %v994_v7 = vpop.f32.mrb[10].mxu0 }
 0x119   :  { %v1021_v6 = vadd.f32 %v1020_v4, %v1019_v2  ;;  %v1022_v8 = vpop.f32.mrb[10].mxu1  ;;  %v995_v9 = vpop.f32.mrb[11].mxu0 }
 0x11a   :  { %v1023_v10 = vpop.f32.mrb[11].mxu1  ;;  %v763_v11 = vadd.f32 %v993_v5, %v714_v46  ;;  %v996_v12 = vadd.f32 %v995_v9, %v994_v7 }
 0x11b   :  { %v1024_v13 = vadd.f32 %v1023_v10, %v1022_v8 }
 0x11c   :  { %v812_v14 = vadd.f32 %v1021_v6, %v763_v11  ;;  %v766_v15 = vadd.f32 %v996_v12, %v717_v48 }
 0x11e   :  { %v826_v16 = vmax.f32 %v812_v14, 0.0  ;;  %v815_v17 = vadd.f32 %v1024_v13, %v766_v15  ;;  %v997_v18 = vpop.f32.mrb[12].mxu0 }
 0x11f   :  { %v1025_v19 = vpop.f32.mrb[12].mxu1  ;;  %v998_v20 = vpop.f32.mrb[13].mxu0 }
 0x120   :  { %v1026_v21 = vpop.f32.mrb[13].mxu1  ;;  %830 = vst [vmem:[%s1373_s3] sm:$0xff] %v826_v16  ;;  %v827_v22 = vmax.f32 %v815_v17, 0.0  ;;  %v999_v23 = vadd.f32 %v998_v20, %v997_v18  ;;  %v1000_v25 = vpop.f32.mrb[14].mxu0 }
 0x121   :  { %v1027_v24 = vadd.f32 %v1026_v21, %v1025_v19  ;;  %v1028_v26 = vpop.f32.mrb[14].mxu1  ;;  %v1001_v27 = vpop.f32.mrb[15].mxu0 }
 0x122   :  { %v1029_v28 = vpop.f32.mrb[15].mxu1  ;;  %831 = vst [vmem:[%s1373_s3 + $0x8] sm:$0xff] %v827_v22  ;;  %v771_v29 = vadd.f32 %v999_v23, %v722_v62  ;;  %v1002_v30 = vadd.f32 %v1001_v27, %v1000_v25 }
 0x123   :  { %v1030_v31 = vadd.f32 %v1029_v28, %v1028_v26 }
 0x124   :  { %v820_v32 = vadd.f32 %v1027_v24, %v771_v29  ;;  %v774_v33 = vadd.f32 %v1002_v30, %v725_v0 }
 0x126   :  { %v828_v34 = vmax.f32 %v820_v32, 0.0  ;;  %v823_v35 = vadd.f32 %v1030_v31, %v774_v33 }
 0x128   :  { %832 = vst [vmem:[%s1373_s3 + $0x10] sm:$0xff] %v828_v34  ;;  %v829_v36 = vmax.f32 %v823_v35, 0.0 }
 0x12a   :  { %833 = vst [vmem:[%s1373_s3 + $0x18] sm:$0xff] %v829_v36 }

// kernel: convvae_forward.11
= control target key start
LH: loop header
LB: loop body
LE: loop exit
PB: predicated region body
PF: predicated region fallthrough
CT: control target
= control target key end

     0   :  { %s2283_s1 = inlined_call_operand.vmem [shape: bf16[1152,256], index: 1, kind: input, shape index: {}]   ;;  %s2284_s0 = inlined_call_operand.vmem [shape: bf16[32,1152], index: 0, kind: input, shape index: {}]   ;;  %s2285_s2 = inlined_call_operand.vmem [shape: f32[1,256], index: 2, kind: input, shape index: {}]   ;;  %s2286_s3 = inlined_call_operand.vmem [shape: f32[32,256], index: 3, kind: output, shape index: {}]  }
   0x1   :  { %v1507_v0 = vld [vmem:[%s2283_s1 + $0x4] ss:$8 sps:$4 sm:$0xff]   ;;  %v1511_v2 = vld [vmem:[%s2283_s1] ss:$8 sps:$4 sm:$0xff]   ;;  %v1513_v4 = vld [vmem:[%s2283_s1 + $0x14] ss:$8 sps:$4 sm:$0xff]  }
   0x2   :  { %v1509_v1 = vld [vmem:[%s2283_s1 + $0x204] ss:$8 sps:$4 sm:$0xff]   ;;  %1003 = vmatprep.subr.bf16.mxu1 %v1507_v0  ;;  %v1512_v3 = vld [vmem:[%s2283_s1 + $0x200] ss:$8 sps:$4 sm:$0xff]   ;;  %v1515_v5 = vld [vmem:[%s2283_s1 + $0x214] ss:$8 sps:$4 sm:$0xff]  }
   0x3   :  { %1109 = vmatprep.subr.bf16.mxu0 %v1509_v1  ;;  %1004 = vmatpush1.bf16.msra.mxu1 %v1511_v2  ;;  %v1517_v6 = vld [vmem:[%s2283_s1 + $0x10] ss:$8 sps:$4 sm:$0xff]   ;;  %v1519_v8 = vld [vmem:[%s2283_s1 + $0x24] ss:$8 sps:$4 sm:$0xff]   ;;  %v1523_v10 = vld [vmem:[%s2283_s1 + $0x20] ss:$8 sps:$4 sm:$0xff]  }
   0x4   :  { %1110 = vmatpush1.bf16.msra.mxu0 %v1512_v3  ;;  %1005 = vmatprep.subr.bf16.mxu1 %v1513_v4  ;;  %v1518_v7 = vld [vmem:[%s2283_s1 + $0x210] ss:$8 sps:$4 sm:$0xff]   ;;  %v1521_v9 = vld [vmem:[%s2283_s1 + $0x224] ss:$8 sps:$4 sm:$0xff]   ;;  %v1524_v11 = vld [vmem:[%s2283_s1 + $0x220] ss:$8 sps:$4 sm:$0xff]  }
   0x5   :  { %1111 = vmatprep.subr.bf16.mxu0 %v1515_v5  ;;  %v1525_v12 = vld [vmem:[%s2283_s1 + $0x34] ss:$8 sps:$4 sm:$0xff]   ;;  %v1529_v14 = vld [vmem:[%s2283_s1 + $0x30] ss:$8 sps:$4 sm:$0xff]   ;;  %v1531_v16 = vld [vmem:[%s2283_s1 + $0x44] ss:$8 sps:$4 sm:$0xff]  }
   0x6   :  { %v1527_v13 = vld [vmem:[%s2283_s1 + $0x234] ss:$8 sps:$4 sm:$0xff]   ;;  %v1530_v15 = vld [vmem:[%s2283_s1 + $0x230] ss:$8 sps:$4 sm:$0xff]   ;;  %v1533_v17 = vld [vmem:[%s2283_s1 + $0x244] ss:$8 sps:$4 sm:$0xff]  }
   0x7   :  { %1006 = vmatpush1.bf16.msra.mxu1 %v1517_v6  ;;  %v1535_v18 = vld [vmem:[%s2283_s1 + $0x40] ss:$8 sps:$4 sm:$0xff]   ;;  %v1537_v20 = vld [vmem:[%s2283_s1 + $0x54] ss:$8 sps:$4 sm:$0xff]   ;;  %v1541_v22 = vld [vmem:[%s2283_s1 + $0x50] ss:$8 sps:$4 sm:$0xff]  }
   0x8   :  { %1112 = vmatpush1.bf16.msra.mxu0 %v1518_v7  ;;  %1007 = vmatprep.subr.bf16.mxu1 %v1519_v8  ;;  %v1536_v19 = vld [vmem:[%s2283_s1 + $0x240] ss:$8 sps:$4 sm:$0xff]   ;;  %v1539_v21 = vld [vmem:[%s2283_s1 + $0x254] ss:$8 sps:$4 sm:$0xff]   ;;  %v1542_v23 = vld [vmem:[%s2283_s1 + $0x250] ss:$8 sps:$4 sm:$0xff]  }
   0x9   :  { %1113 = vmatprep.subr.bf16.mxu0 %v1521_v9  ;;  %v1543_v24 = vld [vmem:[%s2283_s1 + $0x64] ss:$8 sps:$4 sm:$0xff]   ;;  %v1547_v26 = vld [vmem:[%s2283_s1 + $0x60] ss:$8 sps:$4 sm:$0xff]   ;;  %v1549_v28 = vld [vmem:[%s2283_s1 + $0x74] ss:$8 sps:$4 sm:$0xff]  }
   0xa   :  { %v1545_v25 = vld [vmem:[%s2283_s1 + $0x264] ss:$8 sps:$4 sm:$0xff]   ;;  %v1548_v27 = vld [vmem:[%s2283_s1 + $0x260] ss:$8 sps:$4 sm:$0xff]   ;;  %v1551_v29 = vld [vmem:[%s2283_s1 + $0x274] ss:$8 sps:$4 sm:$0xff]  }
   0xb   :  { %1008 = vmatpush1.bf16.msra.mxu1 %v1523_v10  ;;  %v1553_v30 = vld [vmem:[%s2283_s1 + $0x70] ss:$8 sps:$4 sm:$0xff]   ;;  %v1555_v32 = vld [vmem:[%s2283_s1 + $0x84] ss:$8 sps:$4 sm:$0xff]   ;;  %v1559_v34 = vld [vmem:[%s2283_s1 + $0x80] ss:$8 sps:$4 sm:$0xff]  }
   0xc   :  { %1114 = vmatpush1.bf16.msra.mxu0 %v1524_v11  ;;  %1009 = vmatprep.subr.bf16.mxu1 %v1525_v12  ;;  %v1554_v31 = vld [vmem:[%s2283_s1 + $0x270] ss:$8 sps:$4 sm:$0xff]   ;;  %v1557_v33 = vld [vmem:[%s2283_s1 + $0x284] ss:$8 sps:$4 sm:$0xff]   ;;  %v1560_v35 = vld [vmem:[%s2283_s1 + $0x280] ss:$8 sps:$4 sm:$0xff]  }
   0xd   :  { %1115 = vmatprep.subr.bf16.mxu0 %v1527_v13  ;;  %v1561_v36 = vld [vmem:[%s2283_s1 + $0x94] ss:$8 sps:$4 sm:$0xff]   ;;  %v1565_v38 = vld [vmem:[%s2283_s1 + $0x90] ss:$8 sps:$4 sm:$0xff]   ;;  %v1567_v40 = vld [vmem:[%s2283_s1 + $0xa4] ss:$8 sps:$4 sm:$0xff]  }
   0xe   :  { %v1563_v37 = vld [vmem:[%s2283_s1 + $0x294] ss:$8 sps:$4 sm:$0xff]   ;;  %v1566_v39 = vld [vmem:[%s2283_s1 + $0x290] ss:$8 sps:$4 sm:$0xff]   ;;  %v1569_v41 = vld [vmem:[%s2283_s1 + $0x2a4] ss:$8 sps:$4 sm:$0xff]  }
   0xf   :  { %1010 = vmatpush1.bf16.msra.mxu1 %v1529_v14  ;;  %v1571_v42 = vld [vmem:[%s2283_s1 + $0xa0] ss:$8 sps:$4 sm:$0xff]   ;;  %v1573_v44 = vld [vmem:[%s2283_s1 + $0xb4] ss:$8 sps:$4 sm:$0xff]   ;;  %v1577_v46 = vld [vmem:[%s2283_s1 + $0xb0] ss:$8 sps:$4 sm:$0xff]  }
  0x10   :  { %1116 = vmatpush1.bf16.msra.mxu0 %v1530_v15  ;;  %1011 = vmatprep.subr.bf16.mxu1 %v1531_v16  ;;  %v1572_v43 = vld [vmem:[%s2283_s1 + $0x2a0] ss:$8 sps:$4 sm:$0xff]   ;;  %v1575_v45 = vld [vmem:[%s2283_s1 + $0x2b4] ss:$8 sps:$4 sm:$0xff]   ;;  %v1578_v47 = vld [vmem:[%s2283_s1 + $0x2b0] ss:$8 sps:$4 sm:$0xff]  }
  0x11   :  { %1117 = vmatprep.subr.bf16.mxu0 %v1533_v17  ;;  %v1605_v48 = vld [vmem:[%s2284_s0 + $0x4] ss:$36 sps:$4 sm:$0xff]   ;;  %v1611_v51 = vld [vmem:[%s2284_s0 + $0x14] ss:$36 sps:$4 sm:$0xff]  }
  0x12   :  { %v1579_v49 = vld [vmem:[%s2283_s1 + $0xc4] ss:$8 sps:$4 sm:$0xff]   ;;  %1035 = vmatprep.mubr.bf16.mxu1 %v1605_v48  ;;  %v1583_v52 = vld [vmem:[%s2283_s1 + $0xc0] ss:$8 sps:$4 sm:$0xff]   ;;  %v1585_v54 = vld [vmem:[%s2283_s1 + $0xd4] ss:$8 sps:$4 sm:$0xff]   ;;  %1141 = vmatprep.mubr.bf16.mxu0 %v1611_v51 }
  0x13   :  { %1012 = vmatpush1.bf16.msra.mxu1 %v1535_v18  ;;  %v1581_v50 = vld [vmem:[%s2283_s1 + $0x2c4] ss:$8 sps:$4 sm:$0xff]   ;;  %v1584_v53 = vld [vmem:[%s2283_s1 + $0x2c0] ss:$8 sps:$4 sm:$0xff]   ;;  %v1587_v55 = vld [vmem:[%s2283_s1 + $0x2d4] ss:$8 sps:$4 sm:$0xff]  }
  0x14   :  { %1118 = vmatpush1.bf16.msra.mxu0 %v1536_v19  ;;  %1013 = vmatprep.subr.bf16.mxu1 %v1537_v20  ;;  %v1589_v56 = vld [vmem:[%s2283_s1 + $0xd0] ss:$8 sps:$4 sm:$0xff]   ;;  %v1591_v58 = vld [vmem:[%s2283_s1 + $0xe4] ss:$8 sps:$4 sm:$0xff]   ;;  %v1595_v60 = vld [vmem:[%s2283_s1 + $0xe0] ss:$8 sps:$4 sm:$0xff]  }
  0x15   :  { %1119 = vmatprep.subr.bf16.mxu0 %v1539_v21  ;;  %v1590_v57 = vld [vmem:[%s2283_s1 + $0x2d0] ss:$8 sps:$4 sm:$0xff]   ;;  %v1593_v59 = vld [vmem:[%s2283_s1 + $0x2e4] ss:$8 sps:$4 sm:$0xff]   ;;  %v1596_v61 = vld [vmem:[%s2283_s1 + $0x2e0] ss:$8 sps:$4 sm:$0xff]  }
  0x16   :  { %v1597_v62 = vld [vmem:[%s2283_s1 + $0xf4] ss:$8 sps:$4 sm:$0xff]   ;;  %v1601_v0 = vld [vmem:[%s2283_s1 + $0xf0] ss:$8 sps:$4 sm:$0xff]   ;;  %v1608_v2 = vld [vmem:[%s2283_s1 + $0x104] ss:$8 sps:$4 sm:$0xff]  }
  0x17   :  { %1014 = vmatpush1.bf16.msra.mxu1 %v1541_v22  ;;  %v1599_v63 = vld [vmem:[%s2283_s1 + $0x2f4] ss:$8 sps:$4 sm:$0xff]   ;;  %v1602_v1 = vld [vmem:[%s2283_s1 + $0x2f0] ss:$8 sps:$4 sm:$0xff]   ;;  %v1614_v3 = vld [vmem:[%s2283_s1 + $0x304] ss:$8 sps:$4 sm:$0xff]  }
  0x18   :  { %1120 = vmatpush1.bf16.msra.mxu0 %v1542_v23  ;;  %1015 = vmatprep.subr.bf16.mxu1 %v1543_v24  ;;  %v1603_v4 = vld [vmem:[%s2284_s0] ss:$36 sps:$4 sm:$0xff]   ;;  %v1609_v6 = vld [vmem:[%s2284_s0 + $0x10] ss:$36 sps:$4 sm:$0xff]  }
  0x19   :  { %1121 = vmatprep.subr.bf16.mxu0 %v1545_v25  ;;  %v1606_v5 = vld [vmem:[%s2283_s1 + $0x100] ss:$8 sps:$4 sm:$0xff]   ;;  %v1617_v8 = vld [vmem:[%s2283_s1 + $0x114] ss:$8 sps:$4 sm:$0xff]   ;;  %v1615_v10 = vld [vmem:[%s2283_s1 + $0x110] ss:$8 sps:$4 sm:$0xff]  }
  0x1a   :  { %v1612_v7 = vld [vmem:[%s2283_s1 + $0x300] ss:$8 sps:$4 sm:$0xff]   ;;  %v1620_v9 = vld [vmem:[%s2283_s1 + $0x314] ss:$8 sps:$4 sm:$0xff]   ;;  %v1618_v11 = vld [vmem:[%s2283_s1 + $0x310] ss:$8 sps:$4 sm:$0xff]  }
  0x1b   :  { %1016 = vmatpush1.bf16.msra.mxu1 %v1547_v26  ;;  %v1623_v12 = vld [vmem:[%s2283_s1 + $0x124] ss:$8 sps:$4 sm:$0xff]   ;;  %v1621_v14 = vld [vmem:[%s2283_s1 + $0x120] ss:$8 sps:$4 sm:$0xff]   ;;  %v1629_v16 = vld [vmem:[%s2283_s1 + $0x134] ss:$8 sps:$4 sm:$0xff]  }
  0x1c   :  { %1122 = vmatpush1.bf16.msra.mxu0 %v1548_v27  ;;  %1017 = vmatprep.subr.bf16.mxu1 %v1549_v28  ;;  %v1626_v13 = vld [vmem:[%s2283_s1 + $0x324] ss:$8 sps:$4 sm:$0xff]   ;;  %v1624_v15 = vld [vmem:[%s2283_s1 + $0x320] ss:$8 sps:$4 sm:$0xff]   ;;  %v1632_v17 = vld [vmem:[%s2283_s1 + $0x334] ss:$8 sps:$4 sm:$0xff]  }
  0x1d   :  { %1123 = vmatprep.subr.bf16.mxu0 %v1551_v29  ;;  %v1627_v18 = vld [vmem:[%s2283_s1 + $0x130] ss:$8 sps:$4 sm:$0xff]   ;;  %v1635_v20 = vld [vmem:[%s2283_s1 + $0x144] ss:$8 sps:$4 sm:$0xff]   ;;  %v1633_v22 = vld [vmem:[%s2283_s1 + $0x140] ss:$8 sps:$4 sm:$0xff]  }
  0x1e   :  { %v1630_v19 = vld [vmem:[%s2283_s1 + $0x330] ss:$8 sps:$4 sm:$0xff]   ;;  %v1638_v21 = vld [vmem:[%s2283_s1 + $0x344] ss:$8 sps:$4 sm:$0xff]   ;;  %v1636_v23 = vld [vmem:[%s2283_s1 + $0x340] ss:$8 sps:$4 sm:$0xff]  }
  0x1f   :  { %1018 = vmatpush1.bf16.msra.mxu1 %v1553_v30  ;;  %v1641_v24 = vld [vmem:[%s2283_s1 + $0x154] ss:$8 sps:$4 sm:$0xff]   ;;  %v1639_v26 = vld [vmem:[%s2283_s1 + $0x150] ss:$8 sps:$4 sm:$0xff]   ;;  %v1647_v28 = vld [vmem:[%s2283_s1 + $0x164] ss:$8 sps:$4 sm:$0xff]  }
  0x20   :  { %1124 = vmatpush1.bf16.msra.mxu0 %v1554_v31  ;;  %1019 = vmatprep.subr.bf16.mxu1 %v1555_v32  ;;  %v1644_v25 = vld [vmem:[%s2283_s1 + $0x354] ss:$8 sps:$4 sm:$0xff]   ;;  %v1642_v27 = vld [vmem:[%s2283_s1 + $0x350] ss:$8 sps:$4 sm:$0xff]   ;;  %v1697_v31 = vld [vmem:[%s2284_s0 + $0x48] ss:$36 sps:$4 sm:$0xff]  }
  0x21   :  { %1125 = vmatprep.subr.bf16.mxu0 %v1557_v33  ;;  %v1693_v29 = vld [vmem:[%s2284_s0 + $0x4c] ss:$36 sps:$4 sm:$0xff]   ;;  %v1695_v30 = vld [vmem:[%s2284_s0 + $0x5c] ss:$36 sps:$4 sm:$0xff]  }
  0x22   :  { %v1650_v32 = vld [vmem:[%s2283_s1 + $0x364] ss:$8 sps:$4 sm:$0xff]   ;;  %v1701_v33 = vld [vmem:[%s2284_s0 + $0x58] ss:$36 sps:$4 sm:$0xff]  }
  0x23   :  { %1020 = vmatpush1.bf16.msra.mxu1 %v1559_v34  ;;  %v1645_v34 = vld [vmem:[%s2283_s1 + $0x160] ss:$8 sps:$4 sm:$0xff]   ;;  %v1663_v48 = vld [vmem:[%s2283_s1 + $0x190] ss:$8 sps:$4 sm:$0xff]   ;;  %v1674_v51 = vld [vmem:[%s2283_s1 + $0x3a4] ss:$8 sps:$4 sm:$0xff]  }
  0x24   :  { %1126 = vmatpush1.bf16.msra.mxu0 %v1560_v35  ;;  %1021 = vmatprep.subr.bf16.mxu1 %v1561_v36  ;;  %v1648_v35 = vld [vmem:[%s2283_s1 + $0x360] ss:$8 sps:$4 sm:$0xff]   ;;  %v1653_v36 = vld [vmem:[%s2283_s1 + $0x174] ss:$8 sps:$4 sm:$0xff]  }
  0x25   :  { %1127 = vmatprep.subr.bf16.mxu0 %v1563_v37  ;;  %v1656_v37 = vld [vmem:[%s2283_s1 + $0x374] ss:$8 sps:$4 sm:$0xff]  }
  0x27   :  { %1022 = vmatpush1.bf16.msra.mxu1 %v1565_v38  ;;  %v1651_v38 = vld [vmem:[%s2283_s1 + $0x170] ss:$8 sps:$4 sm:$0xff]  }
  0x28   :  { %1128 = vmatpush1.bf16.msra.mxu0 %v1566_v39  ;;  %1023 = vmatprep.subr.bf16.mxu1 %v1567_v40  ;;  %v1654_v39 = vld [vmem:[%s2283_s1 + $0x370] ss:$8 sps:$4 sm:$0xff]   ;;  %v1659_v40 = vld [vmem:[%s2283_s1 + $0x184] ss:$8 sps:$4 sm:$0xff]  }
  0x29   :  { %1129 = vmatprep.subr.bf16.mxu0 %v1569_v41  ;;  %v1713_v41 = vld [vmem:[%s2284_s0 + $0xc] ss:$36 sps:$4 sm:$0xff]  }
  0x2b   :  { %1024 = vmatpush1.bf16.msra.mxu1 %v1571_v42  ;;  %v1662_v42 = vld [vmem:[%s2283_s1 + $0x384] ss:$8 sps:$4 sm:$0xff]  }
  0x2c   :  { %1130 = vmatpush1.bf16.msra.mxu0 %v1572_v43  ;;  %1025 = vmatprep.subr.bf16.mxu1 %v1573_v44  ;;  %v1716_v43 = vld [vmem:[%s2284_s0 + $0x1c] ss:$36 sps:$4 sm:$0xff]  }
  0x2d   :  { %1131 = vmatprep.subr.bf16.mxu0 %v1575_v45  ;;  %v1657_v44 = vld [vmem:[%s2283_s1 + $0x180] ss:$8 sps:$4 sm:$0xff]  }
  0x2e   :  { %v1660_v45 = vld [vmem:[%s2283_s1 + $0x380] ss:$8 sps:$4 sm:$0xff]  }
  0x2f   :  { %1026 = vmatpush1.bf16.msra.mxu1 %v1577_v46  ;;  %v1665_v46 = vld [vmem:[%s2283_s1 + $0x194] ss:$8 sps:$4 sm:$0xff]  }
  0x30   :  { %1132 = vmatpush1.bf16.msra.mxu0 %v1578_v47  ;;  %1027 = vmatprep.subr.bf16.mxu1 %v1579_v49  ;;  %v1668_v47 = vld [vmem:[%s2283_s1 + $0x394] ss:$8 sps:$4 sm:$0xff]   ;;  %v1666_v49 = vld [vmem:[%s2283_s1 + $0x390] ss:$8 sps:$4 sm:$0xff]  }
  0x31   :  { %1133 = vmatprep.subr.bf16.mxu0 %v1581_v50  ;;  %v1671_v50 = vld [vmem:[%s2283_s1 + $0x1a4] ss:$8 sps:$4 sm:$0xff]  }
  0x33   :  { %1028 = vmatpush1.bf16.msra.mxu1 %v1583_v52  ;;  %v1669_v52 = vld [vmem:[%s2283_s1 + $0x1a0] ss:$8 sps:$4 sm:$0xff]  }
  0x34   :  { %1134 = vmatpush1.bf16.msra.mxu0 %v1584_v53  ;;  %1029 = vmatprep.subr.bf16.mxu1 %v1585_v54  ;;  %v1672_v53 = vld [vmem:[%s2283_s1 + $0x3a0] ss:$8 sps:$4 sm:$0xff]   ;;  %v1677_v54 = vld [vmem:[%s2283_s1 + $0x1b4] ss:$8 sps:$4 sm:$0xff]  }
  0x35   :  { %1135 = vmatprep.subr.bf16.mxu0 %v1587_v55  ;;  %v1680_v55 = vld [vmem:[%s2283_s1 + $0x3b4] ss:$8 sps:$4 sm:$0xff]  }
  0x37   :  { %1030 = vmatpush1.bf16.msra.mxu1 %v1589_v56  ;;  %v1675_v56 = vld [vmem:[%s2283_s1 + $0x1b0] ss:$8 sps:$4 sm:$0xff]  }
  0x38   :  { %1136 = vmatpush1.bf16.msra.mxu0 %v1590_v57  ;;  %1031 = vmatprep.subr.bf16.mxu1 %v1591_v58  ;;  %v1678_v57 = vld [vmem:[%s2283_s1 + $0x3b0] ss:$8 sps:$4 sm:$0xff]   ;;  %v1683_v58 = vld [vmem:[%s2283_s1 + $0x1c4] ss:$8 sps:$4 sm:$0xff]  }
  0x39   :  { %1137 = vmatprep.subr.bf16.mxu0 %v1593_v59  ;;  %v1686_v59 = vld [vmem:[%s2283_s1 + $0x3c4] ss:$8 sps:$4 sm:$0xff]  }
  0x3b   :  { %1032 = vmatpush1.bf16.msra.mxu1 %v1595_v60  ;;  %v1681_v60 = vld [vmem:[%s2283_s1 + $0x1c0] ss:$8 sps:$4 sm:$0xff]  }
  0x3c   :  { %1138 = vmatpush1.bf16.msra.mxu0 %v1596_v61  ;;  %1033 = vmatprep.subr.bf16.mxu1 %v1597_v62  ;;  %v1684_v61 = vld [vmem:[%s2283_s1 + $0x3c0] ss:$8 sps:$4 sm:$0xff]   ;;  %v1689_v62 = vld [vmem:[%s2283_s1 + $0x1d4] ss:$8 sps:$4 sm:$0xff]  }
  0x3d   :  { %1139 = vmatprep.subr.bf16.mxu0 %v1599_v63  ;;  %v1692_v63 = vld [vmem:[%s2283_s1 + $0x3d4] ss:$8 sps:$4 sm:$0xff]  }
  0x3f   :  { %1034 = vmatpush1.bf16.msra.mxu1 %v1601_v0  ;;  %v1687_v0 = vld [vmem:[%s2283_s1 + $0x1d0] ss:$8 sps:$4 sm:$0xff]  }
  0x40   :  { %1140 = vmatpush1.bf16.msra.mxu0 %v1602_v1  ;;  %1056 = vmatprep.subr.bf16.mxu1 %v1608_v2  ;;  %v1690_v1 = vld [vmem:[%s2283_s1 + $0x3d0] ss:$8 sps:$4 sm:$0xff]   ;;  %v1700_v2 = vld [vmem:[%s2283_s1 + $0x1e4] ss:$8 sps:$4 sm:$0xff]  }
  0x41   :  { %1162 = vmatprep.subr.bf16.mxu0 %v1614_v3  ;;  %v1704_v3 = vld [vmem:[%s2283_s1 + $0x3e4] ss:$8 sps:$4 sm:$0xff]  }
  0x42   :  { %1036 = vmatmul.mubr.bf16.vlgmr.msra.gmra.mrb[0].mxu1 %v1603_v4  ;;  %v1698_v4 = vld [vmem:[%s2283_s1 + $0x1e0] ss:$8 sps:$4 sm:$0xff]  }
  0x43   :  { %1142 = vmatmul.mubr.bf16.vlgmr.msra.gmra.mrb[0].mxu0 %v1609_v6  ;;  %1057 = vmatpush1.bf16.msra.mxu1 %v1606_v5  ;;  %v1702_v5 = vld [vmem:[%s2283_s1 + $0x3e0] ss:$8 sps:$4 sm:$0xff]   ;;  %v1707_v6 = vld [vmem:[%s2283_s1 + $0x1f4] ss:$8 sps:$4 sm:$0xff]  }
  0x44   :  { %1163 = vmatpush1.bf16.msra.mxu0 %v1612_v7  ;;  %1058 = vmatprep.subr.bf16.mxu1 %v1617_v8  ;;  %v1710_v7 = vld [vmem:[%s2283_s1 + $0x3f4] ss:$8 sps:$4 sm:$0xff]   ;;  %v1705_v8 = vld [vmem:[%s2283_s1 + $0x1f0] ss:$8 sps:$4 sm:$0xff]  }
  0x45   :  { %1164 = vmatprep.subr.bf16.mxu0 %v1620_v9  ;;  %1045 = vmatprep.mubr.bf16.mxu1 %v1693_v29  ;;  %v1708_v9 = vld [vmem:[%s2283_s1 + $0x3f0] ss:$8 sps:$4 sm:$0xff]   ;;  %v1743_v29 = vld [vmem:[%s2283_s1 + $0x464] ss:$8 sps:$4 sm:$0xff]  }
  0x46   :  { %1151 = vmatprep.mubr.bf16.mxu0 %v1695_v30  ;;  %v1741_v30 = vld [vmem:[%s2283_s1 + $0x460] ss:$8 sps:$4 sm:$0xff]  }
  0x47   :  { %1059 = vmatpush1.bf16.msra.mxu1 %v1615_v10  ;;  %v1719_v10 = vld [vmem:[%s2283_s1 + $0x404] ss:$8 sps:$4 sm:$0xff]  }
  0x48   :  { %1165 = vmatpush1.bf16.msra.mxu0 %v1618_v11  ;;  %1060 = vmatprep.subr.bf16.mxu1 %v1623_v12  ;;  %v1711_v11 = vld [vmem:[%s2284_s0 + $0x8] ss:$36 sps:$4 sm:$0xff]   ;;  %v1714_v12 = vld [vmem:[%s2284_s0 + $0x18] ss:$36 sps:$4 sm:$0xff]  }
  0x49   :  { %1166 = vmatprep.subr.bf16.mxu0 %v1626_v13  ;;  %v1717_v13 = vld [vmem:[%s2283_s1 + $0x400] ss:$8 sps:$4 sm:$0xff]  }
  0x4a   :  { %1046 = vmatmul.mubr.bf16.gmra.mrb[4].mxu1 %v1697_v31  ;;  %v1746_v31 = vld [vmem:[%s2283_s1 + $0x474] ss:$8 sps:$4 sm:$0xff]  }
  0x4b   :  { %1061 = vmatpush1.bf16.msra.mxu1 %v1621_v14  ;;  %1152 = vmatmul.mubr.bf16.gmra.mrb[4].mxu0 %v1701_v33  ;;  %v1722_v14 = vld [vmem:[%s2283_s1 + $0x414] ss:$8 sps:$4 sm:$0xff]   ;;  %v1747_v33 = vld [vmem:[%s2284_s0 + $0x20] ss:$36 sps:$4 sm:$0xff]  }
  0x4c   :  { %1167 = vmatpush1.bf16.msra.mxu0 %v1624_v15  ;;  %1062 = vmatprep.subr.bf16.mxu1 %v1629_v16  ;;  %v1723_v15 = vld [vmem:[%s2284_s0 + $0x54] ss:$36 sps:$4 sm:$0xff]   ;;  %v1725_v16 = vld [vmem:[%s2284_s0 + $0x64] ss:$36 sps:$4 sm:$0xff]  }
  0x4d   :  { %1168 = vmatprep.subr.bf16.mxu0 %v1632_v17  ;;  %1088 = vmatprep.mubr.bf16.mxu1 %v1713_v41  ;;  %v1720_v17 = vld [vmem:[%s2283_s1 + $0x410] ss:$8 sps:$4 sm:$0xff]  }
  0x4e   :  { %1194 = vmatprep.mubr.bf16.mxu0 %v1716_v43 }
  0x4f   :  { %1063 = vmatpush1.bf16.msra.mxu1 %v1627_v18  ;;  %v1731_v18 = vld [vmem:[%s2283_s1 + $0x424] ss:$8 sps:$4 sm:$0xff]  }
  0x50   :  { %1169 = vmatpush1.bf16.msra.mxu0 %v1630_v19  ;;  %1064 = vmatprep.subr.bf16.mxu1 %v1635_v20  ;;  %v1727_v19 = vld [vmem:[%s2284_s0 + $0x50] ss:$36 sps:$4 sm:$0xff]   ;;  %v1728_v20 = vld [vmem:[%s2284_s0 + $0x60] ss:$36 sps:$4 sm:$0xff]  }
  0x51   :  { %1170 = vmatprep.subr.bf16.mxu0 %v1638_v21  ;;  %v1729_v21 = vld [vmem:[%s2283_s1 + $0x420] ss:$8 sps:$4 sm:$0xff]  }
  0x53   :  { %1065 = vmatpush1.bf16.msra.mxu1 %v1633_v22  ;;  %v1734_v22 = vld [vmem:[%s2283_s1 + $0x434] ss:$8 sps:$4 sm:$0xff]  }
  0x54   :  { %1171 = vmatpush1.bf16.msra.mxu0 %v1636_v23  ;;  %1066 = vmatprep.subr.bf16.mxu1 %v1641_v24  ;;  %v1732_v23 = vld [vmem:[%s2283_s1 + $0x430] ss:$8 sps:$4 sm:$0xff]   ;;  %v1737_v24 = vld [vmem:[%s2283_s1 + $0x444] ss:$8 sps:$4 sm:$0xff]  }
  0x55   :  { %1172 = vmatprep.subr.bf16.mxu0 %v1644_v25  ;;  %v1749_v25 = vmov 0  }
  0x57   :  { %1067 = vmatpush1.bf16.msra.mxu1 %v1639_v26  ;;  %v1735_v26 = vld [vmem:[%s2283_s1 + $0x440] ss:$8 sps:$4 sm:$0xff]  }
  0x58   :  { %1173 = vmatpush1.bf16.msra.mxu0 %v1642_v27  ;;  %1068 = vmatprep.subr.bf16.mxu1 %v1647_v28  ;;  %v1740_v27 = vld [vmem:[%s2283_s1 + $0x454] ss:$8 sps:$4 sm:$0xff]   ;;  %v1738_v28 = vld [vmem:[%s2283_s1 + $0x450] ss:$8 sps:$4 sm:$0xff]  }
  0x59   :  { %1174 = vmatprep.subr.bf16.mxu0 %v1650_v32  ;;  %v1744_v32 = vld [vmem:[%s2283_s1 + $0x470] ss:$8 sps:$4 sm:$0xff]  }
  0x5b   :  { %1069 = vmatpush1.bf16.msra.mxu1 %v1645_v34  ;;  %v1748_v34 = vld [vmem:[%s2284_s0 + $0x68] ss:$36 sps:$4 sm:$0xff]  }
  0x5c   :  { %1175 = vmatpush1.bf16.msra.mxu0 %v1648_v35  ;;  %1070 = vmatprep.subr.bf16.mxu1 %v1653_v36  ;;  %v181_v35 = vlaneseq }
  0x5d   :  { %1176 = vmatprep.subr.bf16.mxu0 %v1656_v37 }
  0x5e   :  { %v182_v36 = vshrl.u32 %v181_v35, 7 }
  0x5f   :  { %1071 = vmatpush1.bf16.msra.mxu1 %v1651_v38 }
  0x60   :  { %1177 = vmatpush1.bf16.msra.mxu0 %v1654_v39  ;;  %1072 = vmatprep.subr.bf16.mxu1 %v1659_v40  ;;  %v183_v40 = vsub.s32 0, %v182_v36  ;;  %v187_v43 = vsub.s32 1, %v182_v36 }
  0x61   :  { %1178 = vmatprep.subr.bf16.mxu0 %v1662_v42  ;;  %v179_v42 = vld [vmem:[%s2285_s2] sm:$0x3] }
  0x63   :  { %1073 = vmatpush1.bf16.msra.mxu1 %v1657_v44  ;;  %v184_v44 = vrot.slane %v179_v42, %v183_v40 }
  0x64   :  { %1179 = vmatpush1.bf16.msra.mxu0 %v1660_v45  ;;  %1074 = vmatprep.subr.bf16.mxu1 %v1665_v46  ;;  %v188_v45 = vrot.slane %v179_v42, %v187_v43 }
  0x65   :  { %1180 = vmatprep.subr.bf16.mxu0 %v1668_v47 }
  0x67   :  { %1075 = vmatpush1.bf16.msra.mxu1 %v1663_v48 }
  0x68   :  { %1181 = vmatpush1.bf16.msra.mxu0 %v1666_v49  ;;  %1076 = vmatprep.subr.bf16.mxu1 %v1671_v50 }
  0x69   :  { %1182 = vmatprep.subr.bf16.mxu0 %v1674_v51 }
  0x6b   :  { %1077 = vmatpush1.bf16.msra.mxu1 %v1669_v52 }
  0x6c   :  { %1183 = vmatpush1.bf16.msra.mxu0 %v1672_v53  ;;  %1078 = vmatprep.subr.bf16.mxu1 %v1677_v54 }
  0x6d   :  { %1184 = vmatprep.subr.bf16.mxu0 %v1680_v55 }
  0x6f   :  { %1079 = vmatpush1.bf16.msra.mxu1 %v1675_v56 }
  0x70   :  { %1185 = vmatpush1.bf16.msra.mxu0 %v1678_v57  ;;  %1080 = vmatprep.subr.bf16.mxu1 %v1683_v58 }
  0x71   :  { %1186 = vmatprep.subr.bf16.mxu0 %v1686_v59 }
  0x73   :  { %1081 = vmatpush1.bf16.msra.mxu1 %v1681_v60 }
  0x74   :  { %1187 = vmatpush1.bf16.msra.mxu0 %v1684_v61  ;;  %1082 = vmatprep.subr.bf16.mxu1 %v1689_v62 }
  0x75   :  { %1188 = vmatprep.subr.bf16.mxu0 %v1692_v63 }
  0x77   :  { %1083 = vmatpush1.bf16.msra.mxu1 %v1687_v0 }
  0x78   :  { %1189 = vmatpush1.bf16.msra.mxu0 %v1690_v1  ;;  %1084 = vmatprep.subr.bf16.mxu1 %v1700_v2 }
  0x79   :  { %1190 = vmatprep.subr.bf16.mxu0 %v1704_v3 }
  0x7b   :  { %1085 = vmatpush1.bf16.msra.mxu1 %v1698_v4 }
  0x7c   :  { %1191 = vmatpush1.bf16.msra.mxu0 %v1702_v5  ;;  %1086 = vmatprep.subr.bf16.mxu1 %v1707_v6 }
  0x7d   :  { %1192 = vmatprep.subr.bf16.mxu0 %v1710_v7 }
  0x7f   :  { %1087 = vmatpush1.bf16.msra.mxu1 %v1705_v8 }
  0x80   :  { %1193 = vmatpush1.bf16.msra.mxu0 %v1708_v9  ;;  %1450 = vmatprep.subr.bf16.mxu1 %v1719_v10 }
  0x81   :  { %1215 = vmatprep.subr.bf16.mxu0 %v1719_v10 }
  0x82   :  { %1089 = vmatmul.mubr.bf16.vlgmr.msra.gmra.mrb[0].mxu1 %v1711_v11 }
  0x83   :  { %1195 = vmatmul.mubr.bf16.vlgmr.msra.gmra.mrb[0].mxu0 %v1714_v12  ;;  %1458 = vmatpush1.bf16.msra.mxu1 %v1717_v13 }
  0x84   :  { %1216 = vmatpush1.bf16.msra.mxu0 %v1717_v13  ;;  %1451 = vmatprep.subr.bf16.mxu1 %v1722_v14 }
  0x85   :  { %1217 = vmatprep.subr.bf16.mxu0 %v1722_v14  ;;  %1098 = vmatprep.mubr.bf16.mxu1 %v1723_v15 }
  0x86   :  { %1204 = vmatprep.mubr.bf16.mxu0 %v1725_v16 }
  0x87   :  { %1459 = vmatpush1.bf16.msra.mxu1 %v1720_v17 }
  0x88   :  { %1218 = vmatpush1.bf16.msra.mxu0 %v1720_v17  ;;  %1452 = vmatprep.subr.bf16.mxu1 %v1731_v18 }
  0x89   :  { %1219 = vmatprep.subr.bf16.mxu0 %v1731_v18 }
  0x8a   :  { %1099 = vmatmul.mubr.bf16.gmra.mrb[4].mxu1 %v1727_v19 }
  0x8b   :  { %1205 = vmatmul.mubr.bf16.gmra.mrb[4].mxu0 %v1728_v20  ;;  %1460 = vmatpush1.bf16.msra.mxu1 %v1729_v21 }
  0x8c   :  { %1220 = vmatpush1.bf16.msra.mxu0 %v1729_v21  ;;  %1453 = vmatprep.subr.bf16.mxu1 %v1734_v22 }
  0x8d   :  { %1221 = vmatprep.subr.bf16.mxu0 %v1734_v22  ;;  %1247 = vmatprep.mubr.bf16.mxu0 %v1749_v25 }
  0x8e   :  { %1257 = vmatprep.mubr.bf16.mxu1 %v1749_v25 }
  0x8f   :  { %1461 = vmatpush1.bf16.msra.mxu1 %v1732_v23 }
  0x90   :  { %1222 = vmatpush1.bf16.msra.mxu0 %v1732_v23  ;;  %1454 = vmatprep.subr.bf16.mxu1 %v1737_v24 }
  0x91   :  { %1223 = vmatprep.subr.bf16.mxu0 %v1737_v24 }
  0x93   :  { %1462 = vmatpush1.bf16.msra.mxu1 %v1735_v26 }
  0x94   :  { %1224 = vmatpush1.bf16.msra.mxu0 %v1735_v26  ;;  %1455 = vmatprep.subr.bf16.mxu1 %v1740_v27 }
  0x95   :  { %1225 = vmatprep.subr.bf16.mxu0 %v1740_v27 }
  0x97   :  { %1463 = vmatpush1.bf16.msra.mxu1 %v1738_v28 }
  0x98   :  { %1226 = vmatpush1.bf16.msra.mxu0 %v1738_v28  ;;  %1456 = vmatprep.subr.bf16.mxu1 %v1743_v29 }
  0x99   :  { %1227 = vmatprep.subr.bf16.mxu0 %v1743_v29 }
  0x9b   :  { %1464 = vmatpush1.bf16.msra.mxu1 %v1741_v30 }
  0x9c   :  { %1228 = vmatpush1.bf16.msra.mxu0 %v1741_v30  ;;  %1457 = vmatprep.subr.bf16.mxu1 %v1746_v31 }
  0x9d   :  { %1229 = vmatprep.subr.bf16.mxu0 %v1746_v31 }
  0x9f   :  { %1465 = vmatpush1.bf16.msra.mxu1 %v1744_v32 }
  0xa0   :  { %1230 = vmatpush1.bf16.msra.mxu0 %v1744_v32 }
  0xa2   :  { %1258 = vmatmul.mubr.bf16.vlgmr.msra.gmra.mrb[8].mxu1 %v1748_v34 }
  0xa3   :  { %1248 = vmatmul.mubr.bf16.vlgmr.msra.gmra.mrb[0].mxu0 %v1747_v33 }
 0x155   :  { %v1090_v37 = vpop.f32.mrb[0].mxu1 }
 0x156   :  { %v1092_v38 = vpop.f32.mrb[1].mxu1  ;;  %v1466_v62 = vadd.f32 %v1090_v37, %v184_v44 }
 0x157   :  { %v1094_v39 = vpop.f32.mrb[2].mxu1  ;;  %v1468_v63 = vadd.f32 %v1092_v38, %v188_v45 }
 0x158   :  { %v1096_v41 = vpop.f32.mrb[3].mxu1  ;;  %v1470_v2 = vadd.f32 %v1094_v39, %v184_v44 }
 0x159   :  { %v1472_v7 = vadd.f32 %v1096_v41, %v188_v45 }
 0x15d   :  { %v1100_v46 = vpop.f32.mrb[4].mxu1 }
 0x15e   :  { %v1206_v47 = vpop.f32.mrb[4].mxu0  ;;  %v1474_v48 = vadd.f32 %v1100_v46, %v184_v44  ;;  %v1102_v49 = vpop.f32.mrb[5].mxu1 }
 0x15f   :  { %v1208_v50 = vpop.f32.mrb[5].mxu0  ;;  %v1477_v51 = vadd.f32 %v1102_v49, %v188_v45  ;;  %v1104_v52 = vpop.f32.mrb[6].mxu1 }
 0x160   :  { %v1210_v53 = vpop.f32.mrb[6].mxu0  ;;  %v1475_v54 = vadd.f32 %v1474_v48, %v1206_v47  ;;  %v1480_v55 = vadd.f32 %v1104_v52, %v184_v44  ;;  %v1106_v56 = vpop.f32.mrb[7].mxu1 }
 0x161   :  { %v1212_v57 = vpop.f32.mrb[7].mxu0  ;;  %v1478_v58 = vadd.f32 %v1477_v51, %v1208_v50  ;;  %v1483_v59 = vadd.f32 %v1106_v56, %v188_v45 }
 0x162   :  { %v1481_v60 = vadd.f32 %v1480_v55, %v1210_v53 }
 0x163   :  { %v1484_v61 = vadd.f32 %v1483_v59, %v1212_v57 }
 0x175   :  { %v1259_v1 = vpop.f32.mrb[8].mxu1 }
 0x176   :  { %v1249_v0 = vpop.f32.mrb[0].mxu0  ;;  %v1476_v4 = vadd.f32 %v1475_v54, %v1259_v1  ;;  %v1261_v6 = vpop.f32.mrb[9].mxu1 }
 0x177   :  { %v1467_v3 = vadd.f32 %v1466_v62, %v1249_v0  ;;  %v1251_v5 = vpop.f32.mrb[1].mxu0  ;;  %v1479_v9 = vadd.f32 %v1478_v58, %v1261_v6  ;;  %v1263_v11 = vpop.f32.mrb[10].mxu1 }
 0x178   :  { %v1469_v8 = vadd.f32 %v1468_v63, %v1251_v5  ;;  %v1253_v10 = vpop.f32.mrb[2].mxu0  ;;  %v1272_v13 = vmax.f32 %v1476_v4, 0.0  ;;  %v1482_v15 = vadd.f32 %v1481_v60, %v1263_v11  ;;  %v1265_v17 = vpop.f32.mrb[11].mxu1 }
 0x179   :  { %v1268_v12 = vmax.f32 %v1467_v3, 0.0  ;;  %v1471_v14 = vadd.f32 %v1470_v2, %v1253_v10  ;;  %v1255_v16 = vpop.f32.mrb[3].mxu0  ;;  %v1273_v19 = vmax.f32 %v1479_v9, 0.0  ;;  %v1485_v21 = vadd.f32 %v1484_v61, %v1265_v17 }
 0x17a   :  { %v1269_v18 = vmax.f32 %v1469_v8, 0.0  ;;  %v1473_v20 = vadd.f32 %v1472_v7, %v1255_v16  ;;  %1280 = vst [vmem:[%s2286_s3 + $0x20] sm:$0xff] %v1272_v13  ;;  %v1274_v23 = vmax.f32 %v1482_v15, 0.0 }
 0x17b   :  { %1276 = vst [vmem:[%s2286_s3] sm:$0xff] %v1268_v12  ;;  %v1270_v22 = vmax.f32 %v1471_v14, 0.0  ;;  %1281 = vst [vmem:[%s2286_s3 + $0x28] sm:$0xff] %v1273_v19  ;;  %v1275_v25 = vmax.f32 %v1485_v21, 0.0 }
 0x17c   :  { %1277 = vst [vmem:[%s2286_s3 + $0x8] sm:$0xff] %v1269_v18  ;;  %v1271_v24 = vmax.f32 %v1473_v20, 0.0  ;;  %1282 = vst [vmem:[%s2286_s3 + $0x30] sm:$0xff] %v1274_v23 }
 0x17d   :  { %1278 = vst [vmem:[%s2286_s3 + $0x10] sm:$0xff] %v1270_v22  ;;  %1283 = vst [vmem:[%s2286_s3 + $0x38] sm:$0xff] %v1275_v25 }
 0x17e   :  { %1279 = vst [vmem:[%s2286_s3 + $0x18] sm:$0xff] %v1271_v24 }

// kernel: convvae_forward.10
= control target key start
LH: loop header
LB: loop body
LE: loop exit
PB: predicated region body
PF: predicated region fallthrough
CT: control target
= control target key end

     0   :  { %16 = vsyncpa [#allocation3], 0  ;;  %v306_v28 = vlaneseq  ;;  %v4585_v36 = vmov 1966171168   ;;  %s5738_s0 = inlined_call_operand.vmem [shape: bf16[2,2048], index: 0, kind: input, shape index: {}]   ;;  %s5739_s1 = inlined_call_operand.vmem [shape: f32[2,20], index: 1, kind: input, shape index: {}]   ;;  %s5740_s2 = inlined_call_operand.vmem [shape: bf16[2048,20], index: 2, kind: input, shape index: {}]   ;;  %s5741_s3 = inlined_call_operand.vmem [shape: f32[1,20], index: 3, kind: input, shape index: {}]   ;;  %s5742_s4 = inlined_call_operand.vmem [shape: bf16[2048,20], index: 4, kind: input, shape index: {}]   ;;  %s5743_s5 = inlined_call_operand.vmem [shape: f32[1,20], index: 5, kind: input, shape index: {}]   ;;  %s5744_s6 = inlined_call_operand.vmem [shape: bf16[20,2048], index: 6, kind: input, shape index: {}]   ;;  %s5745_s7 = inlined_call_operand.vmem [shape: f32[1,2048], index: 7, kind: input, shape index: {}]   ;;  %s5746_s8 = inlined_call_operand.hbm [shape: f32[2,20], index: 8, kind: output, shape index: {0}]   ;;  %s5747_s9 = inlined_call_operand.hbm [shape: f32[2,20], index: 9, kind: output, shape index: {1}]   ;;  %s5748_s10 = inlined_call_operand.vmem [shape: f32[2,2048], index: 10, kind: output, shape index: {2}]  }
   0x1   :  { %v4261_v0 = vld [vmem:[%s5740_s2 + $0x40] sm:$0xff]   ;;  %v4265_v4 = vld [vmem:[%s5740_s2 + $0x48] sm:$0xff]   ;;  %v4269_v8 = vld [vmem:[%s5740_s2 + $0x50] sm:$0xff]   ;;  %v304_v37 = vunpack.c.l.s4 %v4585_v36 }
   0x2   :  { %v4262_v1 = vld [vmem:[%s5740_s2 + $0xc0] sm:$0xff]   ;;  %3904 = vmatprep.subr.bf16.mxu0 %v4261_v0  ;;  %v4266_v5 = vld [vmem:[%s5740_s2 + $0xc8] sm:$0xff]   ;;  %v4270_v9 = vld [vmem:[%s5740_s2 + $0xd0] sm:$0xff]   ;;  %v4741_v33 = vshrl.u32 %v306_v28, 7 }
   0x3   :  { %v4263_v2 = vld [vmem:[%s5740_s2] sm:$0xff]   ;;  %3926 = vmatprep.subr.bf16.mxu1 %v4262_v1  ;;  %v4267_v6 = vld [vmem:[%s5740_s2 + $0x8] sm:$0xff]   ;;  %v4271_v10 = vld [vmem:[%s5740_s2 + $0x10] sm:$0xff]   ;;  %v305_v39 = vunpack.c.0.s8 %v304_v37 }
   0x4   :  { %v4264_v3 = vld [vmem:[%s5740_s2 + $0x80] sm:$0xff]   ;;  %3905 = vmatpush3.bf16.msra.mxu0 %v4263_v2  ;;  %v4268_v7 = vld [vmem:[%s5740_s2 + $0x88] sm:$0xff]   ;;  %v4272_v11 = vld [vmem:[%s5740_s2 + $0x90] sm:$0xff]  }
   0x5   :  { %3927 = vmatpush3.bf16.msra.mxu1 %v4264_v3  ;;  %3906 = vmatprep.subr.bf16.mxu0 %v4265_v4  ;;  %v4273_v12 = vld [vmem:[%s5740_s2 + $0x58] sm:$0xff]   ;;  %v4277_v16 = vld [vmem:[%s5740_s2 + $0x60] sm:$0xff]   ;;  %v4281_v20 = vld [vmem:[%s5740_s2 + $0x68] sm:$0xff]   ;;  %v4753_v41 = vsub.s32 %v305_v39, %v4741_v33 }
   0x6   :  { %3928 = vmatprep.subr.bf16.mxu1 %v4266_v5  ;;  %v4274_v13 = vld [vmem:[%s5740_s2 + $0xd8] sm:$0xff]   ;;  %v4278_v17 = vld [vmem:[%s5740_s2 + $0xe0] sm:$0xff]   ;;  %v4282_v21 = vld [vmem:[%s5740_s2 + $0xe8] sm:$0xff]  }
   0x7   :  { %v4275_v14 = vld [vmem:[%s5740_s2 + $0x18] sm:$0xff]   ;;  %v4279_v18 = vld [vmem:[%s5740_s2 + $0x20] sm:$0xff]   ;;  %v4283_v22 = vld [vmem:[%s5740_s2 + $0x28] sm:$0xff]  }
   0x8   :  { %3907 = vmatpush3.bf16.msra.mxu0 %v4267_v6  ;;  %v4276_v15 = vld [vmem:[%s5740_s2 + $0x98] sm:$0xff]   ;;  %v4280_v19 = vld [vmem:[%s5740_s2 + $0xa0] sm:$0xff]   ;;  %v4284_v23 = vld [vmem:[%s5740_s2 + $0xa8] sm:$0xff]  }
   0x9   :  { %3929 = vmatpush3.bf16.msra.mxu1 %v4268_v7  ;;  %3908 = vmatprep.subr.bf16.mxu0 %v4269_v8  ;;  %v4285_v24 = vld [vmem:[%s5740_s2 + $0x70] sm:$0xff]   ;;  %v4289_v29 = vld [vmem:[%s5740_s2 + $0x78] sm:$0xff]   ;;  %v35_v34 = vld [vmem:[%s5738_s0] sm:$0xff] }
   0xa   :  { %3930 = vmatprep.subr.bf16.mxu1 %v4270_v9  ;;  %v4286_v25 = vld [vmem:[%s5740_s2 + $0xf0] sm:$0xff]   ;;  %v4290_v30 = vld [vmem:[%s5740_s2 + $0xf8] sm:$0xff]   ;;  %v4293_v35 = vld [vmem:[%s5740_s2 + $0x140] sm:$0xff]   ;;  %v302_v40 = vcombine.high %v35_v34, %v35_v34  ;;  %v309_v42 = vrot.slane %v35_v34, %v4753_v41 }
   0xb   :  { %v4287_v26 = vld [vmem:[%s5740_s2 + $0x30] sm:$0xff]   ;;  %v4291_v31 = vld [vmem:[%s5740_s2 + $0x38] sm:$0xff]   ;;  %v4294_v38 = vld [vmem:[%s5740_s2 + $0x1c0] sm:$0xff]  }
   0xc   :  { %3909 = vmatpush3.bf16.msra.mxu0 %v4271_v10  ;;  %v4288_v27 = vld [vmem:[%s5740_s2 + $0xb0] sm:$0xff]   ;;  %v4292_v32 = vld [vmem:[%s5740_s2 + $0xb8] sm:$0xff]   ;;  %v4757_v43 = vrot.slane %v302_v40, %v4753_v41  ;;  %v317_v44 = vcombine.high %v309_v42, %v309_v42  ;;  %v4760_v45 = vrot.slane %v309_v42, %v4753_v41  ;;  %v4295_v48 = vld [vmem:[%s5740_s2 + $0x100] sm:$0xff]  }
   0xd   :  { %3931 = vmatpush3.bf16.msra.mxu1 %v4272_v11  ;;  %3910 = vmatprep.subr.bf16.mxu0 %v4273_v12  ;;  %v4297_v51 = vld [vmem:[%s5740_s2 + $0x148] sm:$0xff]   ;;  %v4296_v53 = vld [vmem:[%s5740_s2 + $0x180] sm:$0xff]   ;;  %v4301_v57 = vld [vmem:[%s5740_s2 + $0x150] sm:$0xff]  }
   0xe   :  { %3932 = vmatprep.subr.bf16.mxu1 %v4274_v13  ;;  %v318_v46 = vcombine.high %v4757_v43, %v4757_v43  ;;  %v4765_v47 = vrot.slane %v317_v44, %v4753_v41  ;;  %v4775_v50 = vcombine.high %v4760_v45, %v4760_v45  ;;  %v4298_v54 = vld [vmem:[%s5740_s2 + $0x1c8] sm:$0xff]   ;;  %v4302_v59 = vld [vmem:[%s5740_s2 + $0x1d0] sm:$0xff]   ;;  %v4305_v61 = vld [vmem:[%s5740_s2 + $0x158] sm:$0xff]  }
   0xf   :  { %v4299_v56 = vld [vmem:[%s5740_s2 + $0x108] sm:$0xff]   ;;  %v4303_v60 = vld [vmem:[%s5740_s2 + $0x110] sm:$0xff]   ;;  %v4306_v63 = vld [vmem:[%s5740_s2 + $0x1d8] sm:$0xff]  }
  0x10   :  { %3911 = vmatpush3.bf16.msra.mxu0 %v4275_v14  ;;  %v4771_v49 = vrot.slane %v318_v46, %v4753_v41  ;;  %1216 = vmatprep.mubr.bf16.mxu0 %v4765_v47  ;;  %v4783_v52 = vcombine.high %v4765_v47, %v4765_v47  ;;  %v4300_v58 = vld [vmem:[%s5740_s2 + $0x188] sm:$0xff]   ;;  %v4304_v62 = vld [vmem:[%s5740_s2 + $0x190] sm:$0xff]   ;;  %v4307_v0 = vld [vmem:[%s5740_s2 + $0x118] sm:$0xff]  }
  0x11   :  { %3933 = vmatpush3.bf16.msra.mxu1 %v4276_v15  ;;  %3912 = vmatprep.subr.bf16.mxu0 %v4277_v16  ;;  %v4309_v1 = vld [vmem:[%s5740_s2 + $0x160] sm:$0xff]   ;;  %v4308_v2 = vld [vmem:[%s5740_s2 + $0x198] sm:$0xff]   ;;  %v4313_v5 = vld [vmem:[%s5740_s2 + $0x168] sm:$0xff]  }
  0x12   :  { %3934 = vmatprep.subr.bf16.mxu1 %v4278_v17  ;;  %v4794_v55 = vcombine.high %v4771_v49, %v4771_v49  ;;  %1256 = vmatprep.mubr.bf16.mxu1 %v4783_v52  ;;  %v4310_v3 = vld [vmem:[%s5740_s2 + $0x1e0] sm:$0xff]   ;;  %v4314_v7 = vld [vmem:[%s5740_s2 + $0x1e8] sm:$0xff]   ;;  %v4317_v9 = vld [vmem:[%s5740_s2 + $0x170] sm:$0xff]   ;;  %v4877_v17 = vrot.slane %v4757_v43, %v4753_v41 }
  0x13   :  { %v4311_v4 = vld [vmem:[%s5740_s2 + $0x120] sm:$0xff]   ;;  %v4315_v8 = vld [vmem:[%s5740_s2 + $0x128] sm:$0xff]   ;;  %v4318_v11 = vld [vmem:[%s5740_s2 + $0x1f0] sm:$0xff]  }
  0x14   :  { %3913 = vmatpush3.bf16.msra.mxu0 %v4279_v18  ;;  %v4312_v6 = vld [vmem:[%s5740_s2 + $0x1a0] sm:$0xff]   ;;  %v4316_v10 = vld [vmem:[%s5740_s2 + $0x1a8] sm:$0xff]   ;;  %v4319_v12 = vld [vmem:[%s5740_s2 + $0x130] sm:$0xff]  }
  0x15   :  { %3935 = vmatpush3.bf16.msra.mxu1 %v4280_v19  ;;  %3914 = vmatprep.subr.bf16.mxu0 %v4281_v20  ;;  %v4321_v13 = vld [vmem:[%s5740_s2 + $0x178] sm:$0xff]   ;;  %v4320_v14 = vld [vmem:[%s5740_s2 + $0x1b0] sm:$0xff]   ;;  %v4326_v18 = vld [vmem:[%s5740_s2 + $0x240] sm:$0xff]  }
  0x16   :  { %3936 = vmatprep.subr.bf16.mxu1 %v4282_v21  ;;  %v4322_v15 = vld [vmem:[%s5740_s2 + $0x1f8] sm:$0xff]   ;;  %v4327_v20 = vld [vmem:[%s5740_s2 + $0x2c0] sm:$0xff]   ;;  %v4333_v28 = vld [vmem:[%s5740_s2 + $0x288] sm:$0xff]  }
  0x17   :  { %v4323_v16 = vld [vmem:[%s5740_s2 + $0x138] sm:$0xff]   ;;  %v4328_v21 = vld [vmem:[%s5740_s2 + $0x200] sm:$0xff]   ;;  %v4346_v40 = vld [vmem:[%s5740_s2 + $0x268] sm:$0xff]  }
  0x18   :  { %3915 = vmatpush3.bf16.msra.mxu0 %v4283_v22  ;;  %v4324_v19 = vld [vmem:[%s5740_s2 + $0x1b8] sm:$0xff]   ;;  %v4893_v22 = vcombine.high %v4877_v17, %v4877_v17  ;;  %v4342_v36 = vld [vmem:[%s5740_s2 + $0x260] sm:$0xff]   ;;  %v4347_v43 = vld [vmem:[%s5740_s2 + $0x2e8] sm:$0xff]  }
  0x19   :  { %3937 = vmatpush3.bf16.msra.mxu1 %v4284_v23  ;;  %3916 = vmatprep.subr.bf16.mxu0 %v4285_v24  ;;  %v4330_v23 = vld [vmem:[%s5740_s2 + $0x248] sm:$0xff]   ;;  %v4329_v24 = vld [vmem:[%s5740_s2 + $0x280] sm:$0xff]   ;;  %v4339_v34 = vld [vmem:[%s5740_s2 + $0x2d8] sm:$0xff]  }
  0x1a   :  { %3938 = vmatprep.subr.bf16.mxu1 %v4286_v25  ;;  %v4331_v25 = vld [vmem:[%s5740_s2 + $0x2c8] sm:$0xff]   ;;  %v4341_v37 = vld [vmem:[%s5740_s2 + $0x298] sm:$0xff]   ;;  %v4344_v39 = vld [vmem:[%s5740_s2 + $0x220] sm:$0xff]  }
  0x1b   :  { %v4345_v42 = vld [vmem:[%s5740_s2 + $0x2a0] sm:$0xff]   ;;  %v4348_v44 = vld [vmem:[%s5740_s2 + $0x228] sm:$0xff]   ;;  %v4350_v46 = vld [vmem:[%s5740_s2 + $0x270] sm:$0xff]  }
  0x1c   :  { %3917 = vmatpush3.bf16.msra.mxu0 %v4287_v26  ;;  %v4332_v26 = vld [vmem:[%s5740_s2 + $0x208] sm:$0xff]  }
  0x1d   :  { %3939 = vmatpush3.bf16.msra.mxu1 %v4288_v27  ;;  %3918 = vmatprep.subr.bf16.mxu0 %v4289_v29  ;;  %v4334_v27 = vld [vmem:[%s5740_s2 + $0x250] sm:$0xff]  }
  0x1e   :  { %3940 = vmatprep.subr.bf16.mxu1 %v4290_v30  ;;  %v4335_v29 = vld [vmem:[%s5740_s2 + $0x2d0] sm:$0xff]  }
  0x1f   :  { %v4336_v30 = vld [vmem:[%s5740_s2 + $0x210] sm:$0xff]  }
  0x20   :  { %3919 = vmatpush3.bf16.msra.mxu0 %v4291_v31  ;;  %v4338_v31 = vld [vmem:[%s5740_s2 + $0x258] sm:$0xff]  }
  0x21   :  { %3941 = vmatpush3.bf16.msra.mxu1 %v4292_v32  ;;  %3948 = vmatprep.subr.bf16.mxu0 %v4293_v35  ;;  %v4337_v32 = vld [vmem:[%s5740_s2 + $0x290] sm:$0xff]   ;;  %v4340_v35 = vld [vmem:[%s5740_s2 + $0x218] sm:$0xff]  }
  0x22   :  { %3970 = vmatprep.subr.bf16.mxu1 %v4294_v38  ;;  %v4343_v38 = vld [vmem:[%s5740_s2 + $0x2e0] sm:$0xff]  }
  0x23   :  { %1217 = vmatmul.mubr.bf16.vlgmr.msra.gmra.mrb[0].mxu0 %v4760_v45 }
  0x24   :  { %3949 = vmatpush3.bf16.msra.mxu0 %v4295_v48  ;;  %1257 = vmatmul.mubr.bf16.vlgmr.msra.gmra.mrb[0].mxu1 %v4775_v50  ;;  %v36_v48 = vld [vmem:[%s5738_s0 + $0x8] sm:$0xff] }
  0x25   :  { %3950 = vmatprep.subr.bf16.mxu0 %v4297_v51  ;;  %3971 = vmatpush3.bf16.msra.mxu1 %v4296_v53  ;;  %v4349_v51 = vld [vmem:[%s5740_s2 + $0x2a8] sm:$0xff]   ;;  %v358_v53 = vrot.slane %v36_v48, %v4753_v41 }
  0x26   :  { %1296 = vmatprep.mubr.bf16.mxu0 %v4771_v49  ;;  %3972 = vmatprep.subr.bf16.mxu1 %v4298_v54  ;;  %v351_v54 = vcombine.high %v36_v48, %v36_v48  ;;  %v4392_v48 = vld [vmem:[%s5742_s4 + $0xc0] sm:$0xff]  }
  0x27   :  { %1336 = vmatprep.mubr.bf16.mxu1 %v4794_v55 }
  0x28   :  { %3951 = vmatpush3.bf16.msra.mxu0 %v4299_v56  ;;  %v4351_v56 = vld [vmem:[%s5740_s2 + $0x2f0] sm:$0xff]  }
  0x29   :  { %3952 = vmatprep.subr.bf16.mxu0 %v4301_v57  ;;  %3973 = vmatpush3.bf16.msra.mxu1 %v4300_v58  ;;  %v4352_v57 = vld [vmem:[%s5740_s2 + $0x230] sm:$0xff]   ;;  %v366_v58 = vcombine.high %v358_v53, %v358_v53 }
  0x2a   :  { %3974 = vmatprep.subr.bf16.mxu1 %v4302_v59  ;;  %v4974_v59 = vrot.slane %v351_v54, %v4753_v41  ;;  %v4394_v54 = vld [vmem:[%s5742_s4 + $0x80] sm:$0xff]  }
  0x2c   :  { %3953 = vmatpush3.bf16.msra.mxu0 %v4303_v60  ;;  %v4354_v60 = vld [vmem:[%s5740_s2 + $0x278] sm:$0xff]  }
  0x2d   :  { %3954 = vmatprep.subr.bf16.mxu0 %v4305_v61  ;;  %3975 = vmatpush3.bf16.msra.mxu1 %v4304_v62  ;;  %v4353_v61 = vld [vmem:[%s5740_s2 + $0x2b0] sm:$0xff]   ;;  %v4983_v62 = vrot.slane %v366_v58, %v4753_v41 }
  0x2e   :  { %3976 = vmatprep.subr.bf16.mxu1 %v4306_v63  ;;  %v367_v63 = vcombine.high %v4974_v59, %v4974_v59  ;;  %v4399_v58 = vld [vmem:[%s5742_s4 + $0x50] sm:$0xff]  }
  0x30   :  { %3955 = vmatpush3.bf16.msra.mxu0 %v4307_v0  ;;  %v4355_v0 = vld [vmem:[%s5740_s2 + $0x2f8] sm:$0xff]  }
  0x31   :  { %3956 = vmatprep.subr.bf16.mxu0 %v4309_v1  ;;  %3977 = vmatpush3.bf16.msra.mxu1 %v4308_v2  ;;  %v4356_v1 = vld [vmem:[%s5740_s2 + $0x238] sm:$0xff]   ;;  %v4996_v2 = vcombine.high %v4983_v62, %v4983_v62 }
  0x32   :  { %3978 = vmatprep.subr.bf16.mxu1 %v4310_v3  ;;  %v4999_v3 = vrot.slane %v358_v53, %v4753_v41  ;;  %v4395_v53 = vld [vmem:[%s5742_s4 + $0x48] sm:$0xff]  }
  0x34   :  { %3957 = vmatpush3.bf16.msra.mxu0 %v4311_v4  ;;  %v4358_v4 = vld [vmem:[%s5740_s2 + $0x340] sm:$0xff]  }
  0x35   :  { %3958 = vmatprep.subr.bf16.mxu0 %v4313_v5  ;;  %3979 = vmatpush3.bf16.msra.mxu1 %v4312_v6  ;;  %v4357_v5 = vld [vmem:[%s5740_s2 + $0x2b8] sm:$0xff]   ;;  %v5009_v6 = vrot.slane %v367_v63, %v4753_v41 }
  0x36   :  { %3980 = vmatprep.subr.bf16.mxu1 %v4314_v7  ;;  %v4359_v7 = vld [vmem:[%s5740_s2 + $0x3c0] sm:$0xff]   ;;  %v4404_v63 = vld [vmem:[%s5742_s4 + $0xd8] sm:$0xff]  }
  0x38   :  { %3959 = vmatpush3.bf16.msra.mxu0 %v4315_v8  ;;  %v4360_v8 = vld [vmem:[%s5740_s2 + $0x300] sm:$0xff]  }
  0x39   :  { %3960 = vmatprep.subr.bf16.mxu0 %v4317_v9  ;;  %3981 = vmatpush3.bf16.msra.mxu1 %v4316_v10  ;;  %v5019_v9 = vcombine.high %v4999_v3, %v4999_v3  ;;  %v4362_v10 = vld [vmem:[%s5740_s2 + $0x348] sm:$0xff]  }
  0x3a   :  { %3982 = vmatprep.subr.bf16.mxu1 %v4318_v11  ;;  %v4361_v11 = vld [vmem:[%s5740_s2 + $0x380] sm:$0xff]  }
  0x3c   :  { %3961 = vmatpush3.bf16.msra.mxu0 %v4319_v12  ;;  %v5029_v12 = vcombine.high %v5009_v6, %v5009_v6 }
  0x3d   :  { %3962 = vmatprep.subr.bf16.mxu0 %v4321_v13  ;;  %3983 = vmatpush3.bf16.msra.mxu1 %v4320_v14  ;;  %v4363_v13 = vld [vmem:[%s5740_s2 + $0x3c8] sm:$0xff]  }
  0x3e   :  { %3984 = vmatprep.subr.bf16.mxu1 %v4322_v15  ;;  %v4364_v14 = vld [vmem:[%s5740_s2 + $0x308] sm:$0xff]   ;;  %v4366_v15 = vld [vmem:[%s5740_s2 + $0x350] sm:$0xff]  }
  0x40   :  { %3963 = vmatpush3.bf16.msra.mxu0 %v4323_v16  ;;  %v4365_v16 = vld [vmem:[%s5740_s2 + $0x388] sm:$0xff]  }
  0x41   :  { %3992 = vmatprep.subr.bf16.mxu0 %v4326_v18  ;;  %3985 = vmatpush3.bf16.msra.mxu1 %v4324_v19  ;;  %v4367_v18 = vld [vmem:[%s5740_s2 + $0x3d0] sm:$0xff]  }
  0x42   :  { %4014 = vmatprep.subr.bf16.mxu1 %v4327_v20  ;;  %v4368_v19 = vld [vmem:[%s5740_s2 + $0x310] sm:$0xff]   ;;  %v4370_v20 = vld [vmem:[%s5740_s2 + $0x358] sm:$0xff]  }
  0x43   :  { %1297 = vmatmul.mubr.bf16.vlgmr.msra.gmra.mrb[4].mxu0 %v4877_v17 }
  0x44   :  { %3993 = vmatpush3.bf16.msra.mxu0 %v4328_v21  ;;  %1337 = vmatmul.mubr.bf16.vlgmr.msra.gmra.mrb[4].mxu1 %v4893_v22  ;;  %v4369_v21 = vld [vmem:[%s5740_s2 + $0x390] sm:$0xff]  }
  0x45   :  { %3994 = vmatprep.subr.bf16.mxu0 %v4330_v23  ;;  %4015 = vmatpush3.bf16.msra.mxu1 %v4329_v24  ;;  %v4371_v23 = vld [vmem:[%s5740_s2 + $0x3d8] sm:$0xff]  }
  0x46   :  { %4016 = vmatprep.subr.bf16.mxu1 %v4331_v25  ;;  %1376 = vmatprep.mubr.bf16.mxu0 %v4983_v62  ;;  %v4372_v24 = vld [vmem:[%s5740_s2 + $0x318] sm:$0xff]   ;;  %v4374_v25 = vld [vmem:[%s5740_s2 + $0x360] sm:$0xff]  }
  0x47   :  { %1416 = vmatprep.mubr.bf16.mxu1 %v4996_v2 }
  0x48   :  { %3995 = vmatpush3.bf16.msra.mxu0 %v4332_v26  ;;  %v4373_v26 = vld [vmem:[%s5740_s2 + $0x398] sm:$0xff]  }
  0x49   :  { %3996 = vmatprep.subr.bf16.mxu0 %v4334_v27  ;;  %4017 = vmatpush3.bf16.msra.mxu1 %v4333_v28  ;;  %v4375_v27 = vld [vmem:[%s5740_s2 + $0x3e0] sm:$0xff]  }
  0x4a   :  { %4018 = vmatprep.subr.bf16.mxu1 %v4335_v29  ;;  %v4376_v28 = vld [vmem:[%s5740_s2 + $0x320] sm:$0xff]   ;;  %v4378_v29 = vld [vmem:[%s5740_s2 + $0x368] sm:$0xff]  }
  0x4c   :  { %3997 = vmatpush3.bf16.msra.mxu0 %v4336_v30  ;;  %v4377_v30 = vld [vmem:[%s5740_s2 + $0x3a0] sm:$0xff]  }
  0x4d   :  { %3998 = vmatprep.subr.bf16.mxu0 %v4338_v31  ;;  %4019 = vmatpush3.bf16.msra.mxu1 %v4337_v32  ;;  %v4379_v31 = vld [vmem:[%s5740_s2 + $0x3e8] sm:$0xff]  }
  0x4e   :  { %4020 = vmatprep.subr.bf16.mxu1 %v4339_v34  ;;  %v4380_v32 = vld [vmem:[%s5740_s2 + $0x328] sm:$0xff]   ;;  %v4382_v34 = vld [vmem:[%s5740_s2 + $0x370] sm:$0xff]  }
  0x50   :  { %3999 = vmatpush3.bf16.msra.mxu0 %v4340_v35  ;;  %v4381_v35 = vld [vmem:[%s5740_s2 + $0x3a8] sm:$0xff]  }
  0x51   :  { %4000 = vmatprep.subr.bf16.mxu0 %v4342_v36  ;;  %4021 = vmatpush3.bf16.msra.mxu1 %v4341_v37  ;;  %v4383_v36 = vld [vmem:[%s5740_s2 + $0x3f0] sm:$0xff]  }
  0x52   :  { %4022 = vmatprep.subr.bf16.mxu1 %v4343_v38  ;;  %v4384_v37 = vld [vmem:[%s5740_s2 + $0x330] sm:$0xff]   ;;  %v4386_v38 = vld [vmem:[%s5740_s2 + $0x378] sm:$0xff]  }
  0x54   :  { %4001 = vmatpush3.bf16.msra.mxu0 %v4344_v39  ;;  %v4385_v39 = vld [vmem:[%s5740_s2 + $0x3b0] sm:$0xff]  }
  0x55   :  { %4002 = vmatprep.subr.bf16.mxu0 %v4346_v40  ;;  %4023 = vmatpush3.bf16.msra.mxu1 %v4345_v42  ;;  %v4387_v40 = vld [vmem:[%s5740_s2 + $0x3f8] sm:$0xff]  }
  0x56   :  { %4024 = vmatprep.subr.bf16.mxu1 %v4347_v43  ;;  %v4388_v42 = vld [vmem:[%s5740_s2 + $0x338] sm:$0xff]   ;;  %v5115_v43 = vrot.slane %v4974_v59, %v4753_v41  ;;  %v4393_v41 = vld [vmem:[%s5742_s4] sm:$0xff]   ;;  %v4398_v59 = vld [vmem:[%s5742_s4 + $0x88] sm:$0xff]  }
  0x58   :  { %4003 = vmatpush3.bf16.msra.mxu0 %v4348_v44  ;;  %v4391_v44 = vld [vmem:[%s5742_s4 + $0x40] sm:$0xff]  }
  0x59   :  { %4004 = vmatprep.subr.bf16.mxu0 %v4350_v46  ;;  %4025 = vmatpush3.bf16.msra.mxu1 %v4349_v51  ;;  %v4389_v46 = vld [vmem:[%s5740_s2 + $0x3b8] sm:$0xff]   ;;  %v5131_v51 = vcombine.high %v5115_v43, %v5115_v43 }
  0x5a   :  { %4026 = vmatprep.subr.bf16.mxu1 %v4351_v56  ;;  %v4396_v56 = vld [vmem:[%s5742_s4 + $0xc8] sm:$0xff]  }
  0x5c   :  { %4005 = vmatpush3.bf16.msra.mxu0 %v4352_v57  ;;  %v4397_v57 = vld [vmem:[%s5742_s4 + $0x8] sm:$0xff]  }
  0x5d   :  { %4006 = vmatprep.subr.bf16.mxu0 %v4354_v60  ;;  %4027 = vmatpush3.bf16.msra.mxu1 %v4353_v61  ;;  %v4400_v60 = vld [vmem:[%s5742_s4 + $0xd0] sm:$0xff]   ;;  %v4403_v61 = vld [vmem:[%s5742_s4 + $0x58] sm:$0xff]  }
  0x5e   :  { %4028 = vmatprep.subr.bf16.mxu1 %v4355_v0  ;;  %v4405_v0 = vld [vmem:[%s5742_s4 + $0x18] sm:$0xff]  }
  0x60   :  { %4007 = vmatpush3.bf16.msra.mxu0 %v4356_v1  ;;  %v4407_v1 = vld [vmem:[%s5742_s4 + $0x60] sm:$0xff]  }
  0x61   :  { %4036 = vmatprep.subr.bf16.mxu0 %v4358_v4  ;;  %4029 = vmatpush3.bf16.msra.mxu1 %v4357_v5  ;;  %v4406_v4 = vld [vmem:[%s5742_s4 + $0x98] sm:$0xff]   ;;  %v4408_v5 = vld [vmem:[%s5742_s4 + $0xe0] sm:$0xff]  }
  0x62   :  { %4058 = vmatprep.subr.bf16.mxu1 %v4359_v7  ;;  %v4409_v7 = vld [vmem:[%s5742_s4 + $0x20] sm:$0xff]  }
  0x63   :  { %1377 = vmatmul.mubr.bf16.vlgmr.msra.gmra.mrb[8].mxu0 %v4999_v3 }
  0x64   :  { %4037 = vmatpush3.bf16.msra.mxu0 %v4360_v8  ;;  %1456 = vmatprep.mubr.bf16.mxu0 %v5009_v6  ;;  %v4411_v8 = vld [vmem:[%s5742_s4 + $0x68] sm:$0xff]  }
  0x65   :  { %1417 = vmatmul.mubr.bf16.vlgmr.msra.gmra.mrb[8].mxu1 %v5019_v9  ;;  %4038 = vmatprep.subr.bf16.mxu0 %v4362_v10  ;;  %v4410_v10 = vld [vmem:[%s5742_s4 + $0xa0] sm:$0xff]  }
  0x66   :  { %4059 = vmatpush3.bf16.msra.mxu1 %v4361_v11  ;;  %1496 = vmatprep.mubr.bf16.mxu1 %v5029_v12  ;;  %v4412_v11 = vld [vmem:[%s5742_s4 + $0xe8] sm:$0xff]  }
  0x67   :  { %4060 = vmatprep.subr.bf16.mxu1 %v4363_v13  ;;  %v4413_v13 = vld [vmem:[%s5742_s4 + $0x28] sm:$0xff]  }
  0x68   :  { %4039 = vmatpush3.bf16.msra.mxu0 %v4364_v14  ;;  %v4415_v14 = vld [vmem:[%s5742_s4 + $0x70] sm:$0xff]  }
  0x69   :  { %4040 = vmatprep.subr.bf16.mxu0 %v4366_v15  ;;  %v4414_v15 = vld [vmem:[%s5742_s4 + $0xa8] sm:$0xff]  }
  0x6a   :  { %4061 = vmatpush3.bf16.msra.mxu1 %v4365_v16  ;;  %v4416_v16 = vld [vmem:[%s5742_s4 + $0xf0] sm:$0xff]  }
  0x6b   :  { %4062 = vmatprep.subr.bf16.mxu1 %v4367_v18  ;;  %v4417_v18 = vld [vmem:[%s5742_s4 + $0x30] sm:$0xff]  }
  0x6c   :  { %4041 = vmatpush3.bf16.msra.mxu0 %v4368_v19  ;;  %v4419_v19 = vld [vmem:[%s5742_s4 + $0x78] sm:$0xff]  }
  0x6d   :  { %4042 = vmatprep.subr.bf16.mxu0 %v4370_v20  ;;  %v4418_v20 = vld [vmem:[%s5742_s4 + $0xb0] sm:$0xff]  }
  0x6e   :  { %4063 = vmatpush3.bf16.msra.mxu1 %v4369_v21  ;;  %v4420_v21 = vld [vmem:[%s5742_s4 + $0xf8] sm:$0xff]  }
  0x6f   :  { %4064 = vmatprep.subr.bf16.mxu1 %v4371_v23  ;;  %v4421_v23 = vld [vmem:[%s5742_s4 + $0x38] sm:$0xff]  }
  0x70   :  { %4043 = vmatpush3.bf16.msra.mxu0 %v4372_v24  ;;  %v4423_v24 = vld [vmem:[%s5742_s4 + $0x140] sm:$0xff]  }
  0x71   :  { %4044 = vmatprep.subr.bf16.mxu0 %v4374_v25  ;;  %v4422_v25 = vld [vmem:[%s5742_s4 + $0xb8] sm:$0xff]  }
  0x72   :  { %4065 = vmatpush3.bf16.msra.mxu1 %v4373_v26  ;;  %v4424_v26 = vld [vmem:[%s5742_s4 + $0x1c0] sm:$0xff]  }
  0x73   :  { %4066 = vmatprep.subr.bf16.mxu1 %v4375_v27  ;;  %v4425_v27 = vld [vmem:[%s5742_s4 + $0x100] sm:$0xff]  }
  0x74   :  { %4045 = vmatpush3.bf16.msra.mxu0 %v4376_v28  ;;  %v4427_v28 = vld [vmem:[%s5742_s4 + $0x148] sm:$0xff]  }
  0x75   :  { %4046 = vmatprep.subr.bf16.mxu0 %v4378_v29  ;;  %v4426_v29 = vld [vmem:[%s5742_s4 + $0x180] sm:$0xff]  }
  0x76   :  { %4067 = vmatpush3.bf16.msra.mxu1 %v4377_v30  ;;  %v4428_v30 = vld [vmem:[%s5742_s4 + $0x1c8] sm:$0xff]  }
  0x77   :  { %4068 = vmatprep.subr.bf16.mxu1 %v4379_v31  ;;  %v4429_v31 = vld [vmem:[%s5742_s4 + $0x108] sm:$0xff]  }
  0x78   :  { %4047 = vmatpush3.bf16.msra.mxu0 %v4380_v32  ;;  %v4431_v32 = vld [vmem:[%s5742_s4 + $0x150] sm:$0xff]  }
  0x79   :  { %4048 = vmatprep.subr.bf16.mxu0 %v4382_v34  ;;  %v4432_v34 = vld [vmem:[%s5742_s4 + $0x1d0] sm:$0xff]  }
  0x7a   :  { %4069 = vmatpush3.bf16.msra.mxu1 %v4381_v35  ;;  %v4436_v35 = vld [vmem:[%s5742_s4 + $0x1d8] sm:$0xff]  }
  0x7b   :  { %4070 = vmatprep.subr.bf16.mxu1 %v4383_v36  ;;  %v4437_v36 = vld [vmem:[%s5742_s4 + $0x118] sm:$0xff]  }
  0x7c   :  { %4049 = vmatpush3.bf16.msra.mxu0 %v4384_v37  ;;  %v4439_v37 = vld [vmem:[%s5742_s4 + $0x160] sm:$0xff]  }
  0x7d   :  { %4050 = vmatprep.subr.bf16.mxu0 %v4386_v38  ;;  %v4438_v38 = vld [vmem:[%s5742_s4 + $0x198] sm:$0xff]  }
  0x7e   :  { %4071 = vmatpush3.bf16.msra.mxu1 %v4385_v39  ;;  %v4440_v39 = vld [vmem:[%s5742_s4 + $0x1e0] sm:$0xff]  }
  0x7f   :  { %4072 = vmatprep.subr.bf16.mxu1 %v4387_v40  ;;  %v4441_v40 = vld [vmem:[%s5742_s4 + $0x120] sm:$0xff]  }
  0x80   :  { %4051 = vmatpush3.bf16.msra.mxu0 %v4388_v42  ;;  %v4443_v42 = vld [vmem:[%s5742_s4 + $0x168] sm:$0xff]  }
  0x81   :  { %4080 = vmatprep.subr.bf16.mxu0 %v4391_v44  ;;  %v4442_v44 = vld [vmem:[%s5742_s4 + $0x1a0] sm:$0xff]  }
  0x82   :  { %4073 = vmatpush3.bf16.msra.mxu1 %v4389_v46  ;;  %v4444_v46 = vld [vmem:[%s5742_s4 + $0x1e8] sm:$0xff]  }
  0x83   :  { %1457 = vmatmul.mubr.bf16.vlgmr.msra.gmra.mrb[12].mxu0 %v5115_v43  ;;  %4102 = vmatprep.subr.bf16.mxu1 %v4392_v48  ;;  %v4445_v48 = vld [vmem:[%s5742_s4 + $0x128] sm:$0xff]  }
  0x84   :  { %4081 = vmatpush3.bf16.msra.mxu0 %v4393_v41  ;;  %2567 = vmatprep.mubr.bf16.mxu0 %v4765_v47  ;;  %v4401_v47 = vld [vmem:[%s5742_s4 + $0x10] sm:$0xff]  }
  0x85   :  { %1497 = vmatmul.mubr.bf16.vlgmr.msra.gmra.mrb[12].mxu1 %v5131_v51  ;;  %4082 = vmatprep.subr.bf16.mxu0 %v4395_v53  ;;  %v4447_v41 = vld [vmem:[%s5742_s4 + $0x170] sm:$0xff]   ;;  %v4446_v53 = vld [vmem:[%s5742_s4 + $0x1a8] sm:$0xff]  }
  0x86   :  { %4103 = vmatpush3.bf16.msra.mxu1 %v4394_v54  ;;  %2607 = vmatprep.mubr.bf16.mxu1 %v4783_v52  ;;  %v4402_v52 = vld [vmem:[%s5742_s4 + $0x90] sm:$0xff]  }
  0x87   :  { %4104 = vmatprep.subr.bf16.mxu1 %v4396_v56  ;;  %v4448_v54 = vld [vmem:[%s5742_s4 + $0x1f0] sm:$0xff]  }
  0x88   :  { %4083 = vmatpush3.bf16.msra.mxu0 %v4397_v57  ;;  %v4449_v56 = vld [vmem:[%s5742_s4 + $0x130] sm:$0xff]   ;;  %v4451_v57 = vld [vmem:[%s5742_s4 + $0x178] sm:$0xff]  }
  0x89   :  { %4084 = vmatprep.subr.bf16.mxu0 %v4399_v58  ;;  %v4450_v58 = vld [vmem:[%s5742_s4 + $0x1b0] sm:$0xff]  }
  0x8a   :  { %4105 = vmatpush3.bf16.msra.mxu1 %v4398_v59  ;;  %v4452_v59 = vld [vmem:[%s5742_s4 + $0x1f8] sm:$0xff]  }
  0x8b   :  { %4106 = vmatprep.subr.bf16.mxu1 %v4400_v60  ;;  %v4453_v60 = vld [vmem:[%s5742_s4 + $0x138] sm:$0xff]  }
  0x8c   :  { %4085 = vmatpush3.bf16.msra.mxu0 %v4401_v47  ;;  %v4455_v47 = vld [vmem:[%s5742_s4 + $0x240] sm:$0xff]  }
  0x8d   :  { %4086 = vmatprep.subr.bf16.mxu0 %v4403_v61  ;;  %v4454_v61 = vld [vmem:[%s5742_s4 + $0x1b8] sm:$0xff]  }
  0x8e   :  { %4107 = vmatpush3.bf16.msra.mxu1 %v4402_v52  ;;  %v4456_v52 = vld [vmem:[%s5742_s4 + $0x2c0] sm:$0xff]  }
  0x8f   :  { %4108 = vmatprep.subr.bf16.mxu1 %v4404_v63  ;;  %v4457_v63 = vld [vmem:[%s5742_s4 + $0x200] sm:$0xff]  }
  0x90   :  { %4087 = vmatpush3.bf16.msra.mxu0 %v4405_v0  ;;  %v4459_v0 = vld [vmem:[%s5742_s4 + $0x248] sm:$0xff]  }
  0x91   :  { %4088 = vmatprep.subr.bf16.mxu0 %v4407_v1  ;;  %v4458_v1 = vld [vmem:[%s5742_s4 + $0x280] sm:$0xff]  }
  0x92   :  { %4109 = vmatpush3.bf16.msra.mxu1 %v4406_v4  ;;  %v4460_v4 = vld [vmem:[%s5742_s4 + $0x2c8] sm:$0xff]  }
  0x93   :  { %4110 = vmatprep.subr.bf16.mxu1 %v4408_v5  ;;  %v4461_v5 = vld [vmem:[%s5742_s4 + $0x208] sm:$0xff]  }
  0x94   :  { %4089 = vmatpush3.bf16.msra.mxu0 %v4409_v7  ;;  %v4463_v7 = vld [vmem:[%s5742_s4 + $0x250] sm:$0xff]  }
  0x95   :  { %4090 = vmatprep.subr.bf16.mxu0 %v4411_v8  ;;  %v4464_v8 = vld [vmem:[%s5742_s4 + $0x2d0] sm:$0xff]  }
  0x96   :  { %4111 = vmatpush3.bf16.msra.mxu1 %v4410_v10  ;;  %v4468_v10 = vld [vmem:[%s5742_s4 + $0x2d8] sm:$0xff]  }
  0x97   :  { %4112 = vmatprep.subr.bf16.mxu1 %v4412_v11  ;;  %v4469_v11 = vld [vmem:[%s5742_s4 + $0x218] sm:$0xff]  }
  0x98   :  { %4091 = vmatpush3.bf16.msra.mxu0 %v4413_v13  ;;  %v4471_v13 = vld [vmem:[%s5742_s4 + $0x260] sm:$0xff]  }
  0x99   :  { %4092 = vmatprep.subr.bf16.mxu0 %v4415_v14  ;;  %v4470_v14 = vld [vmem:[%s5742_s4 + $0x298] sm:$0xff]  }
  0x9a   :  { %4113 = vmatpush3.bf16.msra.mxu1 %v4414_v15  ;;  %v4472_v15 = vld [vmem:[%s5742_s4 + $0x2e0] sm:$0xff]  }
  0x9b   :  { %4114 = vmatprep.subr.bf16.mxu1 %v4416_v16  ;;  %v4473_v16 = vld [vmem:[%s5742_s4 + $0x220] sm:$0xff]  }
  0x9c   :  { %4093 = vmatpush3.bf16.msra.mxu0 %v4417_v18  ;;  %v4475_v18 = vld [vmem:[%s5742_s4 + $0x268] sm:$0xff]  }
  0x9d   :  { %4094 = vmatprep.subr.bf16.mxu0 %v4419_v19  ;;  %v4474_v19 = vld [vmem:[%s5742_s4 + $0x2a0] sm:$0xff]  }
  0x9e   :  { %4115 = vmatpush3.bf16.msra.mxu1 %v4418_v20  ;;  %v4476_v20 = vld [vmem:[%s5742_s4 + $0x2e8] sm:$0xff]  }
  0x9f   :  { %4116 = vmatprep.subr.bf16.mxu1 %v4420_v21  ;;  %v4477_v21 = vld [vmem:[%s5742_s4 + $0x228] sm:$0xff]  }
  0xa0   :  { %4095 = vmatpush3.bf16.msra.mxu0 %v4421_v23  ;;  %v4479_v23 = vld [vmem:[%s5742_s4 + $0x270] sm:$0xff]  }
  0xa1   :  { %4124 = vmatprep.subr.bf16.mxu0 %v4423_v24  ;;  %v4478_v24 = vld [vmem:[%s5742_s4 + $0x2a8] sm:$0xff]  }
  0xa2   :  { %4117 = vmatpush3.bf16.msra.mxu1 %v4422_v25  ;;  %v4480_v25 = vld [vmem:[%s5742_s4 + $0x2f0] sm:$0xff]  }
  0xa3   :  { %2568 = vmatmul.mubr.bf16.vlgmr.msra.gmra.mrb[16].mxu0 %v4760_v45  ;;  %4146 = vmatprep.subr.bf16.mxu1 %v4424_v26  ;;  %v4430_v45 = vld [vmem:[%s5742_s4 + $0x188] sm:$0xff]   ;;  %v4481_v26 = vld [vmem:[%s5742_s4 + $0x230] sm:$0xff]  }
  0xa4   :  { %4125 = vmatpush3.bf16.msra.mxu0 %v4425_v27  ;;  %2647 = vmatprep.mubr.bf16.mxu0 %v4771_v49  ;;  %v4433_v49 = vld [vmem:[%s5742_s4 + $0x110] sm:$0xff]   ;;  %v4483_v27 = vld [vmem:[%s5742_s4 + $0x278] sm:$0xff]  }
  0xa5   :  { %2608 = vmatmul.mubr.bf16.vlgmr.msra.gmra.mrb[16].mxu1 %v4775_v50  ;;  %4126 = vmatprep.subr.bf16.mxu0 %v4427_v28  ;;  %v4435_v50 = vld [vmem:[%s5742_s4 + $0x158] sm:$0xff]   ;;  %v4482_v28 = vld [vmem:[%s5742_s4 + $0x2b0] sm:$0xff]  }
  0xa6   :  { %4147 = vmatpush3.bf16.msra.mxu1 %v4426_v29  ;;  %2687 = vmatprep.mubr.bf16.mxu1 %v4794_v55  ;;  %v4434_v55 = vld [vmem:[%s5742_s4 + $0x190] sm:$0xff]   ;;  %v4484_v29 = vld [vmem:[%s5742_s4 + $0x2f8] sm:$0xff]  }
  0xa7   :  { %4148 = vmatprep.subr.bf16.mxu1 %v4428_v30  ;;  %v4485_v30 = vld [vmem:[%s5742_s4 + $0x238] sm:$0xff]  }
  0xa8   :  { %4127 = vmatpush3.bf16.msra.mxu0 %v4429_v31  ;;  %v4487_v31 = vld [vmem:[%s5742_s4 + $0x340] sm:$0xff]  }
  0xa9   :  { %4128 = vmatprep.subr.bf16.mxu0 %v4431_v32  ;;  %v4486_v32 = vld [vmem:[%s5742_s4 + $0x2b8] sm:$0xff]  }
  0xaa   :  { %4149 = vmatpush3.bf16.msra.mxu1 %v4430_v45  ;;  %v4488_v45 = vld [vmem:[%s5742_s4 + $0x3c0] sm:$0xff]  }
  0xab   :  { %4150 = vmatprep.subr.bf16.mxu1 %v4432_v34  ;;  %v4489_v34 = vld [vmem:[%s5742_s4 + $0x300] sm:$0xff]  }
  0xac   :  { %4129 = vmatpush3.bf16.msra.mxu0 %v4433_v49  ;;  %v4491_v49 = vld [vmem:[%s5742_s4 + $0x348] sm:$0xff]  }
  0xad   :  { %4130 = vmatprep.subr.bf16.mxu0 %v4435_v50  ;;  %v4490_v50 = vld [vmem:[%s5742_s4 + $0x380] sm:$0xff]  }
  0xae   :  { %4151 = vmatpush3.bf16.msra.mxu1 %v4434_v55  ;;  %v4492_v55 = vld [vmem:[%s5742_s4 + $0x3c8] sm:$0xff]  }
  0xaf   :  { %4152 = vmatprep.subr.bf16.mxu1 %v4436_v35  ;;  %v4493_v35 = vld [vmem:[%s5742_s4 + $0x308] sm:$0xff]  }
  0xb0   :  { %4131 = vmatpush3.bf16.msra.mxu0 %v4437_v36  ;;  %v4495_v36 = vld [vmem:[%s5742_s4 + $0x350] sm:$0xff]  }
  0xb1   :  { %4132 = vmatprep.subr.bf16.mxu0 %v4439_v37  ;;  %v4496_v37 = vld [vmem:[%s5742_s4 + $0x3d0] sm:$0xff]  }
  0xb2   :  { %4153 = vmatpush3.bf16.msra.mxu1 %v4438_v38  ;;  %v4500_v38 = vld [vmem:[%s5742_s4 + $0x3d8] sm:$0xff]  }
  0xb3   :  { %4154 = vmatprep.subr.bf16.mxu1 %v4440_v39  ;;  %v4501_v39 = vld [vmem:[%s5742_s4 + $0x318] sm:$0xff]  }
  0xb4   :  { %4133 = vmatpush3.bf16.msra.mxu0 %v4441_v40  ;;  %v4503_v40 = vld [vmem:[%s5742_s4 + $0x360] sm:$0xff]  }
  0xb5   :  { %4134 = vmatprep.subr.bf16.mxu0 %v4443_v42  ;;  %v4502_v42 = vld [vmem:[%s5742_s4 + $0x398] sm:$0xff]  }
  0xb6   :  { %4155 = vmatpush3.bf16.msra.mxu1 %v4442_v44  ;;  %v4504_v44 = vld [vmem:[%s5742_s4 + $0x3e0] sm:$0xff]  }
  0xb7   :  { %4156 = vmatprep.subr.bf16.mxu1 %v4444_v46  ;;  %v4505_v46 = vld [vmem:[%s5742_s4 + $0x320] sm:$0xff]  }
  0xb8   :  { %4135 = vmatpush3.bf16.msra.mxu0 %v4445_v48  ;;  %v4507_v48 = vld [vmem:[%s5742_s4 + $0x368] sm:$0xff]  }
  0xb9   :  { %4136 = vmatprep.subr.bf16.mxu0 %v4447_v41  ;;  %v4506_v41 = vld [vmem:[%s5742_s4 + $0x3a0] sm:$0xff]  }
  0xba   :  { %4157 = vmatpush3.bf16.msra.mxu1 %v4446_v53  ;;  %v4508_v53 = vld [vmem:[%s5742_s4 + $0x3e8] sm:$0xff]  }
  0xbb   :  { %4158 = vmatprep.subr.bf16.mxu1 %v4448_v54  ;;  %v4509_v54 = vld [vmem:[%s5742_s4 + $0x328] sm:$0xff]  }
  0xbc   :  { %4137 = vmatpush3.bf16.msra.mxu0 %v4449_v56  ;;  %v4511_v56 = vld [vmem:[%s5742_s4 + $0x370] sm:$0xff]  }
  0xbd   :  { %4138 = vmatprep.subr.bf16.mxu0 %v4451_v57 }
  0xbe   :  { %4159 = vmatpush3.bf16.msra.mxu1 %v4450_v58  ;;  %v4510_v58 = vld [vmem:[%s5742_s4 + $0x3a8] sm:$0xff]  }
  0xbf   :  { %4160 = vmatprep.subr.bf16.mxu1 %v4452_v59 }
  0xc0   :  { %4139 = vmatpush3.bf16.msra.mxu0 %v4453_v60 }
  0xc1   :  { %4168 = vmatprep.subr.bf16.mxu0 %v4455_v47 }
  0xc2   :  { %4161 = vmatpush3.bf16.msra.mxu1 %v4454_v61 }
  0xc3   :  { %2648 = vmatmul.mubr.bf16.vlgmr.msra.gmra.mrb[20].mxu0 %v4877_v17  ;;  %4190 = vmatprep.subr.bf16.mxu1 %v4456_v52  ;;  %v4462_v17 = vld [vmem:[%s5742_s4 + $0x288] sm:$0xff]  }
  0xc4   :  { %4169 = vmatpush3.bf16.msra.mxu0 %v4457_v63  ;;  %2727 = vmatprep.mubr.bf16.mxu0 %v4983_v62  ;;  %v4467_v62 = vld [vmem:[%s5742_s4 + $0x258] sm:$0xff]  }
  0xc5   :  { %2688 = vmatmul.mubr.bf16.vlgmr.msra.gmra.mrb[20].mxu1 %v4893_v22  ;;  %4170 = vmatprep.subr.bf16.mxu0 %v4459_v0  ;;  %v4465_v22 = vld [vmem:[%s5742_s4 + $0x210] sm:$0xff]  }
  0xc6   :  { %4191 = vmatpush3.bf16.msra.mxu1 %v4458_v1  ;;  %2767 = vmatprep.mubr.bf16.mxu1 %v4996_v2  ;;  %v4466_v2 = vld [vmem:[%s5742_s4 + $0x290] sm:$0xff]  }
  0xc7   :  { %4192 = vmatprep.subr.bf16.mxu1 %v4460_v4 }
  0xc8   :  { %4171 = vmatpush3.bf16.msra.mxu0 %v4461_v5 }
  0xc9   :  { %4172 = vmatprep.subr.bf16.mxu0 %v4463_v7 }
  0xca   :  { %4193 = vmatpush3.bf16.msra.mxu1 %v4462_v17 }
  0xcb   :  { %4194 = vmatprep.subr.bf16.mxu1 %v4464_v8 }
  0xcc   :  { %4173 = vmatpush3.bf16.msra.mxu0 %v4465_v22 }
  0xcd   :  { %4174 = vmatprep.subr.bf16.mxu0 %v4467_v62 }
  0xce   :  { %4195 = vmatpush3.bf16.msra.mxu1 %v4466_v2 }
  0xcf   :  { %4196 = vmatprep.subr.bf16.mxu1 %v4468_v10 }
  0xd0   :  { %4175 = vmatpush3.bf16.msra.mxu0 %v4469_v11 }
  0xd1   :  { %4176 = vmatprep.subr.bf16.mxu0 %v4471_v13 }
  0xd2   :  { %4197 = vmatpush3.bf16.msra.mxu1 %v4470_v14 }
  0xd3   :  { %4198 = vmatprep.subr.bf16.mxu1 %v4472_v15 }
  0xd4   :  { %4177 = vmatpush3.bf16.msra.mxu0 %v4473_v16 }
  0xd5   :  { %4178 = vmatprep.subr.bf16.mxu0 %v4475_v18 }
  0xd6   :  { %4199 = vmatpush3.bf16.msra.mxu1 %v4474_v19 }
  0xd7   :  { %4200 = vmatprep.subr.bf16.mxu1 %v4476_v20 }
  0xd8   :  { %4179 = vmatpush3.bf16.msra.mxu0 %v4477_v21 }
  0xd9   :  { %4180 = vmatprep.subr.bf16.mxu0 %v4479_v23 }
  0xda   :  { %4201 = vmatpush3.bf16.msra.mxu1 %v4478_v24 }
  0xdb   :  { %4202 = vmatprep.subr.bf16.mxu1 %v4480_v25 }
  0xdc   :  { %4181 = vmatpush3.bf16.msra.mxu0 %v4481_v26 }
  0xdd   :  { %4182 = vmatprep.subr.bf16.mxu0 %v4483_v27 }
  0xde   :  { %4203 = vmatpush3.bf16.msra.mxu1 %v4482_v28 }
  0xdf   :  { %4204 = vmatprep.subr.bf16.mxu1 %v4484_v29 }
  0xe0   :  { %4183 = vmatpush3.bf16.msra.mxu0 %v4485_v30 }
  0xe1   :  { %4212 = vmatprep.subr.bf16.mxu0 %v4487_v31 }
  0xe2   :  { %4205 = vmatpush3.bf16.msra.mxu1 %v4486_v32 }
  0xe3   :  { %2728 = vmatmul.mubr.bf16.vlgmr.msra.gmra.mrb[24].mxu0 %v4999_v3  ;;  %4234 = vmatprep.subr.bf16.mxu1 %v4488_v45  ;;  %v4494_v3 = vld [vmem:[%s5742_s4 + $0x388] sm:$0xff]  }
  0xe4   :  { %4213 = vmatpush3.bf16.msra.mxu0 %v4489_v34  ;;  %2807 = vmatprep.mubr.bf16.mxu0 %v5009_v6  ;;  %v4497_v6 = vld [vmem:[%s5742_s4 + $0x310] sm:$0xff]  }
  0xe5   :  { %2768 = vmatmul.mubr.bf16.vlgmr.msra.gmra.mrb[24].mxu1 %v5019_v9  ;;  %4214 = vmatprep.subr.bf16.mxu0 %v4491_v49  ;;  %v4499_v9 = vld [vmem:[%s5742_s4 + $0x358] sm:$0xff]  }
  0xe6   :  { %4235 = vmatpush3.bf16.msra.mxu1 %v4490_v50  ;;  %2847 = vmatprep.mubr.bf16.mxu1 %v5029_v12  ;;  %v4498_v12 = vld [vmem:[%s5742_s4 + $0x390] sm:$0xff]  }
  0xe7   :  { %4236 = vmatprep.subr.bf16.mxu1 %v4492_v55 }
  0xe8   :  { %4215 = vmatpush3.bf16.msra.mxu0 %v4493_v35 }
  0xe9   :  { %4216 = vmatprep.subr.bf16.mxu0 %v4495_v36 }
  0xea   :  { %4237 = vmatpush3.bf16.msra.mxu1 %v4494_v3 }
  0xeb   :  { %4238 = vmatprep.subr.bf16.mxu1 %v4496_v37 }
  0xec   :  { %4217 = vmatpush3.bf16.msra.mxu0 %v4497_v6 }
  0xed   :  { %4218 = vmatprep.subr.bf16.mxu0 %v4499_v9 }
  0xee   :  { %4239 = vmatpush3.bf16.msra.mxu1 %v4498_v12 }
  0xef   :  { %4240 = vmatprep.subr.bf16.mxu1 %v4500_v38 }
  0xf0   :  { %4219 = vmatpush3.bf16.msra.mxu0 %v4501_v39 }
  0xf1   :  { %4220 = vmatprep.subr.bf16.mxu0 %v4503_v40 }
  0xf2   :  { %4241 = vmatpush3.bf16.msra.mxu1 %v4502_v42 }
  0xf3   :  { %4242 = vmatprep.subr.bf16.mxu1 %v4504_v44 }
  0xf4   :  { %4221 = vmatpush3.bf16.msra.mxu0 %v4505_v46 }
  0xf5   :  { %4222 = vmatprep.subr.bf16.mxu0 %v4507_v48 }
  0xf6   :  { %4243 = vmatpush3.bf16.msra.mxu1 %v4506_v41  ;;  %v3920_v57 = vpop.f32.mrb[0].mxu0 }
  0xf7   :  { %17 = vsyncpa [#allocation5], 0  ;;  %v3598_v59 = vld [vmem:[%s5741_s3] ss:$0 sm:$0xff]  ;;  %v3921_v60 = vpop.f32.mrb[1].mxu0  ;;  %4244 = vmatprep.subr.bf16.mxu1 %v4508_v53  ;;  %v4512_v47 = vld [vmem:[%s5742_s4 + $0x3f0] sm:$0xff]  }
  0xf8   :  { %v3942_v61 = vpop.f32.mrb[0].mxu1  ;;  %v3922_v52 = vadd.f32 %v3921_v60, %v3920_v57  ;;  %v3923_v63 = vpop.f32.mrb[2].mxu0  ;;  %4223 = vmatpush3.bf16.msra.mxu0 %v4509_v54  ;;  %v4513_v0 = vld [vmem:[%s5742_s4 + $0x330] sm:$0xff]   ;;  %v4515_v5 = vld [vmem:[%s5742_s4 + $0x378] sm:$0xff]   ;;  %vm3471_vm0 = vcmask 156672   ;;  %v2862_v46 = vld [vmem:[%s5744_s6] sm:$0xff] }
  0xf9   :  { %v3943_v1 = vpop.f32.mrb[1].mxu1  ;;  %v3924_v4 = vpop.f32.mrb[3].mxu0  ;;  %4224 = vmatprep.subr.bf16.mxu0 %v4511_v56  ;;  %v4514_v22 = vld [vmem:[%s5742_s4 + $0x3b0] sm:$0xff]   ;;  %v4516_v2 = vld [vmem:[%s5742_s4 + $0x3f8] sm:$0xff]   ;;  %v2870_v48 = vld [vmem:[%s5744_s6 + $0x40] sm:$0xff]  ;;  %vm3094_vm1 = vcmask 1041408  }
  0xfa   :  { %v1219_v7 = vadd.f32 %v3922_v52, %v3598_v59  ;;  %v3944_v17 = vadd.f32 %v3943_v1, %v3942_v61  ;;  %v3945_v8 = vpop.f32.mrb[2].mxu1  ;;  %4245 = vmatpush3.bf16.msra.mxu1 %v4510_v58  ;;  %v4517_v11 = vld [vmem:[%s5742_s4 + $0x338] sm:$0xff]   ;;  %v2863_v41 = vld [vmem:[%s5744_s6 + $0x8] sm:$0xff]  ;;  %v3857_v53 = vcombine.high %v2862_v46, %v2870_v48  ;;  %v3856_v56 = vcombine.low %v2862_v46, %v2870_v48  ;;  %v2878_v59 = vld [vmem:[%s5744_s6 + $0x80] sm:$0x33]  ;;  %s4588_s23 = smov [#allocation4]  }
  0xfb   :  { %v3946_v62 = vpop.f32.mrb[3].mxu1  ;;  %4246 = vmatprep.subr.bf16.mxu1 %v4512_v47  ;;  %v4518_v13 = vld [vmem:[%s5742_s4 + $0x3b8] sm:$0xff]   ;;  %v2871_v54 = vld [vmem:[%s5744_s6 + $0x48] sm:$0xff]  ;;  %v3873_v47 = vcombine.high %v2878_v59, %v2878_v59  ;;  %v3872_v52 = vcombine.low %v2878_v59, %v2878_v59  ;;  %v5558_v4 = vld [vmem:[%s5744_s6 + $0x10] sm:$0xff]  ;;  %vm3090_vm2 = vcmask 162816  }
  0xfc   :  { %v1259_v10 = vadd.f32 %v3944_v17, %v1219_v7  ;;  %4225 = vmatpush3.bf16.msra.mxu0 %v4513_v0  ;;  %v3858_v57 = vcombine.low %v2863_v41, %v2871_v54  ;;  %v3859_v58 = vcombine.high %v2863_v41, %v2871_v54  ;;  %v2879_v60 = vld [vmem:[%s5744_s6 + $0x88] sm:$0x33]  ;;  %v5568_v7 = vld [vmem:[%s5744_s6 + $0x18] sm:$0xff]  ;;  %v4586_v17 = vmov 0  }
  0xfd   :  { %4226 = vmatprep.subr.bf16.mxu0 %v4515_v5  ;;  %v3875_v61 = vcombine.high %v2879_v60, %v2879_v60  ;;  %v3874_v63 = vcombine.low %v2879_v60, %v2879_v60  ;;  %v3096_v0 = vsel %vm3094_vm1, %v3872_v52, 0  ;;  %v5563_v5 = vld [vmem:[%s5744_s6 + $0x50] sm:$0xff]  ;;  %v5578_v62 = vld [vmem:[%s5744_s6 + $0x58] sm:$0xff] }
  0xfe   :  { %4247 = vmatpush3.bf16.msra.mxu1 %v4514_v22  ;;  %v3860_v8 = vcombine.low %v5558_v4, %v5563_v5  ;;  %v3861_v22 = vcombine.high %v5558_v4, %v5563_v5  ;;  %v2883_v4 = vld [vmem:[%s5744_s6 + $0xa8] sm:$0x33] }
  0xff   :  { %4248 = vmatprep.subr.bf16.mxu1 %v4516_v2  ;;  %v3102_v1 = vsel %vm3094_vm1, %v3874_v63, 0  ;;  %v3862_v2 = vcombine.low %v5568_v7, %v5578_v62 }
 0x100   :  { %4227 = vmatpush3.bf16.msra.mxu0 %v4517_v11 }
 0x101   :  { %3143 = vmatprep.subr.bf16.mxu0 %v3857_v53 }
 0x102   :  { %4249 = vmatpush3.bf16.msra.mxu1 %v4518_v13  ;;  %v3727_v13 = vld [vmem:[%s5743_s5] ss:$0 sm:$0xff] }
 0x103   :  { %2808 = vmatmul.mubr.bf16.vlgmr.msra.gmra.mrb[28].mxu0 %v5115_v43  ;;  %3184 = vmatprep.subr.bf16.mxu1 %v3859_v58 }
 0x104   :  { %3144 = vmatpush1.bf16.msra.mxu0 %v3856_v56  ;;  %3175 = vmatprep.mubr.bf16.mxu0 %v4586_v17 }
 0x105   :  { %2848 = vmatmul.mubr.bf16.vlgmr.msra.gmra.mrb[28].mxu1 %v5131_v51  ;;  %3888 = vmatprep.subr.msk.bf16.mxu0 %vm3094_vm1, %v3873_v47 }
 0x106   :  { %3185 = vmatpush1.bf16.msra.mxu1 %v3858_v57  ;;  %3216 = vmatprep.mubr.bf16.mxu1 %v4586_v17 }
 0x107   :  { %3890 = vmatprep.subr.msk.bf16.mxu1 %vm3094_vm1, %v3875_v61 }
 0x108   :  { %3146 = vmatpush1.bf16.msra.mxu0 %v3096_v0  ;;  %v2855_v0 = vld [vmem:[%s5739_s1] sm:$0x3]  ;;  %s3582_s1 = sshll.u32 %s4588_s23, 4  ;;  %s3583_s1 = int_to_ptr.vmem [resolvable:$true] %s3582_s1 }
 0x109   :  { %3225 = vmatprep.subr.bf16.mxu0 %v3861_v22 }
 0x10a   :  { %3187 = vmatpush1.bf16.msra.mxu1 %v3102_v1 }
 0x116   :  { %v3964_v14 = vpop.f32.mrb[4].mxu0 }
 0x117   :  { %v3965_v15 = vpop.f32.mrb[5].mxu0  ;;  %v3986_v16 = vpop.f32.mrb[4].mxu1 }
 0x118   :  { %v3966_v18 = vadd.f32 %v3965_v15, %v3964_v14  ;;  %v3967_v19 = vpop.f32.mrb[6].mxu0  ;;  %v3987_v20 = vpop.f32.mrb[5].mxu1 }
 0x119   :  { %v3968_v21 = vpop.f32.mrb[7].mxu0  ;;  %v3988_v24 = vadd.f32 %v3987_v20, %v3986_v16  ;;  %v3989_v25 = vpop.f32.mrb[6].mxu1 }
 0x11a   :  { %v1299_v23 = vadd.f32 %v3966_v18, %v1259_v10  ;;  %v3990_v26 = vpop.f32.mrb[7].mxu1  ;;  %v3863_v10 = vcombine.high %v5568_v7, %v5578_v62  ;;  %v3883_v62 = vcombine.high %v2883_v4, %v2883_v4 }
 0x11c   :  { %v1339_v27 = vadd.f32 %v3988_v24, %v1299_v23  ;;  %3266 = vmatprep.subr.bf16.mxu1 %v3863_v10  ;;  %v2880_v10 = vld [vmem:[%s5744_s6 + $0x90] sm:$0x33] }
 0x136   :  { %v4008_v28 = vpop.f32.mrb[8].mxu0 }
 0x137   :  { %v4009_v29 = vpop.f32.mrb[9].mxu0 }
 0x138   :  { %v4030_v30 = vpop.f32.mrb[8].mxu1  ;;  %v4010_v31 = vadd.f32 %v4009_v29, %v4008_v28  ;;  %v4011_v32 = vpop.f32.mrb[10].mxu0 }
 0x139   :  { %v4031_v43 = vpop.f32.mrb[9].mxu1  ;;  %v4012_v45 = vpop.f32.mrb[11].mxu0 }
 0x13a   :  { %v1379_v51 = vadd.f32 %v4010_v31, %v1339_v27  ;;  %v4032_v34 = vadd.f32 %v4031_v43, %v4030_v30  ;;  %v4033_v49 = vpop.f32.mrb[10].mxu1 }
 0x13b   :  { %v4034_v50 = vpop.f32.mrb[11].mxu1 }
 0x13c   :  { %v1419_v55 = vadd.f32 %v4032_v34, %v1379_v51 }
 0x156   :  { %v4052_v35 = vpop.f32.mrb[12].mxu0 }
 0x157   :  { %v4053_v36 = vpop.f32.mrb[13].mxu0 }
 0x158   :  { %v4074_v3 = vpop.f32.mrb[12].mxu1  ;;  %v4054_v37 = vadd.f32 %v4053_v36, %v4052_v35  ;;  %v4055_v6 = vpop.f32.mrb[14].mxu0 }
 0x159   :  { %v4075_v9 = vpop.f32.mrb[13].mxu1  ;;  %v4056_v12 = vpop.f32.mrb[15].mxu0 }
 0x15a   :  { %v1459_v38 = vadd.f32 %v4054_v37, %v1419_v55  ;;  %v4076_v39 = vadd.f32 %v4075_v9, %v4074_v3  ;;  %v4077_v40 = vpop.f32.mrb[14].mxu1 }
 0x15b   :  { %v4078_v42 = vpop.f32.mrb[15].mxu1 }
 0x15c   :  { %v5529_v44 = vadd.f32 %v4076_v39, %v1459_v38 }
 0x15e   :  { %3472 = vst.msk [vmem:[#allocation2] sm:$0x3] %vm3471_vm0, %v5529_v44 }
 0x176   :  { %v4096_v11 = vpop.f32.mrb[16].mxu0 }
 0x177   :  { %v4097_v14 = vpop.f32.mrb[17].mxu0 }
 0x178   :  { %v4118_v15 = vpop.f32.mrb[16].mxu1  ;;  %v4098_v16 = vadd.f32 %v4097_v14, %v4096_v11  ;;  %v4099_v18 = vpop.f32.mrb[18].mxu0  ;;  %v2881_v11 = vld [vmem:[%s5744_s6 + $0x98] sm:$0x33]  ;;  %v3877_v14 = vcombine.high %v2880_v10, %v2880_v10 }
 0x179   :  { %v4119_v19 = vpop.f32.mrb[17].mxu1  ;;  %v4100_v20 = vpop.f32.mrb[19].mxu0  ;;  %v3876_v18 = vcombine.low %v2880_v10, %v2880_v10 }
 0x17a   :  { %v2570_v21 = vadd.f32 %v4098_v16, %v3727_v13  ;;  %v4120_v23 = vadd.f32 %v4119_v19, %v4118_v15  ;;  %v4121_v24 = vpop.f32.mrb[18].mxu1  ;;  %v3879_v16 = vcombine.high %v2881_v11, %v2881_v11  ;;  %v3878_v19 = vcombine.low %v2881_v11, %v2881_v11  ;;  %v2866_v20 = vld [vmem:[%s5744_s6 + $0x20] sm:$0xff] }
 0x17b   :  { %v4122_v25 = vpop.f32.mrb[19].mxu1  ;;  %v3108_v24 = vsel %vm3094_vm1, %v3876_v18, 0 }
 0x17c   :  { %v2610_v26 = vadd.f32 %v4120_v23, %v2570_v21  ;;  %v2874_v21 = vld [vmem:[%s5744_s6 + $0x60] sm:$0xff]  ;;  %v2867_v23 = vld [vmem:[%s5744_s6 + $0x28] sm:$0xff]  ;;  %v3114_v25 = vsel %vm3094_vm1, %v3878_v19, 0 }
 0x17d   :  { %v3864_v5 = vcombine.low %v2866_v20, %v2874_v21 }
 0x196   :  { %v4140_v27 = vpop.f32.mrb[20].mxu0 }
 0x197   :  { %v4141_v28 = vpop.f32.mrb[21].mxu0 }
 0x198   :  { %v4162_v29 = vpop.f32.mrb[20].mxu1  ;;  %v4142_v30 = vadd.f32 %v4141_v28, %v4140_v27  ;;  %v4143_v31 = vpop.f32.mrb[22].mxu0  ;;  %v2882_v28 = vld [vmem:[%s5744_s6 + $0xa0] sm:$0x33] }
 0x199   :  { %v4163_v32 = vpop.f32.mrb[21].mxu1  ;;  %v4144_v43 = vpop.f32.mrb[23].mxu0  ;;  %v2876_v31 = vld [vmem:[%s5744_s6 + $0x70] sm:$0xff] }
 0x19a   :  { %v2650_v45 = vadd.f32 %v4142_v30, %v2610_v26  ;;  %v4164_v51 = vadd.f32 %v4163_v32, %v4162_v29  ;;  %v4165_v34 = vpop.f32.mrb[22].mxu1  ;;  %v3865_v26 = vcombine.high %v2866_v20, %v2874_v21  ;;  %v3882_v29 = vcombine.low %v2883_v4, %v2883_v4  ;;  %v2868_v30 = vld [vmem:[%s5744_s6 + $0x30] sm:$0xff]  ;;  %v2869_v32 = vld [vmem:[%s5744_s6 + $0x38] sm:$0xff] }
 0x19b   :  { %v4166_v49 = vpop.f32.mrb[23].mxu1  ;;  %v2877_v43 = vld [vmem:[%s5744_s6 + $0x78] sm:$0xff]  ;;  %v3869_v34 = vcombine.high %v2868_v30, %v2876_v31 }
 0x19c   :  { %v2690_v50 = vadd.f32 %v4164_v51, %v2650_v45  ;;  %v3126_v51 = vsel %vm3094_vm1, %v3882_v29, 0  ;;  %v3871_v49 = vcombine.high %v2869_v32, %v2877_v43 }
 0x1b6   :  { %v4184_v55 = vpop.f32.mrb[24].mxu0 }
 0x1b7   :  { %v4185_v35 = vpop.f32.mrb[25].mxu0 }
 0x1b8   :  { %v4206_v36 = vpop.f32.mrb[24].mxu1  ;;  %v4186_v3 = vadd.f32 %v4185_v35, %v4184_v55  ;;  %v4187_v37 = vpop.f32.mrb[26].mxu0  ;;  %v2885_v55 = vld [vmem:[%s5744_s6 + $0xb8] sm:$0x33]  ;;  %v3868_v35 = vcombine.low %v2868_v30, %v2876_v31 }
 0x1b9   :  { %v4207_v6 = vpop.f32.mrb[25].mxu1  ;;  %v4188_v9 = vpop.f32.mrb[27].mxu0  ;;  %v3887_v37 = vcombine.high %v2885_v55, %v2885_v55 }
 0x1ba   :  { %v2730_v12 = vadd.f32 %v4186_v3, %v2690_v50  ;;  %v4208_v38 = vadd.f32 %v4207_v6, %v4206_v36  ;;  %v4209_v39 = vpop.f32.mrb[26].mxu1  ;;  %v2884_v50 = vld [vmem:[%s5744_s6 + $0xb0] sm:$0x33]  ;;  %v3870_v36 = vcombine.low %v2869_v32, %v2877_v43  ;;  %v3886_v9 = vcombine.low %v2885_v55, %v2885_v55 }
 0x1bb   :  { %v4210_v40 = vpop.f32.mrb[27].mxu1  ;;  %v3885_v3 = vcombine.high %v2884_v50, %v2884_v50  ;;  %v3884_v6 = vcombine.low %v2884_v50, %v2884_v50 }
 0x1bc   :  { %v2770_v42 = vadd.f32 %v4208_v38, %v2730_v12  ;;  %v3138_v38 = vsel %vm3094_vm1, %v3886_v9, 0 }
 0x1bd   :  { %v3132_v12 = vsel %vm3094_vm1, %v3884_v6, 0 }
 0x1d6   :  { %v4228_v46 = vpop.f32.mrb[28].mxu0 }
 0x1d7   :  { %v4229_v48 = vpop.f32.mrb[29].mxu0 }
 0x1d8   :  { %v4250_v41 = vpop.f32.mrb[28].mxu1  ;;  %v4230_v53 = vadd.f32 %v4229_v48, %v4228_v46  ;;  %v4231_v54 = vpop.f32.mrb[30].mxu0 }
 0x1d9   :  { %v4251_v56 = vpop.f32.mrb[29].mxu1  ;;  %v4232_v57 = vpop.f32.mrb[31].mxu0 }
 0x1da   :  { %v2810_v58 = vadd.f32 %v4230_v53, %v2770_v42  ;;  %v4252_v59 = vadd.f32 %v4251_v56, %v4250_v41  ;;  %v4253_v60 = vpop.f32.mrb[30].mxu1 }
 0x1db   :  { %v4254_v47 = vpop.f32.mrb[31].mxu1 }
 0x1dc   :  { %v2850_v61 = vadd.f32 %v4252_v59, %v2810_v58 }
 0x1de   :  { %v2856_v52 = vmul.f32 0.5, %v2850_v61  ;;  %3473 = vst.msk [vmem:[#allocation4] sm:$0x3] %vm3471_vm0, %v2850_v61 }
 0x1e0   :  { %v2857_v63 = vmul.f32 1.442695, %v2856_v52 }
 0x1e2   :  { %4535 = vpow2.f32 %v2857_v63 }
 0x1ec   :  { %v4536_v1 = vpop.eup %4535 }
 0x1ed   :  { %v2859_v22 = vmul.f32 %v4536_v1, %v2855_v0 }
 0x1ef   :  { %v2860_v13 = vadd.f32 %v2859_v22, %v5529_v44  ;;  %v2875_v44 = vld [vmem:[%s5744_s6 + $0x68] sm:$0xff]  ;;  %s4587_s6 = smov [#allocation2]  }
 0x1f0   :  { %v3867_v27 = vcombine.high %v2867_v23, %v2875_v44  ;;  %v3866_v7 = vcombine.low %v2867_v23, %v2875_v44  ;;  %s3572_s22 = sshll.u32 %s4587_s6, 4  ;;  %s3573_s22 = int_to_ptr.vmem [resolvable:$true] %s3572_s22 }
 0x1f1   :  { %v5599_v15 = vpack.c.bf16 %v2860_v13, %v2860_v13  ;;  %s4537_s24 = scalar_lea.vmem %s3573_s22, 32  ;;  %p4542_p1 = scmp.lt.s32.totalorder %s3573_s22, %s3573_s22 }
 0x1f2   :  { %p4538_p0 = scmp.ne.s32.totalorder %s3573_s22, %s4537_s24  ;;  %p4543_p2 = scmp.lt.s32.totalorder %s4537_s24, %s4537_s24 }
 0x1f3   :  { %3889 = vmatmul.mubr.msk.bf16.vlgmr.msra.gmra.mrb[32].mxu0 %vm3090_vm2, %v5599_v15  ;;  %3891 = vmatmul.mubr.msk.bf16.vlgmr.msra.gmra.mrb[32].mxu1 %vm3090_vm2, %v5599_v15 }
 0x1f4   :  { %3226 = vmatpush1.bf16.msra.mxu0 %v3860_v8  ;;  %3267 = vmatpush1.bf16.msra.mxu1 %v3862_v2  ;;  %v3881_v8 = vcombine.high %v2882_v28, %v2882_v28  ;;  %v3880_v2 = vcombine.low %v2882_v28, %v2882_v28  ;;  %p4544_p3 = por %p4543_p2, %p4542_p1 }
 0x1f5   :  { %3892 = vmatprep.subr.msk.bf16.mxu0 %vm3094_vm1, %v3877_v14  ;;  %3894 = vmatprep.subr.msk.bf16.mxu1 %vm3094_vm1, %v3879_v16 }
 0x1f6   :  { %3257 = vmatprep.mubr.bf16.mxu0 %v4586_v17  ;;  %3298 = vmatprep.mubr.bf16.mxu1 %v4586_v17  ;;  %v3120_v45 = vsel %vm3094_vm1, %v3880_v2, 0  ;;  %p4545_p4 = pnand %p4544_p3, %p4538_p0 }
 0x1f8   :  { %3228 = vmatpush1.bf16.msra.mxu0 %v3108_v24  ;;  %3269 = vmatpush1.bf16.msra.mxu1 %v3114_v25 }
 0x1f9   :  { %3307 = vmatprep.subr.bf16.mxu0 %v3865_v26  ;;  %3348 = vmatprep.subr.bf16.mxu1 %v3867_v27 }
 0x1fb   :  { %3893 = vmatmul.mubr.msk.bf16.vlgmr.msra.gmra.mrb[36].mxu0 %vm3090_vm2, %v5599_v15  ;;  %3895 = vmatmul.mubr.msk.bf16.vlgmr.msra.gmra.mrb[36].mxu1 %vm3090_vm2, %v5599_v15 }
 0x1fc   :  { %3308 = vmatpush1.bf16.msra.mxu0 %v3864_v5  ;;  %3349 = vmatpush1.bf16.msra.mxu1 %v3866_v7 }
 0x1fd   :  { %3896 = vmatprep.subr.msk.bf16.mxu0 %vm3094_vm1, %v3881_v8  ;;  %3898 = vmatprep.subr.msk.bf16.mxu1 %vm3094_vm1, %v3883_v62 }
 0x1fe   :  { %3339 = vmatprep.mubr.bf16.mxu0 %v4586_v17  ;;  %3380 = vmatprep.mubr.bf16.mxu1 %v4586_v17 }
 0x200   :  { %3310 = vmatpush1.bf16.msra.mxu0 %v3120_v45  ;;  %3351 = vmatpush1.bf16.msra.mxu1 %v3126_v51 }
 0x201   :  { %3389 = vmatprep.subr.bf16.mxu0 %v3869_v34  ;;  %3430 = vmatprep.subr.bf16.mxu1 %v3871_v49 }
 0x203   :  { %3897 = vmatmul.mubr.msk.bf16.vlgmr.msra.gmra.mrb[40].mxu0 %vm3090_vm2, %v5599_v15  ;;  %3899 = vmatmul.mubr.msk.bf16.vlgmr.msra.gmra.mrb[40].mxu1 %vm3090_vm2, %v5599_v15 }
 0x204   :  { %3390 = vmatpush1.bf16.msra.mxu0 %v3868_v35  ;;  %3431 = vmatpush1.bf16.msra.mxu1 %v3870_v36 }
 0x205   :  { %3900 = vmatprep.subr.msk.bf16.mxu0 %vm3094_vm1, %v3885_v3  ;;  %3902 = vmatprep.subr.msk.bf16.mxu1 %vm3094_vm1, %v3887_v37 }
 0x206   :  { %3421 = vmatprep.mubr.bf16.mxu0 %v4586_v17  ;;  %3462 = vmatprep.mubr.bf16.mxu1 %v4586_v17 }
 0x208   :  { %3392 = vmatpush1.bf16.msra.mxu0 %v3132_v12  ;;  %3433 = vmatpush1.bf16.msra.mxu1 %v3138_v38 }
 0x20b   :  { %3901 = vmatmul.mubr.msk.bf16.vlgmr.msra.gmra.mrb[44].mxu0 %vm3090_vm2, %v5599_v15  ;;  %3903 = vmatmul.mubr.msk.bf16.vlgmr.msra.gmra.mrb[44].mxu1 %vm3090_vm2, %v5599_v15 }
 0x20c   :  { %4548 = shalt.err (!%p4545_p4)
}
 0x20d   :  { %s4549_s27 = scalar_lea.hbm %s5746_s8, 32 }
 0x20e   :  { %p4550_p5 = scmp.ne.s32.totalorder %s5746_s8, %s4549_s27  ;;  %p4553_p6 = scmp.lt.u32.totalorder %s4549_s27, %s5746_s8 }
 0x210   :  { %p4555_p7 = pnand %p4553_p6, %p4550_p5 }
 0x212   :  { %4558 = shalt.err (!%p4555_p7)
}
 0x213   :  { %3575 = dma.vmem_to_hbm [thread:$0]  %s3573_s22, 32, %s5746_s8, [#allocation3]  }
 0x214   :  { %s4559_s14 = scalar_lea.vmem %s3583_s1, 32  ;;  %p4564_p9 = scmp.lt.s32.totalorder %s3583_s1, %s3583_s1 }
 0x215   :  { %p4560_p8 = scmp.ne.s32.totalorder %s3583_s1, %s4559_s14  ;;  %p4565_p10 = scmp.lt.s32.totalorder %s4559_s14, %s4559_s14 }
 0x217   :  { %p4566_p11 = por %p4565_p10, %p4564_p9 }
 0x219   :  { %p4567_p12 = pnand %p4566_p11, %p4560_p8 }
 0x21b   :  { %4570 = shalt.err (!%p4567_p12)
}
 0x21c   :  { %s4571_s3 = scalar_lea.hbm %s5747_s9, 32 }
 0x21d   :  { %p4572_p13 = scmp.ne.s32.totalorder %s5747_s9, %s4571_s3  ;;  %p4575_p0 = scmp.lt.u32.totalorder %s4571_s3, %s5747_s9 }
 0x21f   :  { %p4577_p1 = pnand %p4575_p0, %p4572_p13 }
 0x221   :  { %4580 = shalt.err (!%p4577_p1)
}
 0x222   :  { %3585 = dma.vmem_to_hbm [thread:$0]  %s3583_s1, 32, %s5747_s9, [#allocation5]   ;;  %v4589_v17 = vmov 1983009808   ;;  %v2892_v40 = vsub.s32 0, %v4741_v33  ;;  %v2900_v42 = vsub.s32 2, %v4741_v33 }
 0x223   :  { %v3493_v39 = vunpack.c.l.s4 %v4589_v17  ;;  %v2886_v46 = vld [vmem:[%s5745_s7] sm:$0xff]  ;;  %v2896_v48 = vsub.s32 1, %v4741_v33  ;;  %v2904_v41 = vsub.s32 3, %v4741_v33  ;;  %v2908_v1 = vsub.s32 4, %v4741_v33  ;;  %v2887_v32 = vld [vmem:[%s5745_s7 + $0x8] sm:$0xff] }
 0x224   :  { %v2893_v54 = vrot.slane %v2886_v46, %v2892_v40  ;;  %v2901_v56 = vrot.slane %v2886_v46, %v2900_v42  ;;  %v2916_v22 = vsub.s32 6, %v4741_v33  ;;  %v2912_v15 = vsub.s32 5, %v4741_v33 }
 0x225   :  { %v3494_v53 = vunpack.c.0.s8 %v3493_v39  ;;  %v2897_v57 = vrot.slane %v2886_v46, %v2896_v48  ;;  %v2905_v58 = vrot.slane %v2886_v46, %v2904_v41  ;;  %v2920_v16 = vsub.s32 7, %v4741_v33 }
 0x226   :  { %v2909_v23 = vrot.slane %v2886_v46, %v2908_v1  ;;  %v2917_v44 = vrot.slane %v2886_v46, %v2916_v22  ;;  %v2913_v26 = vrot.slane %v2886_v46, %v2912_v15  ;;  %v2925_v49 = vrot.slane %v2887_v32, %v2892_v40 }
 0x227   :  { %v5709_v47 = vsub.s32 %v3494_v53, %v4741_v33  ;;  %v2921_v27 = vrot.slane %v2886_v46, %v2920_v16  ;;  %v2933_v50 = vrot.slane %v2887_v32, %v2900_v42  ;;  %v2929_v36 = vrot.slane %v2887_v32, %v2896_v48 }
 0x228   :  { %v2937_v3 = vrot.slane %v2887_v32, %v2904_v41  ;;  %v2941_v41 = vrot.slane %v2887_v32, %v2908_v1 }
 0x2c6   :  { %v3177_v59 = vpop.f32.mrb[32].mxu0  ;;  %v3218_v60 = vpop.f32.mrb[32].mxu1 }
 0x2c7   :  { %v3178_v61 = vadd.f32 %v3177_v59, %v2893_v54  ;;  %v3219_v52 = vadd.f32 %v3218_v60, %v2901_v56  ;;  %v3179_v63 = vpop.f32.mrb[33].mxu0  ;;  %v3220_v0 = vpop.f32.mrb[33].mxu1 }
 0x2c8   :  { %v3180_v10 = vadd.f32 %v3179_v63, %v2897_v57  ;;  %v3221_v11 = vadd.f32 %v3220_v0, %v2905_v58  ;;  %v3181_v13 = vpop.f32.mrb[34].mxu0  ;;  %v3222_v14 = vpop.f32.mrb[34].mxu1  ;;  %v2949_v58 = vrot.slane %v2887_v32, %v2916_v22 }
 0x2c9   :  { %v3182_v18 = vpop.f32.mrb[35].mxu0  ;;  %v3223_v19 = vpop.f32.mrb[35].mxu1 }
 0x2ca   :  { %v3490_v20 = vcombine.low %v3178_v61, %v3180_v10  ;;  %v3491_v21 = vcombine.low %v3219_v52, %v3221_v11  ;;  %v2945_v61 = vrot.slane %v2887_v32, %v2912_v15  ;;  %v2953_v52 = vrot.slane %v2887_v32, %v2920_v16 }
 0x2cc   :  { %v3498_v24 = vrot.slane %v3490_v20, %v5709_v47  ;;  %v3505_v25 = vrot.slane %v3491_v21, %v5709_v47 }
 0x2ce   :  { %v3506_v28 = vcombine.low %v3498_v24, %v3505_v25  ;;  %v3259_v4 = vpop.f32.mrb[36].mxu0  ;;  %v3300_v5 = vpop.f32.mrb[36].mxu1 }
 0x2cf   :  { %v3260_v7 = vadd.f32 %v3259_v4, %v2909_v23  ;;  %v3301_v8 = vadd.f32 %v3300_v5, %v2917_v44  ;;  %v3261_v62 = vpop.f32.mrb[37].mxu0  ;;  %v3302_v2 = vpop.f32.mrb[37].mxu1 }
 0x2d0   :  { %3562 = vst [vmem:[%s5748_s10] sm:$0xff] %v3506_v28  ;;  %v3262_v33 = vadd.f32 %v3261_v62, %v2913_v26  ;;  %v3303_v29 = vadd.f32 %v3302_v2, %v2921_v27  ;;  %v3263_v30 = vpop.f32.mrb[38].mxu0  ;;  %v3304_v31 = vpop.f32.mrb[38].mxu1 }
 0x2d1   :  { %v3264_v43 = vpop.f32.mrb[39].mxu0  ;;  %v3305_v45 = vpop.f32.mrb[39].mxu1 }
 0x2d2   :  { %v3507_v51 = vcombine.low %v3260_v7, %v3262_v33  ;;  %v3508_v34 = vcombine.low %v3301_v8, %v3303_v29 }
 0x2d4   :  { %v3515_v55 = vrot.slane %v3507_v51, %v5709_v47  ;;  %v3522_v35 = vrot.slane %v3508_v34, %v5709_v47 }
 0x2d6   :  { %v3523_v37 = vcombine.low %v3515_v55, %v3522_v35  ;;  %v3341_v6 = vpop.f32.mrb[40].mxu0  ;;  %v3382_v9 = vpop.f32.mrb[40].mxu1 }
 0x2d7   :  { %v3342_v12 = vadd.f32 %v3341_v6, %v2925_v49  ;;  %v3383_v38 = vadd.f32 %v3382_v9, %v2933_v50  ;;  %v3343_v17 = vpop.f32.mrb[41].mxu0  ;;  %v3384_v39 = vpop.f32.mrb[41].mxu1 }
 0x2d8   :  { %3563 = vst [vmem:[%s5748_s10 + $0x8] sm:$0xff] %v3523_v37  ;;  %v3344_v46 = vadd.f32 %v3343_v17, %v2929_v36  ;;  %v3385_v40 = vadd.f32 %v3384_v39, %v2937_v3  ;;  %v3345_v42 = vpop.f32.mrb[42].mxu0  ;;  %v3386_v53 = vpop.f32.mrb[42].mxu1 }
 0x2d9   :  { %v3346_v54 = vpop.f32.mrb[43].mxu0  ;;  %v3387_v56 = vpop.f32.mrb[43].mxu1 }
 0x2da   :  { %v3524_v57 = vcombine.low %v3342_v12, %v3344_v46  ;;  %v3525_v48 = vcombine.low %v3383_v38, %v3385_v40 }
 0x2dc   :  { %v3532_v59 = vrot.slane %v3524_v57, %v5709_v47  ;;  %v3539_v60 = vrot.slane %v3525_v48, %v5709_v47 }
 0x2de   :  { %v3540_v63 = vcombine.low %v3532_v59, %v3539_v60  ;;  %v3423_v0 = vpop.f32.mrb[44].mxu0  ;;  %v3464_v10 = vpop.f32.mrb[44].mxu1 }
 0x2df   :  { %v3424_v11 = vadd.f32 %v3423_v0, %v2941_v41  ;;  %v3465_v13 = vadd.f32 %v3464_v10, %v2949_v58  ;;  %v3425_v14 = vpop.f32.mrb[45].mxu0  ;;  %v3466_v18 = vpop.f32.mrb[45].mxu1 }
 0x2e0   :  { %3564 = vst [vmem:[%s5748_s10 + $0x10] sm:$0xff] %v3540_v63  ;;  %v3426_v19 = vadd.f32 %v3425_v14, %v2945_v61  ;;  %v3467_v1 = vadd.f32 %v3466_v18, %v2953_v52  ;;  %v3427_v22 = vpop.f32.mrb[46].mxu0  ;;  %v3468_v20 = vpop.f32.mrb[46].mxu1 }
 0x2e1   :  { %v3428_v21 = vpop.f32.mrb[47].mxu0  ;;  %v3469_v23 = vpop.f32.mrb[47].mxu1 }
 0x2e2   :  { %v3541_v44 = vcombine.low %v3424_v11, %v3426_v19  ;;  %v3542_v15 = vcombine.low %v3465_v13, %v3467_v1 }
 0x2e4   :  { %v3549_v16 = vrot.slane %v3541_v44, %v5709_v47  ;;  %v3556_v24 = vrot.slane %v3542_v15, %v5709_v47 }
 0x2e6   :  { %v3557_v25 = vcombine.low %v3549_v16, %v3556_v24 }
 0x2e8   :  { %3565 = vst [vmem:[%s5748_s10 + $0x18] sm:$0xff] %v3557_v25 }
 0x2e9   :  { %4581 = dma.done.wait [#allocation3], 32  }
 0x2ea   :  { %4582 = vsyncadd [#allocation3], 4294967264 }
 0x2eb   :  { %4583 = dma.done.wait [#allocation5], 32  }
 0x2ec   :  { %4584 = vsyncadd [#allocation5], 4294967264 }
 0x2ed   :  { %3596 = vsyncpa [#allocation3], 1 }
 0x2ee   :  { %3597 = vsyncpa [#allocation5], 1 }

// kernel: convvae_forward.12
= control target key start
LH: loop header
LB: loop body
LE: loop exit
PB: predicated region body
PF: predicated region fallthrough
CT: control target
= control target key end

     0   :  { %vm558_vm0 = vcmask 523264   ;;  %s1614_s1 = inlined_call_operand.vmem [shape: bf16[576,128], index: 1, kind: input, shape index: {}]   ;;  %s1615_s0 = inlined_call_operand.vmem [shape: bf16[128,576], index: 0, kind: input, shape index: {}]   ;;  %s1616_s2 = inlined_call_operand.vmem [shape: f32[1,128], index: 2, kind: input, shape index: {}]   ;;  %s1617_s3 = inlined_call_operand.vmem [shape: f32[128,128], index: 3, kind: output, shape index: {}]  }
   0x1   :  { %v1167_v0 = vld [vmem:[%s1614_s1 + $0x40] sm:$0xff]   ;;  %v1171_v4 = vld [vmem:[%s1614_s1 + $0x48] sm:$0xff]   ;;  %v1175_v8 = vld [vmem:[%s1614_s1 + $0x50] sm:$0xff]  }
   0x2   :  { %v1168_v1 = vld [vmem:[%s1614_s1 + $0xc0] sm:$0xff]   ;;  %995 = vmatprep.subr.bf16.mxu0 %v1167_v0  ;;  %v1172_v5 = vld [vmem:[%s1614_s1 + $0xc8] sm:$0xff]   ;;  %v1176_v9 = vld [vmem:[%s1614_s1 + $0xd0] sm:$0xff]  }
   0x3   :  { %v1169_v2 = vld [vmem:[%s1614_s1] sm:$0xff]   ;;  %1059 = vmatprep.subr.bf16.mxu1 %v1168_v1  ;;  %v1173_v6 = vld [vmem:[%s1614_s1 + $0x8] sm:$0xff]   ;;  %v1177_v10 = vld [vmem:[%s1614_s1 + $0x10] sm:$0xff]  }
   0x4   :  { %v1170_v3 = vld [vmem:[%s1614_s1 + $0x80] sm:$0xff]   ;;  %996 = vmatpush3.bf16.msra.mxu0 %v1169_v2  ;;  %v1174_v7 = vld [vmem:[%s1614_s1 + $0x88] sm:$0xff]   ;;  %v1178_v11 = vld [vmem:[%s1614_s1 + $0x90] sm:$0xff]  }
   0x5   :  { %1060 = vmatpush3.bf16.msra.mxu1 %v1170_v3  ;;  %997 = vmatprep.subr.bf16.mxu0 %v1171_v4  ;;  %v1179_v12 = vld [vmem:[%s1614_s1 + $0x58] sm:$0xff]   ;;  %v1183_v16 = vld [vmem:[%s1614_s1 + $0x60] sm:$0xff]   ;;  %v1187_v20 = vld [vmem:[%s1614_s1 + $0x68] sm:$0xff]  }
   0x6   :  { %1061 = vmatprep.subr.bf16.mxu1 %v1172_v5  ;;  %v1180_v13 = vld [vmem:[%s1614_s1 + $0xd8] sm:$0xff]   ;;  %v1184_v17 = vld [vmem:[%s1614_s1 + $0xe0] sm:$0xff]   ;;  %v1188_v21 = vld [vmem:[%s1614_s1 + $0xe8] sm:$0xff]  }
   0x7   :  { %v1181_v14 = vld [vmem:[%s1614_s1 + $0x18] sm:$0xff]   ;;  %v1185_v18 = vld [vmem:[%s1614_s1 + $0x20] sm:$0xff]   ;;  %v1189_v22 = vld [vmem:[%s1614_s1 + $0x28] sm:$0xff]  }
   0x8   :  { %998 = vmatpush3.bf16.msra.mxu0 %v1173_v6  ;;  %v1182_v15 = vld [vmem:[%s1614_s1 + $0x98] sm:$0xff]   ;;  %v1186_v19 = vld [vmem:[%s1614_s1 + $0xa0] sm:$0xff]   ;;  %v1190_v23 = vld [vmem:[%s1614_s1 + $0xa8] sm:$0xff]  }
   0x9   :  { %1062 = vmatpush3.bf16.msra.mxu1 %v1174_v7  ;;  %999 = vmatprep.subr.bf16.mxu0 %v1175_v8  ;;  %v1191_v24 = vld [vmem:[%s1614_s1 + $0x70] sm:$0xff]   ;;  %v1195_v28 = vld [vmem:[%s1614_s1 + $0x78] sm:$0xff]   ;;  %v1204_v35 = vld [vmem:[%s1615_s0 + $0xc] ss:$20 sps:$4 sm:$0xff]  }
   0xa   :  { %1063 = vmatprep.subr.bf16.mxu1 %v1176_v9  ;;  %v1192_v25 = vld [vmem:[%s1614_s1 + $0xf0] sm:$0xff]   ;;  %v1196_v29 = vld [vmem:[%s1614_s1 + $0xf8] sm:$0xff]   ;;  %v1205_v36 = vld [vmem:[%s1614_s1 + $0x100] sm:$0xff]   ;;  %712 = vmatprep.mubr.bf16.mxu1 %v1204_v35 }
   0xb   :  { %v1193_v26 = vld [vmem:[%s1614_s1 + $0x30] sm:$0xff]   ;;  %v1197_v30 = vld [vmem:[%s1614_s1 + $0x38] sm:$0xff]   ;;  %v1206_v37 = vld [vmem:[%s1615_s0 + $0x2c] ss:$20 sps:$4 sm:$0xff]  }
   0xc   :  { %1000 = vmatpush3.bf16.msra.mxu0 %v1177_v10  ;;  %v1194_v27 = vld [vmem:[%s1614_s1 + $0xb0] sm:$0xff]   ;;  %v1198_v31 = vld [vmem:[%s1614_s1 + $0xb8] sm:$0xff]   ;;  %v1218_v42 = vld [vmem:[%s1614_s1 + $0x108] sm:$0xff]  }
   0xd   :  { %1064 = vmatpush3.bf16.msra.mxu1 %v1178_v11  ;;  %1001 = vmatprep.subr.bf16.mxu0 %v1179_v12  ;;  %v1199_v32 = vld [vmem:[%s1615_s0] ss:$20 sps:$4 sm:$0xff]   ;;  %v1201_v33 = vld [vmem:[%s1615_s0 + $0x4] ss:$20 sps:$4 sm:$0xff]   ;;  %v1202_v34 = vld [vmem:[%s1615_s0 + $0x8] ss:$20 sps:$4 sm:$0xff]  }
   0xe   :  { %1065 = vmatprep.subr.bf16.mxu1 %v1180_v13  ;;  %615 = vmatprep.mubr.bf16.mxu0 %v1201_v33  ;;  %v1208_v38 = vld [vmem:[%s1615_s0 + $0x34] ss:$20 sps:$4 sm:$0xff]   ;;  %v1211_v40 = vld [vmem:[%s1615_s0 + $0x30] ss:$20 sps:$4 sm:$0xff]   ;;  %v1217_v45 = vld [vmem:[%s1615_s0 + $0x58] ss:$20 sps:$4 sm:$0xff]  }
   0xf   :  { %v1210_v39 = vld [vmem:[%s1615_s0 + $0x28] ss:$20 sps:$4 sm:$0xff]   ;;  %v1216_v44 = vld [vmem:[%s1615_s0 + $0x50] ss:$20 sps:$4 sm:$0xff]   ;;  %v1223_v50 = vld [vmem:[%s1615_s0 + $0x78] ss:$20 sps:$4 sm:$0xff]  }
  0x10   :  { %1002 = vmatpush3.bf16.msra.mxu0 %v1181_v14  ;;  %v1212_v41 = vld [vmem:[%s1615_s0 + $0x54] ss:$20 sps:$4 sm:$0xff]   ;;  %v1214_v43 = vld [vmem:[%s1615_s0 + $0x5c] ss:$20 sps:$4 sm:$0xff]   ;;  %v1221_v48 = vld [vmem:[%s1615_s0 + $0x84] ss:$20 sps:$4 sm:$0xff]  }
  0x11   :  { %1066 = vmatpush3.bf16.msra.mxu1 %v1182_v15  ;;  %1003 = vmatprep.subr.bf16.mxu0 %v1183_v16  ;;  %v1231_v46 = vld [vmem:[%s1614_s1 + $0x110] sm:$0xff]   ;;  %v1244_v49 = vld [vmem:[%s1614_s1 + $0x118] sm:$0xff]   ;;  %v1227_v53 = vld [vmem:[%s1615_s0 + $0xac] ss:$20 sps:$4 sm:$0xff]  }
  0x12   :  { %1067 = vmatprep.subr.bf16.mxu1 %v1184_v17  ;;  %v1219_v47 = vld [vmem:[%s1615_s0 + $0x7c] ss:$20 sps:$4 sm:$0xff]   ;;  %v1224_v51 = vld [vmem:[%s1615_s0 + $0x80] ss:$20 sps:$4 sm:$0xff]   ;;  %v1225_v52 = vld [vmem:[%s1615_s0 + $0xa4] ss:$20 sps:$4 sm:$0xff]  }
  0x13   :  { %v1229_v54 = vld [vmem:[%s1615_s0 + $0xa0] ss:$20 sps:$4 sm:$0xff]   ;;  %v1230_v55 = vld [vmem:[%s1615_s0 + $0xa8] ss:$20 sps:$4 sm:$0xff]   ;;  %v1237_v59 = vld [vmem:[%s1615_s0 + $0xd0] ss:$20 sps:$4 sm:$0xff]  }
  0x14   :  { %1004 = vmatpush3.bf16.msra.mxu0 %v1185_v18  ;;  %v1232_v56 = vld [vmem:[%s1615_s0 + $0xcc] ss:$20 sps:$4 sm:$0xff]   ;;  %v1234_v57 = vld [vmem:[%s1615_s0 + $0xd4] ss:$20 sps:$4 sm:$0xff]   ;;  %v1240_v61 = vld [vmem:[%s1615_s0 + $0xfc] ss:$20 sps:$4 sm:$0xff]  }
  0x15   :  { %1068 = vmatpush3.bf16.msra.mxu1 %v1186_v19  ;;  %1005 = vmatprep.subr.bf16.mxu0 %v1187_v20  ;;  %v1236_v58 = vld [vmem:[%s1615_s0 + $0xc8] ss:$20 sps:$4 sm:$0xff]   ;;  %v1242_v62 = vld [vmem:[%s1615_s0 + $0xf0] ss:$20 sps:$4 sm:$0xff]   ;;  %v1243_v63 = vld [vmem:[%s1615_s0 + $0xf8] ss:$20 sps:$4 sm:$0xff]  }
  0x16   :  { %1069 = vmatprep.subr.bf16.mxu1 %v1188_v21  ;;  %v1238_v60 = vld [vmem:[%s1615_s0 + $0xf4] ss:$20 sps:$4 sm:$0xff]   ;;  %v1245_v0 = vld [vmem:[%s1615_s0 + $0x11c] ss:$20 sps:$4 sm:$0xff]   ;;  %v1247_v1 = vld [vmem:[%s1615_s0 + $0x124] ss:$20 sps:$4 sm:$0xff]  }
  0x17   :  { %v1249_v2 = vld [vmem:[%s1615_s0 + $0x118] ss:$20 sps:$4 sm:$0xff]   ;;  %v1250_v3 = vld [vmem:[%s1615_s0 + $0x120] ss:$20 sps:$4 sm:$0xff]   ;;  %v1251_v4 = vld [vmem:[%s1615_s0 + $0x10] ss:$20 sps:$4 sm:$0xff]  }
  0x18   :  { %1006 = vmatpush3.bf16.msra.mxu0 %v1189_v22  ;;  %v1252_v5 = vld [vmem:[%s1615_s0 + $0xb0] ss:$20 sps:$4 sm:$0xff]   ;;  %v1253_v6 = vld [vmem:[%s1615_s0 + $0x38] ss:$20 sps:$4 sm:$0xff]   ;;  %v1255_v8 = vld [vmem:[%s1615_s0 + $0x60] ss:$20 sps:$4 sm:$0xff]  }
  0x19   :  { %1070 = vmatpush3.bf16.msra.mxu1 %v1190_v23  ;;  %1007 = vmatprep.subr.bf16.mxu0 %v1191_v24  ;;  %v1254_v7 = vld [vmem:[%s1615_s0 + $0xd8] ss:$20 sps:$4 sm:$0xff]   ;;  %v1256_v9 = vld [vmem:[%s1615_s0 + $0x100] ss:$20 sps:$4 sm:$0xff]   ;;  %v1257_v10 = vld [vmem:[%s1615_s0 + $0x88] ss:$20 sps:$4 sm:$0xff]  }
  0x1a   :  { %1071 = vmatprep.subr.bf16.mxu1 %v1192_v25  ;;  %v1258_v11 = vld [vmem:[%s1615_s0 + $0x128] ss:$20 sps:$4 sm:$0xff]   ;;  %v1518_v14 = vld [vmem:[%s1616_s2] ss:$0 sm:$0xff] }
  0x1c   :  { %1008 = vmatpush3.bf16.msra.mxu0 %v1193_v26 }
  0x1d   :  { %1072 = vmatpush3.bf16.msra.mxu1 %v1194_v27  ;;  %1009 = vmatprep.subr.bf16.mxu0 %v1195_v28 }
  0x1e   :  { %1073 = vmatprep.subr.bf16.mxu1 %v1196_v29 }
  0x20   :  { %1010 = vmatpush3.bf16.msra.mxu0 %v1197_v30 }
  0x21   :  { %1074 = vmatpush3.bf16.msra.mxu1 %v1198_v31  ;;  %1135 = vmatprep.subr.bf16.mxu0 %v1205_v36 }
  0x22   :  { %1159 = vmatprep.subr.bf16.mxu1 %v1205_v36 }
  0x23   :  { %616 = vmatmul.mubr.bf16.vlgmr.msra.gmra.mrb[0].mxu0 %v1199_v32 }
  0x24   :  { %713 = vmatmul.mubr.bf16.vlgmr.msra.gmra.mrb[0].mxu1 %v1202_v34  ;;  %1136 = vmatpush3.bf16.msra.mxu0 %v1205_v36 }
  0x25   :  { %1163 = vmatpush3.bf16.msra.mxu1 %v1205_v36  ;;  %623 = vmatprep.mubr.bf16.mxu0 %v1206_v37 }
  0x26   :  { %720 = vmatprep.mubr.bf16.mxu1 %v1208_v38  ;;  %1137 = vmatprep.subr.bf16.mxu0 %v1218_v42 }
  0x27   :  { %1160 = vmatprep.subr.bf16.mxu1 %v1218_v42 }
  0x28   :  { %1138 = vmatpush3.bf16.msra.mxu0 %v1218_v42 }
  0x29   :  { %1164 = vmatpush3.bf16.msra.mxu1 %v1218_v42  ;;  %1139 = vmatprep.subr.bf16.mxu0 %v1231_v46 }
  0x2a   :  { %1161 = vmatprep.subr.bf16.mxu1 %v1231_v46 }
  0x2b   :  { %624 = vmatmul.mubr.bf16.gmra.mrb[4].mxu0 %v1210_v39 }
  0x2c   :  { %721 = vmatmul.mubr.bf16.gmra.mrb[4].mxu1 %v1211_v40  ;;  %631 = vmatprep.mubr.bf16.mxu0 %v1212_v41 }
  0x2d   :  { %728 = vmatprep.mubr.bf16.mxu1 %v1214_v43  ;;  %1140 = vmatpush3.bf16.msra.mxu0 %v1231_v46 }
  0x2e   :  { %1165 = vmatpush3.bf16.msra.mxu1 %v1231_v46  ;;  %1141 = vmatprep.subr.bf16.mxu0 %v1244_v49 }
  0x2f   :  { %1162 = vmatprep.subr.bf16.mxu1 %v1244_v49 }
  0x31   :  { %1142 = vmatpush3.bf16.msra.mxu0 %v1244_v49 }
  0x32   :  { %1166 = vmatpush3.bf16.msra.mxu1 %v1244_v49 }
  0x33   :  { %632 = vmatmul.mubr.bf16.gmra.mrb[8].mxu0 %v1216_v44 }
  0x34   :  { %729 = vmatmul.mubr.bf16.gmra.mrb[8].mxu1 %v1217_v45  ;;  %639 = vmatprep.mubr.bf16.mxu0 %v1219_v47 }
  0x35   :  { %736 = vmatprep.mubr.bf16.mxu1 %v1221_v48 }
  0x3b   :  { %640 = vmatmul.mubr.bf16.gmra.mrb[12].mxu0 %v1223_v50 }
  0x3c   :  { %737 = vmatmul.mubr.bf16.gmra.mrb[12].mxu1 %v1224_v51  ;;  %647 = vmatprep.mubr.bf16.mxu0 %v1225_v52 }
  0x3d   :  { %744 = vmatprep.mubr.bf16.mxu1 %v1227_v53 }
  0x43   :  { %648 = vmatmul.mubr.bf16.gmra.mrb[16].mxu0 %v1229_v54 }
  0x44   :  { %745 = vmatmul.mubr.bf16.gmra.mrb[16].mxu1 %v1230_v55  ;;  %655 = vmatprep.mubr.bf16.mxu0 %v1232_v56 }
  0x45   :  { %752 = vmatprep.mubr.bf16.mxu1 %v1234_v57 }
  0x4b   :  { %656 = vmatmul.mubr.bf16.gmra.mrb[20].mxu0 %v1236_v58 }
  0x4c   :  { %753 = vmatmul.mubr.bf16.gmra.mrb[20].mxu1 %v1237_v59  ;;  %663 = vmatprep.mubr.bf16.mxu0 %v1238_v60 }
  0x4d   :  { %760 = vmatprep.mubr.bf16.mxu1 %v1240_v61 }
  0x53   :  { %664 = vmatmul.mubr.bf16.gmra.mrb[24].mxu0 %v1242_v62 }
  0x54   :  { %761 = vmatmul.mubr.bf16.gmra.mrb[24].mxu1 %v1243_v63  ;;  %671 = vmatprep.mubr.bf16.mxu0 %v1245_v0 }
  0x55   :  { %768 = vmatprep.mubr.bf16.mxu1 %v1247_v1 }
  0x5b   :  { %672 = vmatmul.mubr.bf16.gmra.mrb[28].mxu0 %v1249_v2 }
  0x5c   :  { %769 = vmatmul.mubr.bf16.gmra.mrb[28].mxu1 %v1250_v3  ;;  %1143 = vmatprep.mubr.msk.bf16.mxu0 %vm558_vm0, %v1251_v4 }
  0x5d   :  { %1151 = vmatprep.mubr.msk.bf16.mxu1 %vm558_vm0, %v1252_v5 }
  0x63   :  { %1144 = vmatmul.mubr.msk.bf16.vlgmr.msra.gmra.mrb[32].mxu0 %vm558_vm0, %v1253_v6 }
  0x64   :  { %1152 = vmatmul.mubr.msk.bf16.vlgmr.msra.gmra.mrb[32].mxu1 %vm558_vm0, %v1254_v7  ;;  %1147 = vmatprep.mubr.msk.bf16.mxu0 %vm558_vm0, %v1255_v8 }
  0x65   :  { %1155 = vmatprep.mubr.msk.bf16.mxu1 %vm558_vm0, %v1256_v9 }
  0x6b   :  { %1148 = vmatmul.mubr.msk.bf16.gmra.mrb[36].mxu0 %vm558_vm0, %v1257_v10 }
  0x6c   :  { %1156 = vmatmul.mubr.msk.bf16.gmra.mrb[36].mxu1 %vm558_vm0, %v1258_v11 }
  0xf6   :  { %v1011_v12 = vpop.f32.mrb[0].mxu0 }
  0xf7   :  { %v1075_v13 = vpop.f32.mrb[0].mxu1  ;;  %v1012_v15 = vpop.f32.mrb[1].mxu0 }
  0xf8   :  { %v1013_v16 = vadd.f32 %v1012_v15, %v1011_v12  ;;  %v1076_v17 = vpop.f32.mrb[1].mxu1  ;;  %v1014_v18 = vpop.f32.mrb[2].mxu0 }
  0xf9   :  { %v1077_v19 = vadd.f32 %v1076_v17, %v1075_v13  ;;  %v1078_v20 = vpop.f32.mrb[2].mxu1  ;;  %v1015_v21 = vpop.f32.mrb[3].mxu0 }
  0xfa   :  { %v618_v22 = vadd.f32 %v1013_v16, %v1518_v14  ;;  %v1016_v23 = vadd.f32 %v1015_v21, %v1014_v18  ;;  %v1079_v24 = vpop.f32.mrb[3].mxu1 }
  0xfb   :  { %v1080_v25 = vadd.f32 %v1079_v24, %v1078_v20 }
  0xfc   :  { %v621_v26 = vadd.f32 %v1016_v23, %v1518_v14  ;;  %v1522_v27 = vadd.f32 %v1077_v19, %v618_v22 }
  0xfe   :  { %v1017_v28 = vpop.f32.mrb[4].mxu0  ;;  %v1524_v29 = vadd.f32 %v1080_v25, %v621_v26 }
  0xff   :  { %v1081_v30 = vpop.f32.mrb[4].mxu1  ;;  %v1018_v31 = vpop.f32.mrb[5].mxu0 }
 0x100   :  { %v1019_v32 = vadd.f32 %v1018_v31, %v1017_v28  ;;  %v1082_v33 = vpop.f32.mrb[5].mxu1  ;;  %v1020_v34 = vpop.f32.mrb[6].mxu0 }
 0x101   :  { %v1083_v35 = vadd.f32 %v1082_v33, %v1081_v30  ;;  %v1084_v36 = vpop.f32.mrb[6].mxu1  ;;  %v1021_v37 = vpop.f32.mrb[7].mxu0 }
 0x102   :  { %v626_v38 = vadd.f32 %v1019_v32, %v1518_v14  ;;  %v1022_v39 = vadd.f32 %v1021_v37, %v1020_v34  ;;  %v1085_v40 = vpop.f32.mrb[7].mxu1 }
 0x103   :  { %v1086_v41 = vadd.f32 %v1085_v40, %v1084_v36 }
 0x104   :  { %v629_v42 = vadd.f32 %v1022_v39, %v1518_v14  ;;  %v1528_v43 = vadd.f32 %v1083_v35, %v626_v38 }
 0x106   :  { %v1023_v44 = vpop.f32.mrb[8].mxu0  ;;  %v1530_v45 = vadd.f32 %v1086_v41, %v629_v42 }
 0x107   :  { %v1087_v46 = vpop.f32.mrb[8].mxu1  ;;  %v1024_v47 = vpop.f32.mrb[9].mxu0 }
 0x108   :  { %v1025_v48 = vadd.f32 %v1024_v47, %v1023_v44  ;;  %v1088_v49 = vpop.f32.mrb[9].mxu1  ;;  %v1026_v50 = vpop.f32.mrb[10].mxu0 }
 0x109   :  { %v1089_v51 = vadd.f32 %v1088_v49, %v1087_v46  ;;  %v1090_v52 = vpop.f32.mrb[10].mxu1  ;;  %v1027_v53 = vpop.f32.mrb[11].mxu0 }
 0x10a   :  { %v634_v54 = vadd.f32 %v1025_v48, %v1518_v14  ;;  %v1028_v55 = vadd.f32 %v1027_v53, %v1026_v50  ;;  %v1091_v56 = vpop.f32.mrb[11].mxu1 }
 0x10b   :  { %v1092_v57 = vadd.f32 %v1091_v56, %v1090_v52 }
 0x10c   :  { %v637_v58 = vadd.f32 %v1028_v55, %v1518_v14  ;;  %v1534_v59 = vadd.f32 %v1089_v51, %v634_v54 }
 0x10e   :  { %v1029_v60 = vpop.f32.mrb[12].mxu0  ;;  %v1536_v61 = vadd.f32 %v1092_v57, %v637_v58 }
 0x10f   :  { %v1093_v62 = vpop.f32.mrb[12].mxu1  ;;  %v1030_v63 = vpop.f32.mrb[13].mxu0 }
 0x110   :  { %v1031_v0 = vadd.f32 %v1030_v63, %v1029_v60  ;;  %v1094_v1 = vpop.f32.mrb[13].mxu1  ;;  %v1032_v2 = vpop.f32.mrb[14].mxu0 }
 0x111   :  { %v1095_v3 = vadd.f32 %v1094_v1, %v1093_v62  ;;  %v1096_v4 = vpop.f32.mrb[14].mxu1  ;;  %v1033_v5 = vpop.f32.mrb[15].mxu0 }
 0x112   :  { %v642_v6 = vadd.f32 %v1031_v0, %v1518_v14  ;;  %v1034_v7 = vadd.f32 %v1033_v5, %v1032_v2  ;;  %v1097_v8 = vpop.f32.mrb[15].mxu1 }
 0x113   :  { %v1098_v9 = vadd.f32 %v1097_v8, %v1096_v4 }
 0x114   :  { %v645_v10 = vadd.f32 %v1034_v7, %v1518_v14  ;;  %v1540_v11 = vadd.f32 %v1095_v3, %v642_v6 }
 0x116   :  { %v1035_v12 = vpop.f32.mrb[16].mxu0  ;;  %v1542_v13 = vadd.f32 %v1098_v9, %v645_v10 }
 0x117   :  { %v1099_v15 = vpop.f32.mrb[16].mxu1  ;;  %v1036_v16 = vpop.f32.mrb[17].mxu0 }
 0x118   :  { %v1037_v17 = vadd.f32 %v1036_v16, %v1035_v12  ;;  %v1100_v18 = vpop.f32.mrb[17].mxu1  ;;  %v1038_v19 = vpop.f32.mrb[18].mxu0 }
 0x119   :  { %v1101_v20 = vadd.f32 %v1100_v18, %v1099_v15  ;;  %v1102_v21 = vpop.f32.mrb[18].mxu1  ;;  %v1039_v22 = vpop.f32.mrb[19].mxu0 }
 0x11a   :  { %v650_v23 = vadd.f32 %v1037_v17, %v1518_v14  ;;  %v1040_v24 = vadd.f32 %v1039_v22, %v1038_v19  ;;  %v1103_v25 = vpop.f32.mrb[19].mxu1 }
 0x11b   :  { %v1104_v26 = vadd.f32 %v1103_v25, %v1102_v21 }
 0x11c   :  { %v653_v28 = vadd.f32 %v1040_v24, %v1518_v14  ;;  %v747_v30 = vadd.f32 %v1101_v20, %v650_v23 }
 0x11e   :  { %v1041_v31 = vpop.f32.mrb[20].mxu0  ;;  %v1546_v32 = vadd.f32 %v1104_v26, %v653_v28 }
 0x11f   :  { %v1105_v33 = vpop.f32.mrb[20].mxu1  ;;  %v1042_v34 = vpop.f32.mrb[21].mxu0 }
 0x120   :  { %v1043_v35 = vadd.f32 %v1042_v34, %v1041_v31  ;;  %v1106_v36 = vpop.f32.mrb[21].mxu1  ;;  %v1044_v37 = vpop.f32.mrb[22].mxu0 }
 0x121   :  { %v1107_v38 = vadd.f32 %v1106_v36, %v1105_v33  ;;  %v1108_v39 = vpop.f32.mrb[22].mxu1  ;;  %v1045_v40 = vpop.f32.mrb[23].mxu0 }
 0x122   :  { %v658_v41 = vadd.f32 %v1043_v35, %v1518_v14  ;;  %v1046_v42 = vadd.f32 %v1045_v40, %v1044_v37  ;;  %v1109_v44 = vpop.f32.mrb[23].mxu1 }
 0x123   :  { %v1110_v46 = vadd.f32 %v1109_v44, %v1108_v39 }
 0x124   :  { %v661_v47 = vadd.f32 %v1046_v42, %v1518_v14  ;;  %v755_v48 = vadd.f32 %v1107_v38, %v658_v41 }
 0x126   :  { %v1047_v49 = vpop.f32.mrb[24].mxu0  ;;  %v758_v50 = vadd.f32 %v1110_v46, %v661_v47 }
 0x127   :  { %v1111_v51 = vpop.f32.mrb[24].mxu1  ;;  %v1048_v52 = vpop.f32.mrb[25].mxu0 }
 0x128   :  { %v1049_v53 = vadd.f32 %v1048_v52, %v1047_v49  ;;  %v1112_v54 = vpop.f32.mrb[25].mxu1  ;;  %v1050_v55 = vpop.f32.mrb[26].mxu0 }
 0x129   :  { %v1113_v56 = vadd.f32 %v1112_v54, %v1111_v51  ;;  %v1114_v57 = vpop.f32.mrb[26].mxu1  ;;  %v1051_v58 = vpop.f32.mrb[27].mxu0 }
 0x12a   :  { %v666_v60 = vadd.f32 %v1049_v53, %v1518_v14  ;;  %v1052_v62 = vadd.f32 %v1051_v58, %v1050_v55  ;;  %v1115_v63 = vpop.f32.mrb[27].mxu1 }
 0x12b   :  { %v1116_v0 = vadd.f32 %v1115_v63, %v1114_v57 }
 0x12c   :  { %v669_v1 = vadd.f32 %v1052_v62, %v1518_v14  ;;  %v763_v2 = vadd.f32 %v1113_v56, %v666_v60 }
 0x12e   :  { %v1053_v3 = vpop.f32.mrb[28].mxu0  ;;  %v1552_v4 = vadd.f32 %v1116_v0, %v669_v1 }
 0x12f   :  { %v1117_v5 = vpop.f32.mrb[28].mxu1  ;;  %v1054_v6 = vpop.f32.mrb[29].mxu0 }
 0x130   :  { %v1055_v7 = vadd.f32 %v1054_v6, %v1053_v3  ;;  %v1118_v8 = vpop.f32.mrb[29].mxu1  ;;  %v1056_v9 = vpop.f32.mrb[30].mxu0 }
 0x131   :  { %v1119_v10 = vadd.f32 %v1118_v8, %v1117_v5  ;;  %v1120_v12 = vpop.f32.mrb[30].mxu1  ;;  %v1057_v15 = vpop.f32.mrb[31].mxu0 }
 0x132   :  { %v674_v16 = vadd.f32 %v1055_v7, %v1518_v14  ;;  %v1058_v17 = vadd.f32 %v1057_v15, %v1056_v9  ;;  %v1121_v18 = vpop.f32.mrb[31].mxu1 }
 0x133   :  { %v1122_v19 = vadd.f32 %v1121_v18, %v1120_v12 }
 0x134   :  { %v677_v20 = vadd.f32 %v1058_v17, %v1518_v14  ;;  %v771_v21 = vadd.f32 %v1119_v10, %v674_v16 }
 0x136   :  { %v1145_v22 = vpop.f32.mrb[32].mxu0  ;;  %v774_v23 = vadd.f32 %v1122_v19, %v677_v20 }
 0x137   :  { %v820_v24 = vadd.f32 %v1145_v22, %v1528_v43  ;;  %v1153_v25 = vpop.f32.mrb[32].mxu1  ;;  %v811_v26 = vpop.f32.mrb[33].mxu0 }
 0x138   :  { %v852_v28 = vadd.f32 %v1153_v25, %v755_v48  ;;  %v812_v31 = vadd.f32 %v811_v26, %v1522_v27  ;;  %v843_v33 = vpop.f32.mrb[33].mxu1  ;;  %v1146_v34 = vpop.f32.mrb[34].mxu0 }
 0x139   :  { %v876_v35 = vmax.f32 %v820_v24, 0.0  ;;  %v844_v36 = vadd.f32 %v843_v33, %v747_v30  ;;  %v823_v37 = vadd.f32 %v1146_v34, %v1530_v45  ;;  %v1154_v38 = vpop.f32.mrb[34].mxu1  ;;  %v814_v39 = vpop.f32.mrb[35].mxu0 }
 0x13a   :  { %v884_v40 = vmax.f32 %v852_v28, 0.0  ;;  %v874_v14 = vmax.f32 %v812_v31, 0.0  ;;  %v855_v41 = vadd.f32 %v1154_v38, %v758_v50  ;;  %v815_v42 = vadd.f32 %v814_v39, %v1524_v29  ;;  %v846_v44 = vpop.f32.mrb[35].mxu1 }
 0x13b   :  { %892 = vst [vmem:[%s1617_s3 + $0x10] sm:$0xff] %v876_v35  ;;  %v882_v43 = vmax.f32 %v844_v36, 0.0  ;;  %v877_v27 = vmax.f32 %v823_v37, 0.0  ;;  %v847_v46 = vadd.f32 %v846_v44, %v1546_v32 }
 0x13c   :  { %900 = vst [vmem:[%s1617_s3 + $0x50] sm:$0xff] %v884_v40  ;;  %890 = vst [vmem:[%s1617_s3] sm:$0xff] %v874_v14  ;;  %v885_v45 = vmax.f32 %v855_v41, 0.0  ;;  %v875_v30 = vmax.f32 %v815_v42, 0.0 }
 0x13d   :  { %898 = vst [vmem:[%s1617_s3 + $0x40] sm:$0xff] %v882_v43  ;;  %893 = vst [vmem:[%s1617_s3 + $0x18] sm:$0xff] %v877_v27  ;;  %v883_v29 = vmax.f32 %v847_v46, 0.0 }
 0x13e   :  { %901 = vst [vmem:[%s1617_s3 + $0x58] sm:$0xff] %v885_v45  ;;  %891 = vst [vmem:[%s1617_s3 + $0x8] sm:$0xff] %v875_v30  ;;  %v1149_v32 = vpop.f32.mrb[36].mxu0 }
 0x13f   :  { %899 = vst [vmem:[%s1617_s3 + $0x48] sm:$0xff] %v883_v29  ;;  %v836_v47 = vadd.f32 %v1149_v32, %v1540_v11  ;;  %v1157_v48 = vpop.f32.mrb[36].mxu1  ;;  %v827_v49 = vpop.f32.mrb[37].mxu0 }
 0x140   :  { %v868_v50 = vadd.f32 %v1157_v48, %v771_v21  ;;  %v828_v51 = vadd.f32 %v827_v49, %v1534_v59  ;;  %v859_v52 = vpop.f32.mrb[37].mxu1  ;;  %v1150_v53 = vpop.f32.mrb[38].mxu0 }
 0x141   :  { %v880_v54 = vmax.f32 %v836_v47, 0.0  ;;  %v860_v55 = vadd.f32 %v859_v52, %v763_v2  ;;  %v839_v56 = vadd.f32 %v1150_v53, %v1542_v13  ;;  %v1158_v57 = vpop.f32.mrb[38].mxu1  ;;  %v830_v58 = vpop.f32.mrb[39].mxu0 }
 0x142   :  { %v888_v60 = vmax.f32 %v868_v50, 0.0  ;;  %v878_v62 = vmax.f32 %v828_v51, 0.0  ;;  %v871_v63 = vadd.f32 %v1158_v57, %v774_v23  ;;  %v831_v0 = vadd.f32 %v830_v58, %v1536_v61  ;;  %v862_v1 = vpop.f32.mrb[39].mxu1 }
 0x143   :  { %896 = vst [vmem:[%s1617_s3 + $0x30] sm:$0xff] %v880_v54  ;;  %v886_v11 = vmax.f32 %v860_v55, 0.0  ;;  %v881_v59 = vmax.f32 %v839_v56, 0.0  ;;  %v863_v3 = vadd.f32 %v862_v1, %v1552_v4 }
 0x144   :  { %904 = vst [vmem:[%s1617_s3 + $0x70] sm:$0xff] %v888_v60  ;;  %894 = vst [vmem:[%s1617_s3 + $0x20] sm:$0xff] %v878_v62  ;;  %v889_v13 = vmax.f32 %v871_v63, 0.0  ;;  %v879_v2 = vmax.f32 %v831_v0, 0.0 }
 0x145   :  { %902 = vst [vmem:[%s1617_s3 + $0x60] sm:$0xff] %v886_v11  ;;  %897 = vst [vmem:[%s1617_s3 + $0x38] sm:$0xff] %v881_v59  ;;  %v887_v61 = vmax.f32 %v863_v3, 0.0 }
 0x146   :  { %905 = vst [vmem:[%s1617_s3 + $0x78] sm:$0xff] %v889_v13  ;;  %895 = vst [vmem:[%s1617_s3 + $0x28] sm:$0xff] %v879_v2 }
 0x147   :  { %903 = vst [vmem:[%s1617_s3 + $0x68] sm:$0xff] %v887_v61 }

// kernel: convvae_forward.13
= control target key start
LH: loop header
LB: loop body
LE: loop exit
PB: predicated region body
PF: predicated region fallthrough
CT: control target
= control target key end

     0   :  { %v2587_v0 = vmov 0   ;;  %vm774_vm0 = vcmask 261120   ;;  %vm1833_vm1 = vcmask 31744   ;;  %s3512_s1 = inlined_call_operand.vmem [shape: bf16[288,4], index: 1, kind: input, shape index: {}]   ;;  %s3513_s0 = inlined_call_operand.vmem [shape: bf16[512,288], index: 0, kind: input, shape index: {}]   ;;  %s3514_s2 = inlined_call_operand.vmem [shape: f32[1,4], index: 2, kind: input, shape index: {}]   ;;  %s3515_s3 = inlined_call_operand.vmem [shape: f32[512,4], index: 3, kind: output, shape index: {}]  }
   0x1   :  { %871 = vmatprep.subr.bf16.mxu0 %v2587_v0  ;;  %2151 = vmatprep.subr.bf16.mxu1 %v2587_v0  ;;  %v2184_v1 = vld [vmem:[%s3512_s1] sm:$0xff]   ;;  %v2185_v2 = vld [vmem:[%s3512_s1 + $0x8] sm:$0xff]   ;;  %v2186_v3 = vld [vmem:[%s3512_s1 + $0x10] sm:$0xff]  }
   0x2   :  { %872 = vmatpush1.bf16.msra.mxu0 %v2184_v1  ;;  %2167 = vmatpush1.bf16.msra.mxu1 %v2184_v1  ;;  %v2187_v4 = vld [vmem:[%s3512_s1 + $0x18] sm:$0xff]   ;;  %v2188_v5 = vld [vmem:[%s3512_s1 + $0x20] sm:$0xff]   ;;  %v2189_v7 = vld [vmem:[%s3512_s1 + $0x28] sm:$0xff]  }
   0x3   :  { %873 = vmatprep.subr.bf16.mxu0 %v2587_v0  ;;  %2152 = vmatprep.subr.bf16.mxu1 %v2587_v0  ;;  %v2202_v6 = vld [vmem:[%s3513_s0 + $0x4] ss:$12 sps:$4 sm:$0xff]   ;;  %v2191_v10 = vld [vmem:[%s3512_s1 + $0x38] sm:$0xff]   ;;  %v2193_v12 = vld [vmem:[%s3512_s1 + $0x48] sm:$0xff]  }
   0x4   :  { %v2205_v8 = vld [vmem:[%s3513_s0 + $0x244] ss:$12 sps:$4 sm:$0xff]   ;;  %903 = vmatprep.mubr.bf16.mxu0 %v2202_v6  ;;  %v2195_v14 = vld [vmem:[%s3512_s1 + $0x58] sm:$0xff]   ;;  %v2197_v16 = vld [vmem:[%s3512_s1 + $0x68] sm:$0xff]  }
   0x5   :  { %1095 = vmatprep.mubr.bf16.mxu1 %v2205_v8  ;;  %v2190_v9 = vld [vmem:[%s3512_s1 + $0x30] sm:$0xff]   ;;  %v2192_v11 = vld [vmem:[%s3512_s1 + $0x40] sm:$0xff]   ;;  %v2199_v18 = vld [vmem:[%s3512_s1 + $0x78] sm:$0xff]  }
   0x6   :  { %874 = vmatpush1.bf16.msra.mxu0 %v2185_v2  ;;  %2168 = vmatpush1.bf16.msra.mxu1 %v2185_v2  ;;  %v2194_v13 = vld [vmem:[%s3512_s1 + $0x50] sm:$0xff]   ;;  %v2196_v15 = vld [vmem:[%s3512_s1 + $0x60] sm:$0xff]   ;;  %v2207_v22 = vld [vmem:[%s3513_s0 + $0x1c] ss:$12 sps:$4 sm:$0xff]  }
   0x7   :  { %875 = vmatprep.subr.bf16.mxu0 %v2587_v0  ;;  %2153 = vmatprep.subr.bf16.mxu1 %v2587_v0  ;;  %v2198_v17 = vld [vmem:[%s3512_s1 + $0x70] sm:$0xff]   ;;  %v2206_v19 = vld [vmem:[%s3512_s1 + $0x80] sm:$0xff]   ;;  %v2209_v23 = vld [vmem:[%s3513_s0 + $0x25c] ss:$12 sps:$4 sm:$0xff]  }
   0x8   :  { %v2200_v20 = vld [vmem:[%s3513_s0] ss:$12 sps:$4 sm:$0xff]   ;;  %v2211_v25 = vld [vmem:[%s3513_s0 + $0x18] ss:$12 sps:$4 sm:$0xff]   ;;  %v2217_v29 = vld [vmem:[%s3513_s0 + $0x30] ss:$12 sps:$4 sm:$0xff]  }
   0x9   :  { %v2203_v21 = vld [vmem:[%s3513_s0 + $0x240] ss:$12 sps:$4 sm:$0xff]   ;;  %v2212_v26 = vld [vmem:[%s3513_s0 + $0x258] ss:$12 sps:$4 sm:$0xff]   ;;  %v2218_v30 = vld [vmem:[%s3513_s0 + $0x270] ss:$12 sps:$4 sm:$0xff]  }
   0xa   :  { %876 = vmatpush1.bf16.msra.mxu0 %v2186_v3  ;;  %2169 = vmatpush1.bf16.msra.mxu1 %v2186_v3  ;;  %v2231_v24 = vld [vmem:[%s3512_s1 + $0x88] sm:$0xff]   ;;  %v2213_v27 = vld [vmem:[%s3513_s0 + $0x34] ss:$12 sps:$4 sm:$0xff]   ;;  %v2225_v35 = vld [vmem:[%s3513_s0 + $0x64] ss:$12 sps:$4 sm:$0xff]  }
   0xb   :  { %877 = vmatprep.subr.bf16.mxu0 %v2587_v0  ;;  %2154 = vmatprep.subr.bf16.mxu1 %v2587_v0  ;;  %v2215_v28 = vld [vmem:[%s3513_s0 + $0x274] ss:$12 sps:$4 sm:$0xff]   ;;  %v2219_v31 = vld [vmem:[%s3513_s0 + $0x4c] ss:$12 sps:$4 sm:$0xff]   ;;  %v2227_v36 = vld [vmem:[%s3513_s0 + $0x2a4] ss:$12 sps:$4 sm:$0xff]  }
   0xc   :  { %v2221_v32 = vld [vmem:[%s3513_s0 + $0x28c] ss:$12 sps:$4 sm:$0xff]   ;;  %v2223_v33 = vld [vmem:[%s3513_s0 + $0x48] ss:$12 sps:$4 sm:$0xff]   ;;  %v2242_v45 = vld [vmem:[%s3513_s0 + $0x90] ss:$12 sps:$4 sm:$0xff]  }
   0xd   :  { %v2224_v34 = vld [vmem:[%s3513_s0 + $0x288] ss:$12 sps:$4 sm:$0xff]   ;;  %v2229_v37 = vld [vmem:[%s3513_s0 + $0x60] ss:$12 sps:$4 sm:$0xff]   ;;  %v2236_v41 = vld [vmem:[%s3513_s0 + $0x78] ss:$12 sps:$4 sm:$0xff]  }
   0xe   :  { %878 = vmatpush1.bf16.msra.mxu0 %v2187_v4  ;;  %2170 = vmatpush1.bf16.msra.mxu1 %v2187_v4  ;;  %v2230_v38 = vld [vmem:[%s3513_s0 + $0x2a0] ss:$12 sps:$4 sm:$0xff]   ;;  %v2232_v39 = vld [vmem:[%s3513_s0 + $0x7c] ss:$12 sps:$4 sm:$0xff]   ;;  %v2237_v42 = vld [vmem:[%s3513_s0 + $0x2b8] ss:$12 sps:$4 sm:$0xff]  }
   0xf   :  { %879 = vmatprep.subr.bf16.mxu0 %v2587_v0  ;;  %2155 = vmatprep.subr.bf16.mxu1 %v2587_v0  ;;  %v2234_v40 = vld [vmem:[%s3513_s0 + $0x2bc] ss:$12 sps:$4 sm:$0xff]   ;;  %v2238_v43 = vld [vmem:[%s3513_s0 + $0x94] ss:$12 sps:$4 sm:$0xff]   ;;  %v2244_v47 = vld [vmem:[%s3513_s0 + $0xac] ss:$12 sps:$4 sm:$0xff]  }
  0x10   :  { %v2240_v44 = vld [vmem:[%s3513_s0 + $0x2d4] ss:$12 sps:$4 sm:$0xff]   ;;  %v2243_v46 = vld [vmem:[%s3513_s0 + $0x2d0] ss:$12 sps:$4 sm:$0xff]   ;;  %v2246_v48 = vld [vmem:[%s3513_s0 + $0x2ec] ss:$12 sps:$4 sm:$0xff]  }
  0x11   :  { %v2248_v49 = vld [vmem:[%s3513_s0 + $0xa8] ss:$12 sps:$4 sm:$0xff]   ;;  %v2250_v51 = vld [vmem:[%s3513_s0 + $0xc4] ss:$12 sps:$4 sm:$0xff]   ;;  %v2253_v53 = vld [vmem:[%s3513_s0 + $0xc0] ss:$12 sps:$4 sm:$0xff]  }
  0x12   :  { %880 = vmatpush1.bf16.msra.mxu0 %v2188_v5  ;;  %2171 = vmatpush1.bf16.msra.mxu1 %v2188_v5  ;;  %v2249_v50 = vld [vmem:[%s3513_s0 + $0x2e8] ss:$12 sps:$4 sm:$0xff]   ;;  %v2254_v54 = vld [vmem:[%s3513_s0 + $0x20] ss:$12 sps:$4 sm:$0xff]   ;;  %v2257_v56 = vld [vmem:[%s3513_s0 + $0x38] ss:$12 sps:$4 sm:$0xff]  }
  0x13   :  { %881 = vmatprep.subr.bf16.mxu0 %v2587_v0  ;;  %2156 = vmatprep.subr.bf16.mxu1 %v2587_v0  ;;  %v2252_v52 = vld [vmem:[%s3513_s0 + $0x8] ss:$12 sps:$4 sm:$0xff]   ;;  %v2258_v57 = vld [vmem:[%s3513_s0 + $0xd8] ss:$12 sps:$4 sm:$0xff]   ;;  %v2259_v58 = vld [vmem:[%s3513_s0 + $0x50] ss:$12 sps:$4 sm:$0xff]  }
  0x14   :  { %v2255_v55 = vld [vmem:[%s3513_s0 + $0xdc] ss:$12 sps:$4 sm:$0xff]   ;;  %v2260_v59 = vld [vmem:[%s3513_s0 + $0xf4] ss:$12 sps:$4 sm:$0xff]   ;;  %v2265_v63 = vld [vmem:[%s3513_s0 + $0x10c] ss:$12 sps:$4 sm:$0xff]  }
  0x15   :  { %v2262_v60 = vld [vmem:[%s3513_s0 + $0x68] ss:$12 sps:$4 sm:$0xff]   ;;  %v2263_v61 = vld [vmem:[%s3513_s0 + $0xf0] ss:$12 sps:$4 sm:$0xff]   ;;  %v2264_v62 = vld [vmem:[%s3513_s0 + $0x80] ss:$12 sps:$4 sm:$0xff]  }
  0x16   :  { %882 = vmatpush1.bf16.msra.mxu0 %v2189_v7  ;;  %2172 = vmatpush1.bf16.msra.mxu1 %v2189_v7  ;;  %v2268_v1 = vld [vmem:[%s3513_s0 + $0x108] ss:$12 sps:$4 sm:$0xff]   ;;  %v2269_v2 = vld [vmem:[%s3513_s0 + $0xb0] ss:$12 sps:$4 sm:$0xff]   ;;  %v2273_v5 = vld [vmem:[%s3513_s0 + $0x120] ss:$12 sps:$4 sm:$0xff]  }
  0x17   :  { %883 = vmatprep.subr.bf16.mxu0 %v2587_v0  ;;  %2157 = vmatprep.subr.bf16.mxu1 %v2587_v0  ;;  %v2270_v3 = vld [vmem:[%s3513_s0 + $0x124] ss:$12 sps:$4 sm:$0xff]   ;;  %v2272_v4 = vld [vmem:[%s3513_s0 + $0xc8] ss:$12 sps:$4 sm:$0xff]   ;;  %v2274_v6 = vld [vmem:[%s3513_s0 + $0xe0] ss:$12 sps:$4 sm:$0xff]  }
  0x18   :  { %v2275_v7 = vld [vmem:[%s3513_s0 + $0x13c] ss:$12 sps:$4 sm:$0xff]   ;;  %v2277_v8 = vld [vmem:[%s3513_s0 + $0xf8] ss:$12 sps:$4 sm:$0xff]  }
  0x1a   :  { %884 = vmatpush1.bf16.msra.mxu0 %v2190_v9  ;;  %2173 = vmatpush1.bf16.msra.mxu1 %v2190_v9  ;;  %v2278_v9 = vld [vmem:[%s3513_s0 + $0x138] ss:$12 sps:$4 sm:$0xff]  }
  0x1b   :  { %885 = vmatprep.subr.bf16.mxu0 %v2587_v0  ;;  %2158 = vmatprep.subr.bf16.mxu1 %v2587_v0 }
  0x1e   :  { %886 = vmatpush1.bf16.msra.mxu0 %v2191_v10  ;;  %2174 = vmatpush1.bf16.msra.mxu1 %v2191_v10  ;;  %v2279_v10 = vld [vmem:[%s3513_s0 + $0x110] ss:$12 sps:$4 sm:$0xff]  }
  0x1f   :  { %887 = vmatprep.subr.bf16.mxu0 %v2587_v0  ;;  %2159 = vmatprep.subr.bf16.mxu1 %v2587_v0 }
  0x22   :  { %888 = vmatpush1.bf16.msra.mxu0 %v2192_v11  ;;  %2175 = vmatpush1.bf16.msra.mxu1 %v2192_v11  ;;  %v2280_v11 = vld [vmem:[%s3513_s0 + $0x154] ss:$12 sps:$4 sm:$0xff]  }
  0x23   :  { %889 = vmatprep.subr.bf16.mxu0 %v2587_v0  ;;  %2160 = vmatprep.subr.bf16.mxu1 %v2587_v0 }
  0x26   :  { %890 = vmatpush1.bf16.msra.mxu0 %v2193_v12  ;;  %2176 = vmatpush1.bf16.msra.mxu1 %v2193_v12  ;;  %v2282_v12 = vld [vmem:[%s3513_s0 + $0x128] ss:$12 sps:$4 sm:$0xff]  }
  0x27   :  { %891 = vmatprep.subr.bf16.mxu0 %v2587_v0  ;;  %2161 = vmatprep.subr.bf16.mxu1 %v2587_v0 }
  0x2a   :  { %892 = vmatpush1.bf16.msra.mxu0 %v2194_v13  ;;  %2177 = vmatpush1.bf16.msra.mxu1 %v2194_v13  ;;  %v2283_v13 = vld [vmem:[%s3513_s0 + $0x150] ss:$12 sps:$4 sm:$0xff]  }
  0x2b   :  { %893 = vmatprep.subr.bf16.mxu0 %v2587_v0  ;;  %2162 = vmatprep.subr.bf16.mxu1 %v2587_v0 }
  0x2e   :  { %894 = vmatpush1.bf16.msra.mxu0 %v2195_v14  ;;  %2178 = vmatpush1.bf16.msra.mxu1 %v2195_v14  ;;  %v2284_v14 = vld [vmem:[%s3513_s0 + $0x140] ss:$12 sps:$4 sm:$0xff]  }
  0x2f   :  { %895 = vmatprep.subr.bf16.mxu0 %v2587_v0  ;;  %2163 = vmatprep.subr.bf16.mxu1 %v2587_v0 }
  0x32   :  { %896 = vmatpush1.bf16.msra.mxu0 %v2196_v15  ;;  %2179 = vmatpush1.bf16.msra.mxu1 %v2196_v15  ;;  %v2285_v15 = vld [vmem:[%s3513_s0 + $0x16c] ss:$12 sps:$4 sm:$0xff]  }
  0x33   :  { %897 = vmatprep.subr.bf16.mxu0 %v2587_v0  ;;  %2164 = vmatprep.subr.bf16.mxu1 %v2587_v0 }
  0x36   :  { %898 = vmatpush1.bf16.msra.mxu0 %v2197_v16  ;;  %2180 = vmatpush1.bf16.msra.mxu1 %v2197_v16  ;;  %v2287_v16 = vld [vmem:[%s3513_s0 + $0x158] ss:$12 sps:$4 sm:$0xff]  }
  0x37   :  { %899 = vmatprep.subr.bf16.mxu0 %v2587_v0  ;;  %2165 = vmatprep.subr.bf16.mxu1 %v2587_v0 }
  0x3a   :  { %900 = vmatpush1.bf16.msra.mxu0 %v2198_v17  ;;  %2181 = vmatpush1.bf16.msra.mxu1 %v2198_v17  ;;  %v2288_v17 = vld [vmem:[%s3513_s0 + $0x168] ss:$12 sps:$4 sm:$0xff]  }
  0x3b   :  { %901 = vmatprep.subr.bf16.mxu0 %v2587_v0  ;;  %2166 = vmatprep.subr.bf16.mxu1 %v2587_v0  ;;  %v2267_v0 = vld [vmem:[%s3513_s0 + $0x98] ss:$12 sps:$4 sm:$0xff]  }
  0x3e   :  { %902 = vmatpush1.bf16.msra.mxu0 %v2199_v18  ;;  %2182 = vmatpush1.bf16.msra.mxu1 %v2199_v18  ;;  %v2289_v18 = vld [vmem:[%s3513_s0 + $0x170] ss:$12 sps:$4 sm:$0xff]  }
  0x3f   :  { %2083 = vmatprep.subr.bf16.mxu1 %v2206_v19 }
  0x41   :  { %904 = vmatmul.mubr.bf16.vlgmr.msra.gmra.mrb[0].mxu0 %v2200_v20  ;;  %1096 = vmatmul.mubr.bf16.vlgmr.msra.gmra.mrb[0].mxu1 %v2203_v21  ;;  %v2292_v20 = vld [vmem:[%s3513_s0 + $0x188] ss:$12 sps:$4 sm:$0xff]   ;;  %v2293_v21 = vld [vmem:[%s3513_s0 + $0x180] ss:$12 sps:$4 sm:$0xff]  }
  0x42   :  { %2084 = vmatpush3.bf16.msra.mxu1 %v2206_v19  ;;  %911 = vmatprep.mubr.bf16.mxu0 %v2207_v22  ;;  %v2290_v19 = vld [vmem:[%s3513_s0 + $0x184] ss:$12 sps:$4 sm:$0xff]   ;;  %v2294_v22 = vld [vmem:[%s3513_s0 + $0x1a0] ss:$12 sps:$4 sm:$0xff]  }
  0x43   :  { %1103 = vmatprep.mubr.bf16.mxu1 %v2209_v23  ;;  %2085 = vmatprep.subr.bf16.mxu1 %v2231_v24  ;;  %v2295_v23 = vld [vmem:[%s3513_s0 + $0x19c] ss:$12 sps:$4 sm:$0xff]  }
  0x46   :  { %2086 = vmatpush3.bf16.msra.mxu1 %v2231_v24  ;;  %v2297_v24 = vld [vmem:[%s3513_s0 + $0x1b8] ss:$12 sps:$4 sm:$0xff]  }
  0x49   :  { %912 = vmatmul.mubr.bf16.gmra.mrb[4].mxu0 %v2211_v25  ;;  %1104 = vmatmul.mubr.bf16.gmra.mrb[4].mxu1 %v2212_v26  ;;  %v2298_v25 = vld [vmem:[%s3513_s0 + $0x198] ss:$12 sps:$4 sm:$0xff]   ;;  %v2299_v26 = vld [vmem:[%s3513_s0 + $0x1d0] ss:$12 sps:$4 sm:$0xff]  }
  0x4a   :  { %919 = vmatprep.mubr.bf16.mxu0 %v2213_v27  ;;  %1111 = vmatprep.mubr.bf16.mxu1 %v2215_v28  ;;  %v2300_v27 = vld [vmem:[%s3513_s0 + $0x1b4] ss:$12 sps:$4 sm:$0xff]  }
  0x4b   :  { %v2302_v28 = vld [vmem:[%s3513_s0 + $0x1e8] ss:$12 sps:$4 sm:$0xff]  }
  0x51   :  { %920 = vmatmul.mubr.bf16.gmra.mrb[8].mxu0 %v2217_v29  ;;  %1112 = vmatmul.mubr.bf16.gmra.mrb[8].mxu1 %v2218_v30  ;;  %v2303_v29 = vld [vmem:[%s3513_s0 + $0x1b0] ss:$12 sps:$4 sm:$0xff]   ;;  %v2304_v30 = vld [vmem:[%s3513_s0 + $0x200] ss:$12 sps:$4 sm:$0xff]  }
  0x52   :  { %927 = vmatprep.mubr.bf16.mxu0 %v2219_v31  ;;  %1119 = vmatprep.mubr.bf16.mxu1 %v2221_v32  ;;  %v2305_v31 = vld [vmem:[%s3513_s0 + $0x1cc] ss:$12 sps:$4 sm:$0xff]  }
  0x53   :  { %v2307_v32 = vld [vmem:[%s3513_s0 + $0x218] ss:$12 sps:$4 sm:$0xff]  }
  0x59   :  { %928 = vmatmul.mubr.bf16.gmra.mrb[12].mxu0 %v2223_v33  ;;  %1120 = vmatmul.mubr.bf16.gmra.mrb[12].mxu1 %v2224_v34  ;;  %v2308_v33 = vld [vmem:[%s3513_s0 + $0x1c8] ss:$12 sps:$4 sm:$0xff]   ;;  %v2309_v34 = vld [vmem:[%s3513_s0 + $0x230] ss:$12 sps:$4 sm:$0xff]  }
  0x5a   :  { %935 = vmatprep.mubr.bf16.mxu0 %v2225_v35  ;;  %1127 = vmatprep.mubr.bf16.mxu1 %v2227_v36  ;;  %v2310_v35 = vld [vmem:[%s3513_s0 + $0x1e4] ss:$12 sps:$4 sm:$0xff]   ;;  %v2312_v36 = vld [vmem:[%s3513_s0 + $0x248] ss:$12 sps:$4 sm:$0xff]  }
  0x61   :  { %936 = vmatmul.mubr.bf16.gmra.mrb[16].mxu0 %v2229_v37  ;;  %1128 = vmatmul.mubr.bf16.gmra.mrb[16].mxu1 %v2230_v38  ;;  %v2313_v37 = vld [vmem:[%s3513_s0 + $0x1e0] ss:$12 sps:$4 sm:$0xff]  }
  0x62   :  { %943 = vmatprep.mubr.bf16.mxu0 %v2232_v39  ;;  %1135 = vmatprep.mubr.bf16.mxu1 %v2234_v40  ;;  %v2314_v38 = vld [vmem:[%s3513_s0 + $0x260] ss:$12 sps:$4 sm:$0xff]   ;;  %v2315_v39 = vld [vmem:[%s3513_s0 + $0x1fc] ss:$12 sps:$4 sm:$0xff]   ;;  %v2317_v40 = vld [vmem:[%s3513_s0 + $0x278] ss:$12 sps:$4 sm:$0xff]  }
  0x69   :  { %944 = vmatmul.mubr.bf16.gmra.mrb[20].mxu0 %v2236_v41  ;;  %1136 = vmatmul.mubr.bf16.gmra.mrb[20].mxu1 %v2237_v42  ;;  %v2318_v41 = vld [vmem:[%s3513_s0 + $0x1f8] ss:$12 sps:$4 sm:$0xff]   ;;  %v2319_v42 = vld [vmem:[%s3513_s0 + $0x290] ss:$12 sps:$4 sm:$0xff]  }
  0x6a   :  { %951 = vmatprep.mubr.bf16.mxu0 %v2238_v43  ;;  %1143 = vmatprep.mubr.bf16.mxu1 %v2240_v44  ;;  %v2320_v43 = vld [vmem:[%s3513_s0 + $0x214] ss:$12 sps:$4 sm:$0xff]  }
  0x6b   :  { %v2322_v44 = vld [vmem:[%s3513_s0 + $0x2a8] ss:$12 sps:$4 sm:$0xff]  }
  0x71   :  { %952 = vmatmul.mubr.bf16.gmra.mrb[24].mxu0 %v2242_v45  ;;  %1144 = vmatmul.mubr.bf16.gmra.mrb[24].mxu1 %v2243_v46  ;;  %v2323_v45 = vld [vmem:[%s3513_s0 + $0x210] ss:$12 sps:$4 sm:$0xff]   ;;  %v2324_v46 = vld [vmem:[%s3513_s0 + $0x2c0] ss:$12 sps:$4 sm:$0xff]  }
  0x72   :  { %959 = vmatprep.mubr.bf16.mxu0 %v2244_v47  ;;  %1151 = vmatprep.mubr.bf16.mxu1 %v2246_v48  ;;  %v2325_v47 = vld [vmem:[%s3513_s0 + $0x22c] ss:$12 sps:$4 sm:$0xff]  }
  0x73   :  { %v2327_v48 = vld [vmem:[%s3513_s0 + $0x2d8] ss:$12 sps:$4 sm:$0xff]  }
  0x79   :  { %960 = vmatmul.mubr.bf16.gmra.mrb[28].mxu0 %v2248_v49  ;;  %1152 = vmatmul.mubr.bf16.gmra.mrb[28].mxu1 %v2249_v50  ;;  %v2328_v49 = vld [vmem:[%s3513_s0 + $0x228] ss:$12 sps:$4 sm:$0xff]   ;;  %v2329_v50 = vld [vmem:[%s3513_s0 + $0x2f0] ss:$12 sps:$4 sm:$0xff]  }
  0x7a   :  { %967 = vmatprep.mubr.bf16.mxu0 %v2250_v51  ;;  %2087 = vmatprep.mubr.msk.bf16.mxu1 %vm774_vm0, %v2252_v52 }
  0x81   :  { %968 = vmatmul.mubr.bf16.gmra.mrb[32].mxu0 %v2253_v53  ;;  %2088 = vmatmul.mubr.msk.bf16.vlgmr.msra.gmra.mrb[32].mxu1 %vm774_vm0, %v2254_v54 }
  0x82   :  { %975 = vmatprep.mubr.bf16.mxu0 %v2255_v55  ;;  %2091 = vmatprep.mubr.msk.bf16.mxu1 %vm774_vm0, %v2257_v56 }
  0x89   :  { %976 = vmatmul.mubr.bf16.gmra.mrb[36].mxu0 %v2258_v57  ;;  %2092 = vmatmul.mubr.msk.bf16.gmra.mrb[36].mxu1 %vm774_vm0, %v2259_v58 }
  0x8a   :  { %983 = vmatprep.mubr.bf16.mxu0 %v2260_v59  ;;  %2095 = vmatprep.mubr.msk.bf16.mxu1 %vm774_vm0, %v2262_v60 }
  0x91   :  { %984 = vmatmul.mubr.bf16.gmra.mrb[40].mxu0 %v2263_v61  ;;  %2096 = vmatmul.mubr.msk.bf16.gmra.mrb[40].mxu1 %vm774_vm0, %v2264_v62 }
  0x92   :  { %991 = vmatprep.mubr.bf16.mxu0 %v2265_v63  ;;  %2099 = vmatprep.mubr.msk.bf16.mxu1 %vm774_vm0, %v2267_v0 }
  0x99   :  { %992 = vmatmul.mubr.bf16.gmra.mrb[44].mxu0 %v2268_v1  ;;  %2100 = vmatmul.mubr.msk.bf16.gmra.mrb[44].mxu1 %vm774_vm0, %v2269_v2 }
  0x9a   :  { %999 = vmatprep.mubr.bf16.mxu0 %v2270_v3  ;;  %2103 = vmatprep.mubr.msk.bf16.mxu1 %vm774_vm0, %v2272_v4 }
  0xa1   :  { %1000 = vmatmul.mubr.bf16.gmra.mrb[48].mxu0 %v2273_v5  ;;  %2104 = vmatmul.mubr.msk.bf16.gmra.mrb[48].mxu1 %vm774_vm0, %v2274_v6 }
  0xa2   :  { %1007 = vmatprep.mubr.bf16.mxu0 %v2275_v7  ;;  %2107 = vmatprep.mubr.msk.bf16.mxu1 %vm774_vm0, %v2277_v8 }
  0xa9   :  { %1008 = vmatmul.mubr.bf16.gmra.mrb[52].mxu0 %v2278_v9  ;;  %2108 = vmatmul.mubr.msk.bf16.gmra.mrb[52].mxu1 %vm774_vm0, %v2279_v10 }
  0xaa   :  { %1015 = vmatprep.mubr.bf16.mxu0 %v2280_v11  ;;  %2111 = vmatprep.mubr.msk.bf16.mxu1 %vm774_vm0, %v2282_v12 }
  0xb1   :  { %1016 = vmatmul.mubr.bf16.gmra.mrb[56].mxu0 %v2283_v13  ;;  %2112 = vmatmul.mubr.msk.bf16.gmra.mrb[56].mxu1 %vm774_vm0, %v2284_v14 }
  0xb2   :  { %1023 = vmatprep.mubr.bf16.mxu0 %v2285_v15  ;;  %2115 = vmatprep.mubr.msk.bf16.mxu1 %vm774_vm0, %v2287_v16 }
  0xb9   :  { %1024 = vmatmul.mubr.bf16.gmra.mrb[60].mxu0 %v2288_v17  ;;  %2116 = vmatmul.mubr.msk.bf16.gmra.mrb[60].mxu1 %vm774_vm0, %v2289_v18 }
  0xba   :  { %1031 = vmatprep.mubr.bf16.mxu0 %v2290_v19  ;;  %2119 = vmatprep.mubr.msk.bf16.mxu1 %vm774_vm0, %v2292_v20 }
  0xc1   :  { %1032 = vmatmul.mubr.bf16.gmra.mrb[64].mxu0 %v2293_v21  ;;  %2120 = vmatmul.mubr.msk.bf16.gmra.mrb[64].mxu1 %vm774_vm0, %v2294_v22 }
  0xc2   :  { %1039 = vmatprep.mubr.bf16.mxu0 %v2295_v23  ;;  %2123 = vmatprep.mubr.msk.bf16.mxu1 %vm774_vm0, %v2297_v24 }
  0xc9   :  { %1040 = vmatmul.mubr.bf16.gmra.mrb[68].mxu0 %v2298_v25  ;;  %2124 = vmatmul.mubr.msk.bf16.gmra.mrb[68].mxu1 %vm774_vm0, %v2299_v26 }
  0xca   :  { %1047 = vmatprep.mubr.bf16.mxu0 %v2300_v27  ;;  %2127 = vmatprep.mubr.msk.bf16.mxu1 %vm774_vm0, %v2302_v28 }
  0xd1   :  { %1048 = vmatmul.mubr.bf16.gmra.mrb[72].mxu0 %v2303_v29  ;;  %2128 = vmatmul.mubr.msk.bf16.gmra.mrb[72].mxu1 %vm774_vm0, %v2304_v30 }
  0xd2   :  { %1055 = vmatprep.mubr.bf16.mxu0 %v2305_v31  ;;  %2131 = vmatprep.mubr.msk.bf16.mxu1 %vm774_vm0, %v2307_v32 }
  0xd9   :  { %1056 = vmatmul.mubr.bf16.gmra.mrb[76].mxu0 %v2308_v33  ;;  %2132 = vmatmul.mubr.msk.bf16.gmra.mrb[76].mxu1 %vm774_vm0, %v2309_v34 }
  0xda   :  { %1063 = vmatprep.mubr.bf16.mxu0 %v2310_v35  ;;  %2135 = vmatprep.mubr.msk.bf16.mxu1 %vm774_vm0, %v2312_v36 }
  0xe1   :  { %1064 = vmatmul.mubr.bf16.gmra.mrb[80].mxu0 %v2313_v37  ;;  %2136 = vmatmul.mubr.msk.bf16.gmra.mrb[80].mxu1 %vm774_vm0, %v2314_v38 }
  0xe2   :  { %1071 = vmatprep.mubr.bf16.mxu0 %v2315_v39  ;;  %2139 = vmatprep.mubr.msk.bf16.mxu1 %vm774_vm0, %v2317_v40 }
  0xe9   :  { %1072 = vmatmul.mubr.bf16.gmra.mrb[84].mxu0 %v2318_v41  ;;  %2140 = vmatmul.mubr.msk.bf16.gmra.mrb[84].mxu1 %vm774_vm0, %v2319_v42 }
  0xea   :  { %1079 = vmatprep.mubr.bf16.mxu0 %v2320_v43  ;;  %2143 = vmatprep.mubr.msk.bf16.mxu1 %vm774_vm0, %v2322_v44 }
  0xf1   :  { %1080 = vmatmul.mubr.bf16.gmra.mrb[88].mxu0 %v2323_v45  ;;  %2144 = vmatmul.mubr.msk.bf16.gmra.mrb[88].mxu1 %vm774_vm0, %v2324_v46 }
  0xf2   :  { %1087 = vmatprep.mubr.bf16.mxu0 %v2325_v47  ;;  %2147 = vmatprep.mubr.msk.bf16.mxu1 %vm774_vm0, %v2327_v48 }
  0xf9   :  { %1088 = vmatmul.mubr.bf16.gmra.mrb[92].mxu0 %v2328_v49  ;;  %2148 = vmatmul.mubr.msk.bf16.gmra.mrb[92].mxu1 %vm774_vm0, %v2329_v50 }
 0x114   :  { %v3014_v51 = vpop.f32.mrb[0].mxu0  ;;  %v3016_v52 = vpop.f32.mrb[0].mxu1 }
 0x115   :  { %v907_v53 = vpop.f32.mrb[1].mxu0  ;;  %v1099_v54 = vpop.f32.mrb[1].mxu1 }
 0x116   :  { %v3018_v55 = vpop.f32.mrb[2].mxu0  ;;  %v3020_v56 = vpop.f32.mrb[2].mxu1  ;;  %v3077_v53 = vld [vmem:[%s3514_s2] ss:$0 sm:$0xff] }
 0x117   :  { %v910_v57 = vpop.f32.mrb[3].mxu0  ;;  %v1102_v58 = vpop.f32.mrb[3].mxu1 }
 0x118   :  { %v906_v57 = vadd.f32 %v3077_v53, %v3014_v51 }
 0x11c   :  { %v913_v59 = vpop.f32.mrb[4].mxu0  ;;  %v3022_v60 = vpop.f32.mrb[4].mxu1 }
 0x11d   :  { %v915_v61 = vpop.f32.mrb[5].mxu0  ;;  %v1107_v62 = vpop.f32.mrb[5].mxu1  ;;  %v914_v54 = vadd.f32 %v3077_v53, %v913_v59 }
 0x11e   :  { %v916_v63 = vpop.f32.mrb[6].mxu0  ;;  %v3024_v0 = vpop.f32.mrb[6].mxu1 }
 0x11f   :  { %v918_v1 = vpop.f32.mrb[7].mxu0  ;;  %v1110_v2 = vpop.f32.mrb[7].mxu1  ;;  %v917_v62 = vadd.f32 %v3077_v53, %v916_v63 }
 0x124   :  { %v3026_v3 = vpop.f32.mrb[8].mxu0  ;;  %v3028_v4 = vpop.f32.mrb[8].mxu1 }
 0x125   :  { %v923_v5 = vpop.f32.mrb[9].mxu0  ;;  %v1115_v6 = vpop.f32.mrb[9].mxu1 }
 0x126   :  { %v3030_v7 = vpop.f32.mrb[10].mxu0  ;;  %v3032_v8 = vpop.f32.mrb[10].mxu1  ;;  %v909_v6 = vadd.f32 %v3077_v53, %v3018_v55  ;;  %v922_v55 = vadd.f32 %v3077_v53, %v3026_v3 }
 0x127   :  { %v926_v9 = vpop.f32.mrb[11].mxu0  ;;  %v1118_v10 = vpop.f32.mrb[11].mxu1 }
 0x12c   :  { %v3034_v11 = vpop.f32.mrb[12].mxu0  ;;  %v3036_v12 = vpop.f32.mrb[12].mxu1 }
 0x12d   :  { %v931_v13 = vpop.f32.mrb[13].mxu0  ;;  %v1123_v14 = vpop.f32.mrb[13].mxu1 }
 0x12e   :  { %v3038_v15 = vpop.f32.mrb[14].mxu0  ;;  %v3040_v16 = vpop.f32.mrb[14].mxu1 }
 0x12f   :  { %v934_v17 = vpop.f32.mrb[15].mxu0  ;;  %v1126_v18 = vpop.f32.mrb[15].mxu1 }
 0x134   :  { %v3042_v19 = vpop.f32.mrb[16].mxu0  ;;  %v3044_v20 = vpop.f32.mrb[16].mxu1 }
 0x135   :  { %v939_v21 = vpop.f32.mrb[17].mxu0  ;;  %v1131_v22 = vpop.f32.mrb[17].mxu1 }
 0x136   :  { %v3046_v23 = vpop.f32.mrb[18].mxu0  ;;  %v3048_v24 = vpop.f32.mrb[18].mxu1 }
 0x137   :  { %v942_v25 = vpop.f32.mrb[19].mxu0  ;;  %v1134_v26 = vpop.f32.mrb[19].mxu1 }
 0x13c   :  { %v3050_v27 = vpop.f32.mrb[20].mxu0  ;;  %v3052_v28 = vpop.f32.mrb[20].mxu1 }
 0x13d   :  { %v947_v29 = vpop.f32.mrb[21].mxu0  ;;  %v1139_v30 = vpop.f32.mrb[21].mxu1 }
 0x13e   :  { %v3054_v31 = vpop.f32.mrb[22].mxu0  ;;  %v3056_v32 = vpop.f32.mrb[22].mxu1  ;;  %v930_v29 = vadd.f32 %v3077_v53, %v3034_v11  ;;  %v925_v11 = vadd.f32 %v3077_v53, %v3030_v7 }
 0x13f   :  { %v950_v33 = vpop.f32.mrb[23].mxu0  ;;  %v1142_v34 = vpop.f32.mrb[23].mxu1 }
 0x144   :  { %v3058_v35 = vpop.f32.mrb[24].mxu0  ;;  %v3060_v36 = vpop.f32.mrb[24].mxu1 }
 0x145   :  { %v955_v37 = vpop.f32.mrb[25].mxu0  ;;  %v1147_v38 = vpop.f32.mrb[25].mxu1 }
 0x146   :  { %v3062_v39 = vpop.f32.mrb[26].mxu0  ;;  %v3064_v40 = vpop.f32.mrb[26].mxu1  ;;  %v933_v38 = vadd.f32 %v3077_v53, %v3038_v15 }
 0x147   :  { %v958_v41 = vpop.f32.mrb[27].mxu0  ;;  %v1150_v42 = vpop.f32.mrb[27].mxu1 }
 0x14c   :  { %v3066_v43 = vpop.f32.mrb[28].mxu0  ;;  %v3068_v44 = vpop.f32.mrb[28].mxu1 }
 0x14d   :  { %v963_v45 = vpop.f32.mrb[29].mxu0  ;;  %v1155_v46 = vpop.f32.mrb[29].mxu1 }
 0x14e   :  { %v3070_v47 = vpop.f32.mrb[30].mxu0  ;;  %v3072_v48 = vpop.f32.mrb[30].mxu1 }
 0x14f   :  { %v966_v49 = vpop.f32.mrb[31].mxu0  ;;  %v1158_v50 = vpop.f32.mrb[31].mxu1 }
 0x154   :  { %v3082_v58 = vpop.f32.mrb[32].mxu0  ;;  %v2089_v61 = vpop.f32.mrb[32].mxu1 }
 0x155   :  { %v1203_v1 = vadd.f32 %v2089_v61, %v914_v54  ;;  %v971_v2 = vpop.f32.mrb[33].mxu0  ;;  %v1194_v5 = vpop.f32.mrb[33].mxu1 }
 0x156   :  { %v1195_v9 = vadd.f32 %v1194_v5, %v906_v57  ;;  %v3087_v10 = vpop.f32.mrb[34].mxu0  ;;  %v2090_v13 = vpop.f32.mrb[34].mxu1 }
 0x157   :  { %v1451_v14 = vsub.f32 0.0, %v1203_v1  ;;  %v1206_v59 = vadd.f32 %v2090_v13, %v917_v62  ;;  %v974_v17 = vpop.f32.mrb[35].mxu0  ;;  %v1197_v18 = vpop.f32.mrb[35].mxu1  ;;  %v938_v13 = vadd.f32 %v3077_v53, %v3042_v19 }
 0x158   :  { %v1449_v51 = vsub.f32 0.0, %v1195_v9  ;;  %v1198_v21 = vadd.f32 %v1197_v18, %v909_v6  ;;  %v946_v9 = vadd.f32 %v3077_v53, %v3050_v27  ;;  %v941_v27 = vadd.f32 %v3077_v53, %v3046_v23 }
 0x159   :  { %v1517_v22 = vmul.f32 1.442695, %v1451_v14  ;;  %v1452_v25 = vsub.f32 0.0, %v1206_v59 }
 0x15a   :  { %v1513_v26 = vmul.f32 1.442695, %v1449_v51  ;;  %v1450_v63 = vsub.f32 0.0, %v1198_v21  ;;  %v949_v51 = vadd.f32 %v3077_v53, %v3054_v31 }
 0x15b   :  { %2330 = vpow2.f32 %v1517_v22  ;;  %v1519_v30 = vmul.f32 1.442695, %v1452_v25 }
 0x15c   :  { %2332 = vpow2.f32 %v1513_v26  ;;  %v1515_v33 = vmul.f32 1.442695, %v1450_v63  ;;  %v3093_v34 = vpop.f32.mrb[36].mxu0  ;;  %v2093_v37 = vpop.f32.mrb[36].mxu1 }
 0x15d   :  { %2334 = vpow2.f32 %v1519_v30  ;;  %v1219_v41 = vadd.f32 %v2093_v37, %v930_v29  ;;  %v979_v42 = vpop.f32.mrb[37].mxu0  ;;  %v1210_v45 = vpop.f32.mrb[37].mxu1 }
 0x15e   :  { %2336 = vpow2.f32 %v1515_v33  ;;  %v1211_v46 = vadd.f32 %v1210_v45, %v922_v55  ;;  %v3099_v49 = vpop.f32.mrb[38].mxu0  ;;  %v2094_v3 = vpop.f32.mrb[38].mxu1 }
 0x15f   :  { %v1455_v50 = vsub.f32 0.0, %v1219_v41  ;;  %v1222_v54 = vadd.f32 %v2094_v3, %v933_v38  ;;  %v982_v57 = vpop.f32.mrb[39].mxu0  ;;  %v1213_v61 = vpop.f32.mrb[39].mxu1 }
 0x160   :  { %v1453_v62 = vsub.f32 0.0, %v1211_v46  ;;  %v1214_v1 = vadd.f32 %v1213_v61, %v925_v11  ;;  %v962_v61 = vadd.f32 %v3077_v53, %v3066_v43  ;;  %v965_v43 = vadd.f32 %v3077_v53, %v3070_v47 }
 0x161   :  { %v1525_v2 = vmul.f32 1.442695, %v1455_v50  ;;  %v1456_v15 = vsub.f32 0.0, %v1222_v54 }
 0x162   :  { %v1521_v5 = vmul.f32 1.442695, %v1453_v62  ;;  %v1454_v6 = vsub.f32 0.0, %v1214_v1  ;;  %v954_v1 = vadd.f32 %v3077_v53, %v3058_v35 }
 0x163   :  { %2338 = vpow2.f32 %v1525_v2  ;;  %v1527_v7 = vmul.f32 1.442695, %v1456_v15 }
 0x164   :  { %2340 = vpow2.f32 %v1521_v5  ;;  %v1523_v14 = vmul.f32 1.442695, %v1454_v6  ;;  %v3105_v59 = vpop.f32.mrb[40].mxu0  ;;  %v2097_v17 = vpop.f32.mrb[40].mxu1 }
 0x165   :  { %v2331_v18 = vpop.eup %2330  ;;  %2342 = vpow2.f32 %v1527_v7  ;;  %v1235_v21 = vadd.f32 %v2097_v17, %v946_v9  ;;  %v987_v22 = vpop.f32.mrb[41].mxu0 }
 0x166   :  { %v1226_v25 = vpop.f32.mrb[41].mxu1  ;;  %v2333_v26 = vpop.eup %2332  ;;  %v1643_v63 = vadd.f32 1.0, %v2331_v18  ;;  %2344 = vpow2.f32 %v1523_v14  ;;  %v957_v22 = vadd.f32 %v3077_v53, %v3062_v39  ;;  %v978_v39 = vadd.f32 %v3077_v53, %v3093_v34 }
 0x167   :  { %v1227_v19 = vadd.f32 %v1226_v25, %v938_v13  ;;  %v3111_v29 = vpop.f32.mrb[42].mxu0  ;;  %v2098_v30 = vpop.f32.mrb[42].mxu1  ;;  %v1641_v33 = vadd.f32 1.0, %v2333_v26  ;;  %v1459_v37 = vsub.f32 0.0, %v1235_v21 }
 0x168   :  { %v2335_v55 = vpop.eup %2334  ;;  %v1238_v38 = vadd.f32 %v2098_v30, %v949_v51  ;;  %v990_v41 = vpop.f32.mrb[43].mxu0  ;;  %2346 = vrcp.f32 %v1643_v63 }
 0x169   :  { %v1229_v31 = vpop.f32.mrb[43].mxu1  ;;  %v2337_v42 = vpop.eup %2336  ;;  %v1644_v45 = vadd.f32 1.0, %v2335_v55  ;;  %v1457_v11 = vsub.f32 0.0, %v1227_v19  ;;  %2348 = vrcp.f32 %v1641_v33  ;;  %v1533_v23 = vmul.f32 1.442695, %v1459_v37 }
 0x16a   :  { %v1230_v46 = vadd.f32 %v1229_v31, %v941_v27  ;;  %v1642_v3 = vadd.f32 1.0, %v2337_v42  ;;  %v1460_v50 = vsub.f32 0.0, %v1238_v38 }
 0x16b   :  { %2350 = vrcp.f32 %v1644_v45  ;;  %v1529_v54 = vmul.f32 1.442695, %v1457_v11 }
 0x16c   :  { %v1458_v57 = vsub.f32 0.0, %v1230_v46  ;;  %2352 = vrcp.f32 %v1642_v3  ;;  %v1535_v62 = vmul.f32 1.442695, %v1460_v50  ;;  %v3117_v15 = vpop.f32.mrb[44].mxu0  ;;  %v2101_v5 = vpop.f32.mrb[44].mxu1  ;;  %v970_v3 = vadd.f32 %v3077_v53, %v3082_v58 }
 0x16d   :  { %2354 = vpow2.f32 %v1533_v23  ;;  %v2339_v6 = vpop.eup %2338  ;;  %v1251_v9 = vadd.f32 %v2101_v5, %v962_v61  ;;  %v995_v7 = vpop.f32.mrb[45].mxu0  ;;  %v981_v5 = vadd.f32 %v3077_v53, %v3099_v49 }
 0x16e   :  { %v1531_v2 = vmul.f32 1.442695, %v1458_v57  ;;  %2356 = vpow2.f32 %v1529_v54  ;;  %v1242_v13 = vpop.f32.mrb[45].mxu1  ;;  %v2341_v14 = vpop.eup %2340  ;;  %v1647_v17 = vadd.f32 1.0, %v2339_v6 }
 0x16f   :  { %2358 = vpow2.f32 %v1535_v62  ;;  %v1243_v18 = vadd.f32 %v1242_v13, %v954_v1  ;;  %v3121_v51 = vpop.f32.mrb[46].mxu0  ;;  %v2102_v35 = vpop.f32.mrb[46].mxu1  ;;  %v1645_v25 = vadd.f32 1.0, %v2341_v14  ;;  %v1463_v26 = vsub.f32 0.0, %v1251_v9 }
 0x170   :  { %v2343_v21 = vpop.eup %2342  ;;  %2360 = vpow2.f32 %v1531_v2  ;;  %v998_v27 = vpop.f32.mrb[47].mxu0  ;;  %v1254_v47 = vadd.f32 %v2102_v35, %v965_v43  ;;  %v973_v2 = vadd.f32 %v3077_v53, %v3087_v10 }
 0x171   :  { %v1245_v63 = vpop.f32.mrb[47].mxu1  ;;  %v2345_v19 = vpop.eup %2344  ;;  %2362 = vrcp.f32 %v1647_v17  ;;  %v1648_v30 = vadd.f32 1.0, %v2343_v21  ;;  %v1461_v55 = vsub.f32 0.0, %v1243_v18  ;;  %v1541_v37 = vmul.f32 1.442695, %v1463_v26 }
 0x172   :  { %2364 = vrcp.f32 %v1645_v25  ;;  %v1646_v33 = vadd.f32 1.0, %v2345_v19  ;;  %v1246_v38 = vadd.f32 %v1245_v63, %v957_v22  ;;  %v2347_v41 = vpop.eup %2346  ;;  %v1464_v42 = vsub.f32 0.0, %v1254_v47 }
 0x173   :  { %2366 = vrcp.f32 %v1648_v30  ;;  %v1537_v31 = vmul.f32 1.442695, %v1461_v55  ;;  %v2349_v45 = vpop.eup %2348  ;;  %1836 = vst.msk [vmem:[%s3515_s3 + $0x10] sm:$0xff] %vm1833_vm1, %v2347_v41  ;;  %v986_v41 = vadd.f32 %v3077_v53, %v3105_v59  ;;  %v997_v59 = vadd.f32 %v3077_v53, %v3121_v51 }
 0x174   :  { %2368 = vrcp.f32 %v1646_v33  ;;  %v1462_v11 = vsub.f32 0.0, %v1246_v38  ;;  %1834 = vst.msk [vmem:[%s3515_s3] sm:$0xff] %vm1833_vm1, %v2349_v45  ;;  %v1543_v23 = vmul.f32 1.442695, %v1464_v42  ;;  %v3137_v50 = vpop.f32.mrb[48].mxu0  ;;  %v2105_v54 = vpop.f32.mrb[48].mxu1  ;;  %v994_v33 = vadd.f32 %v3077_v53, %v3117_v15 }
 0x175   :  { %v2351_v46 = vpop.eup %2350  ;;  %2370 = vpow2.f32 %v1541_v37  ;;  %v1267_v61 = vadd.f32 %v2105_v54, %v978_v39  ;;  %v1003_v58 = vpop.f32.mrb[49].mxu0 }
 0x176   :  { %v2353_v57 = vpop.eup %2352  ;;  %1837 = vst.msk [vmem:[%s3515_s3 + $0x18] sm:$0xff] %vm1833_vm1, %v2351_v46  ;;  %2372 = vpow2.f32 %v1537_v31  ;;  %v1539_v34 = vmul.f32 1.442695, %v1462_v11  ;;  %v1258_v62 = vpop.f32.mrb[49].mxu1  ;;  %v989_v58 = vadd.f32 %v3077_v53, %v3111_v29 }
 0x177   :  { %v2355_v1 = vpop.eup %2354  ;;  %1835 = vst.msk [vmem:[%s3515_s3 + $0x8] sm:$0xff] %vm1833_vm1, %v2353_v57  ;;  %2374 = vpow2.f32 %v1543_v23  ;;  %v1259_v6 = vadd.f32 %v1258_v62, %v970_v3  ;;  %v3151_v9 = vpop.f32.mrb[50].mxu0  ;;  %v1467_v43 = vsub.f32 0.0, %v1267_v61 }
 0x178   :  { %v2106_v7 = vpop.f32.mrb[50].mxu1  ;;  %v2357_v13 = vpop.eup %2356  ;;  %v1651_v14 = vadd.f32 1.0, %v2355_v1  ;;  %2376 = vpow2.f32 %v1539_v34 }
 0x179   :  { %v1006_v17 = vpop.f32.mrb[51].mxu0  ;;  %v1261_v18 = vpop.f32.mrb[51].mxu1  ;;  %v1649_v35 = vadd.f32 1.0, %v2357_v13  ;;  %v1465_v21 = vsub.f32 0.0, %v1259_v6  ;;  %v1270_v22 = vadd.f32 %v2106_v7, %v981_v5  ;;  %v1549_v49 = vmul.f32 1.442695, %v1467_v43 }
 0x17a   :  { %v2359_v10 = vpop.eup %2358  ;;  %v1262_v25 = vadd.f32 %v1261_v18, %v973_v2  ;;  %2378 = vrcp.f32 %v1651_v14 }
 0x17b   :  { %v2361_v26 = vpop.eup %2360  ;;  %v1652_v27 = vadd.f32 1.0, %v2359_v10  ;;  %2380 = vrcp.f32 %v1649_v35  ;;  %v1545_v30 = vmul.f32 1.442695, %v1465_v21  ;;  %v1468_v55 = vsub.f32 0.0, %v1270_v22 }
 0x17c   :  { %v2363_v63 = vpop.eup %2362  ;;  %v1650_v19 = vadd.f32 1.0, %v2361_v26  ;;  %v1466_v37 = vsub.f32 0.0, %v1262_v25  ;;  %v1009_v42 = vpop.f32.mrb[52].mxu0 }
 0x17d   :  { %v2365_v47 = vpop.eup %2364  ;;  %1840 = vst.msk [vmem:[%s3515_s3 + $0x30] sm:$0xff] %vm1833_vm1, %v2363_v63  ;;  %2382 = vrcp.f32 %v1652_v27  ;;  %v1551_v31 = vmul.f32 1.442695, %v1468_v55  ;;  %v2109_v45 = vpop.f32.mrb[52].mxu1  ;;  %v1010_v22 = vadd.f32 %v3077_v53, %v1009_v42  ;;  %v1002_v27 = vadd.f32 %v3077_v53, %v3137_v50 }
 0x17e   :  { %v2367_v38 = vpop.eup %2366  ;;  %1838 = vst.msk [vmem:[%s3515_s3 + $0x20] sm:$0xff] %vm1833_vm1, %v2365_v47  ;;  %2384 = vrcp.f32 %v1650_v19  ;;  %v1547_v15 = vmul.f32 1.442695, %v1466_v37  ;;  %v1283_v11 = vadd.f32 %v2109_v45, %v994_v33  ;;  %v1011_v46 = vpop.f32.mrb[53].mxu0  ;;  %v1005_v50 = vadd.f32 %v3077_v53, %v3151_v9 }
 0x17f   :  { %v2369_v39 = vpop.eup %2368  ;;  %1841 = vst.msk [vmem:[%s3515_s3 + $0x38] sm:$0xff] %vm1833_vm1, %v2367_v38  ;;  %2386 = vpow2.f32 %v1549_v49  ;;  %v1274_v3 = vpop.f32.mrb[53].mxu1 }
 0x180   :  { %v2371_v23 = vpop.eup %2370  ;;  %1839 = vst.msk [vmem:[%s3515_s3 + $0x28] sm:$0xff] %vm1833_vm1, %v2369_v39  ;;  %2388 = vpow2.f32 %v1545_v30  ;;  %v1275_v54 = vadd.f32 %v1274_v3, %v986_v41  ;;  %v1012_v57 = vpop.f32.mrb[54].mxu0  ;;  %v1471_v1 = vsub.f32 0.0, %v1283_v11 }
 0x181   :  { %v2110_v34 = vpop.f32.mrb[54].mxu1  ;;  %v2373_v61 = vpop.eup %2372  ;;  %v1655_v62 = vadd.f32 1.0, %v2371_v23  ;;  %2390 = vpow2.f32 %v1551_v31  ;;  %v1013_v55 = vadd.f32 %v3077_v53, %v1012_v57 }
 0x182   :  { %v1014_v2 = vpop.f32.mrb[55].mxu0  ;;  %v1277_v5 = vpop.f32.mrb[55].mxu1  ;;  %v1653_v7 = vadd.f32 1.0, %v2373_v61  ;;  %2392 = vpow2.f32 %v1547_v15  ;;  %v1469_v13 = vsub.f32 0.0, %v1275_v54  ;;  %v1286_v14 = vadd.f32 %v2110_v34, %v997_v59 }
 0x183   :  { %v2375_v6 = vpop.eup %2374  ;;  %2394 = vrcp.f32 %v1655_v62  ;;  %v1557_v17 = vmul.f32 1.442695, %v1471_v1  ;;  %v1278_v18 = vadd.f32 %v1277_v5, %v989_v58 }
 0x184   :  { %v2377_v43 = vpop.eup %2376  ;;  %v1656_v51 = vadd.f32 1.0, %v2375_v6  ;;  %2396 = vrcp.f32 %v1653_v7  ;;  %v1553_v35 = vmul.f32 1.442695, %v1469_v13  ;;  %v1472_v21 = vsub.f32 0.0, %v1286_v14  ;;  %v1017_v63 = vpop.f32.mrb[56].mxu0 }
 0x185   :  { %v1654_v10 = vadd.f32 1.0, %v2377_v43  ;;  %v2379_v29 = vpop.eup %2378  ;;  %v1470_v25 = vsub.f32 0.0, %v1278_v18  ;;  %v2113_v19 = vpop.f32.mrb[56].mxu1  ;;  %v1018_v14 = vadd.f32 %v3077_v53, %v1017_v63 }
 0x186   :  { %2398 = vrcp.f32 %v1656_v51  ;;  %v2381_v26 = vpop.eup %2380  ;;  %1844 = vst.msk [vmem:[%s3515_s3 + $0x50] sm:$0xff] %vm1833_vm1, %v2379_v29  ;;  %v1559_v49 = vmul.f32 1.442695, %v1472_v21  ;;  %v1299_v33 = vadd.f32 %v2113_v19, %v1010_v22  ;;  %v1019_v37 = vpop.f32.mrb[57].mxu0 }
 0x187   :  { %2400 = vrcp.f32 %v1654_v10  ;;  %v2383_v30 = vpop.eup %2382  ;;  %1842 = vst.msk [vmem:[%s3515_s3 + $0x40] sm:$0xff] %vm1833_vm1, %v2381_v26  ;;  %v1555_v47 = vmul.f32 1.442695, %v1470_v25  ;;  %v1290_v38 = vpop.f32.mrb[57].mxu1 }
 0x188   :  { %2402 = vpow2.f32 %v1557_v17  ;;  %v2385_v41 = vpop.eup %2384  ;;  %1845 = vst.msk [vmem:[%s3515_s3 + $0x58] sm:$0xff] %vm1833_vm1, %v2383_v30  ;;  %v1291_v31 = vadd.f32 %v1290_v38, %v1002_v27  ;;  %v1020_v42 = vpop.f32.mrb[58].mxu0  ;;  %v1475_v15 = vsub.f32 0.0, %v1299_v33 }
 0x189   :  { %2404 = vpow2.f32 %v1553_v35  ;;  %v2114_v45 = vpop.f32.mrb[58].mxu1  ;;  %v2387_v39 = vpop.eup %2386  ;;  %1843 = vst.msk [vmem:[%s3515_s3 + $0x48] sm:$0xff] %vm1833_vm1, %v2385_v41  ;;  %v1021_v25 = vadd.f32 %v3077_v53, %v1020_v42 }
 0x18a   :  { %2406 = vpow2.f32 %v1559_v49  ;;  %v1302_v11 = vadd.f32 %v2114_v45, %v1013_v55  ;;  %v1022_v46 = vpop.f32.mrb[59].mxu0  ;;  %v1293_v3 = vpop.f32.mrb[59].mxu1  ;;  %v1659_v59 = vadd.f32 1.0, %v2387_v39  ;;  %v1473_v54 = vsub.f32 0.0, %v1291_v31 }
 0x18b   :  { %v2389_v23 = vpop.eup %2388  ;;  %2408 = vpow2.f32 %v1555_v47  ;;  %v1294_v9 = vadd.f32 %v1293_v3, %v1005_v50  ;;  %v1565_v1 = vmul.f32 1.442695, %v1475_v15 }
 0x18c   :  { %v2391_v57 = vpop.eup %2390  ;;  %v1657_v34 = vadd.f32 1.0, %v2389_v23  ;;  %v1476_v61 = vsub.f32 0.0, %v1302_v11  ;;  %2410 = vrcp.f32 %v1659_v59  ;;  %v1561_v7 = vmul.f32 1.442695, %v1473_v54  ;;  %v1025_v51 = vpop.f32.mrb[60].mxu0 }
 0x18d   :  { %v2393_v58 = vpop.eup %2392  ;;  %v1660_v62 = vadd.f32 1.0, %v2391_v57  ;;  %v1474_v2 = vsub.f32 0.0, %v1294_v9  ;;  %v2117_v17 = vpop.f32.mrb[60].mxu1  ;;  %v1026_v35 = vadd.f32 %v3077_v53, %v1025_v51 }
 0x18e   :  { %v2395_v5 = vpop.eup %2394  ;;  %2412 = vrcp.f32 %v1657_v34  ;;  %v1658_v6 = vadd.f32 1.0, %v2393_v58  ;;  %v1567_v43 = vmul.f32 1.442695, %v1476_v61  ;;  %v1027_v21 = vpop.f32.mrb[61].mxu0 }
 0x18f   :  { %v2397_v13 = vpop.eup %2396  ;;  %1848 = vst.msk [vmem:[%s3515_s3 + $0x70] sm:$0xff] %vm1833_vm1, %v2395_v5  ;;  %2414 = vrcp.f32 %v1660_v62  ;;  %v1563_v10 = vmul.f32 1.442695, %v1474_v2  ;;  %v1306_v29 = vpop.f32.mrb[61].mxu1  ;;  %v1315_v19 = vadd.f32 %v2117_v17, %v1026_v35 }
 0x190   :  { %v2399_v18 = vpop.eup %2398  ;;  %1846 = vst.msk [vmem:[%s3515_s3 + $0x60] sm:$0xff] %vm1833_vm1, %v2397_v13  ;;  %2416 = vrcp.f32 %v1658_v6  ;;  %v1307_v26 = vadd.f32 %v1306_v29, %v1018_v14  ;;  %v1028_v27 = vpop.f32.mrb[62].mxu0 }
 0x191   :  { %v2401_v22 = vpop.eup %2400  ;;  %1849 = vst.msk [vmem:[%s3515_s3 + $0x78] sm:$0xff] %vm1833_vm1, %v2399_v18  ;;  %2418 = vpow2.f32 %v1565_v1  ;;  %v2118_v49 = vpop.f32.mrb[62].mxu1  ;;  %v1029_v30 = vadd.f32 %v3077_v53, %v1028_v27  ;;  %v1479_v42 = vsub.f32 0.0, %v1315_v19 }
 0x192   :  { %v2403_v63 = vpop.eup %2402  ;;  %1847 = vst.msk [vmem:[%s3515_s3 + $0x68] sm:$0xff] %vm1833_vm1, %v2401_v22  ;;  %2420 = vpow2.f32 %v1561_v7  ;;  %v1030_v55 = vpop.f32.mrb[63].mxu0  ;;  %v1477_v38 = vsub.f32 0.0, %v1307_v26 }
 0x193   :  { %v1309_v47 = vpop.f32.mrb[63].mxu1  ;;  %v2405_v33 = vpop.eup %2404  ;;  %v1663_v37 = vadd.f32 1.0, %v2403_v63  ;;  %2422 = vpow2.f32 %v1567_v43  ;;  %v1318_v45 = vadd.f32 %v2118_v49, %v1029_v30  ;;  %v1573_v23 = vmul.f32 1.442695, %v1479_v42 }
 0x194   :  { %v1310_v41 = vadd.f32 %v1309_v47, %v1021_v25  ;;  %v2407_v50 = vpop.eup %2406  ;;  %v1661_v31 = vadd.f32 1.0, %v2405_v33  ;;  %2424 = vpow2.f32 %v1563_v10  ;;  %v1569_v11 = vmul.f32 1.442695, %v1477_v38  ;;  %v1033_v9 = vpop.f32.mrb[64].mxu0 }
 0x195   :  { %v2409_v39 = vpop.eup %2408  ;;  %2426 = vrcp.f32 %v1663_v37  ;;  %v1664_v15 = vadd.f32 1.0, %v2407_v50  ;;  %v1480_v59 = vsub.f32 0.0, %v1318_v45  ;;  %v2121_v57 = vpop.f32.mrb[64].mxu1  ;;  %v1034_v62 = vadd.f32 %v3077_v53, %v1033_v9 }
 0x196   :  { %v1478_v46 = vsub.f32 0.0, %v1310_v41  ;;  %2428 = vrcp.f32 %v1661_v31  ;;  %v1662_v3 = vadd.f32 1.0, %v2409_v39  ;;  %v2411_v54 = vpop.eup %2410  ;;  %v1035_v1 = vpop.f32.mrb[65].mxu0 }
 0x197   :  { %2430 = vrcp.f32 %v1664_v15  ;;  %1852 = vst.msk [vmem:[%s3515_s3 + $0x90] sm:$0xff] %vm1833_vm1, %v2411_v54  ;;  %v1575_v61 = vmul.f32 1.442695, %v1480_v59  ;;  %v1322_v2 = vpop.f32.mrb[65].mxu1  ;;  %v1036_v6 = vpop.f32.mrb[66].mxu0 }
 0x198   :  { %v2413_v34 = vpop.eup %2412  ;;  %2432 = vrcp.f32 %v1662_v3  ;;  %v1571_v58 = vmul.f32 1.442695, %v1478_v46  ;;  %v2122_v7 = vpop.f32.mrb[66].mxu1  ;;  %v1323_v14 = vadd.f32 %v1322_v2, %v1034_v62  ;;  %v1037_v43 = vadd.f32 %v3077_v53, %v1036_v6 }
 0x199   :  { %v2415_v5 = vpop.eup %2414  ;;  %1850 = vst.msk [vmem:[%s3515_s3 + $0x80] sm:$0xff] %vm1833_vm1, %v2413_v34  ;;  %2434 = vpow2.f32 %v1573_v23  ;;  %v1038_v51 = vpop.f32.mrb[67].mxu0 }
 0x19a   :  { %v2417_v13 = vpop.eup %2416  ;;  %1853 = vst.msk [vmem:[%s3515_s3 + $0x98] sm:$0xff] %vm1833_vm1, %v2415_v5  ;;  %2436 = vpow2.f32 %v1569_v11  ;;  %v1325_v17 = vpop.f32.mrb[67].mxu1  ;;  %v1481_v21 = vsub.f32 0.0, %v1323_v14 }
 0x19b   :  { %v2419_v18 = vpop.eup %2418  ;;  %1851 = vst.msk [vmem:[%s3515_s3 + $0x88] sm:$0xff] %vm1833_vm1, %v2417_v13  ;;  %2438 = vpow2.f32 %v1575_v61  ;;  %v1326_v29 = vadd.f32 %v1325_v17, %v1037_v43 }
 0x19c   :  { %v2421_v10 = vpop.eup %2420  ;;  %v1667_v35 = vadd.f32 1.0, %v2419_v18  ;;  %2440 = vpow2.f32 %v1571_v58  ;;  %v1577_v49 = vmul.f32 1.442695, %v1481_v21  ;;  %v1041_v55 = vpop.f32.mrb[68].mxu0 }
 0x19d   :  { %v2423_v22 = vpop.eup %2422  ;;  %v1665_v25 = vadd.f32 1.0, %v2421_v10  ;;  %v1482_v63 = vsub.f32 0.0, %v1326_v29  ;;  %v3237_v47 = vpop.f32.mrb[68].mxu1  ;;  %v1042_v38 = vadd.f32 %v3077_v53, %v1041_v55 }
 0x19e   :  { %v2425_v26 = vpop.eup %2424  ;;  %2442 = vrcp.f32 %v1667_v35  ;;  %v1668_v27 = vadd.f32 1.0, %v2423_v22  ;;  %v1043_v41 = vpop.f32.mrb[69].mxu0 }
 0x19f   :  { %v2427_v19 = vpop.eup %2426  ;;  %2444 = vrcp.f32 %v1665_v25  ;;  %v1666_v30 = vadd.f32 1.0, %v2425_v26  ;;  %v1579_v37 = vmul.f32 1.442695, %v1482_v63  ;;  %v1338_v50 = vpop.f32.mrb[69].mxu1  ;;  %v1331_v15 = vadd.f32 %v2121_v57, %v1042_v38 }
 0x1a0   :  { %v2429_v33 = vpop.eup %2428  ;;  %1856 = vst.msk [vmem:[%s3515_s3 + $0xb0] sm:$0xff] %vm1833_vm1, %v2427_v19  ;;  %2446 = vrcp.f32 %v1668_v27  ;;  %v1044_v42 = vpop.f32.mrb[70].mxu0 }
 0x1a1   :  { %v2431_v31 = vpop.eup %2430  ;;  %1854 = vst.msk [vmem:[%s3515_s3 + $0xa0] sm:$0xff] %vm1833_vm1, %v2429_v33  ;;  %2448 = vrcp.f32 %v1666_v30  ;;  %v3248_v45 = vpop.f32.mrb[70].mxu1  ;;  %v1045_v11 = vadd.f32 %v3077_v53, %v1044_v42  ;;  %v1483_v9 = vsub.f32 0.0, %v1331_v15 }
 0x1a2   :  { %v2433_v39 = vpop.eup %2432  ;;  %1857 = vst.msk [vmem:[%s3515_s3 + $0xb8] sm:$0xff] %vm1833_vm1, %v2431_v31  ;;  %2450 = vpow2.f32 %v1577_v49  ;;  %v1046_v46 = vpop.f32.mrb[71].mxu0 }
 0x1a3   :  { %v1341_v3 = vpop.f32.mrb[71].mxu1  ;;  %v2435_v23 = vpop.eup %2434  ;;  %1855 = vst.msk [vmem:[%s3515_s3 + $0xa8] sm:$0xff] %vm1833_vm1, %v2433_v39  ;;  %2452 = vpow2.f32 %v1579_v37  ;;  %v1334_v34 = vadd.f32 %v2122_v7, %v1045_v11  ;;  %v1581_v1 = vmul.f32 1.442695, %v1483_v9 }
 0x1a4   :  { %v2437_v59 = vpop.eup %2436  ;;  %v1671_v54 = vadd.f32 1.0, %v2435_v23  ;;  %v1049_v6 = vpop.f32.mrb[72].mxu0 }
 0x1a5   :  { %v2439_v61 = vpop.eup %2438  ;;  %v1669_v58 = vadd.f32 1.0, %v2437_v59  ;;  %v1484_v2 = vsub.f32 0.0, %v1334_v34  ;;  %v3259_v13 = vpop.f32.mrb[72].mxu1  ;;  %v1050_v51 = vadd.f32 %v3077_v53, %v1049_v6 }
 0x1a6   :  { %v2441_v62 = vpop.eup %2440  ;;  %2454 = vrcp.f32 %v1671_v54  ;;  %v1672_v57 = vadd.f32 1.0, %v2439_v61  ;;  %v1051_v17 = vpop.f32.mrb[73].mxu0 }
 0x1a7   :  { %2456 = vrcp.f32 %v1669_v58  ;;  %v1670_v5 = vadd.f32 1.0, %v2441_v62  ;;  %v1583_v43 = vmul.f32 1.442695, %v1484_v2  ;;  %v3262_v18 = vpop.f32.mrb[73].mxu1  ;;  %v1052_v10 = vpop.f32.mrb[74].mxu0  ;;  %v1339_v29 = vadd.f32 %v1338_v50, %v1050_v51 }
 0x1a8   :  { %v2443_v14 = vpop.eup %2442  ;;  %2458 = vrcp.f32 %v1672_v57  ;;  %v3268_v35 = vpop.f32.mrb[74].mxu1  ;;  %v1053_v22 = vadd.f32 %v3077_v53, %v1052_v10  ;;  %v1098_v51 = vadd.f32 %v3077_v53, %v3016_v52 }
 0x1a9   :  { %v2445_v7 = vpop.eup %2444  ;;  %1860 = vst.msk [vmem:[%s3515_s3 + $0xd0] sm:$0xff] %vm1833_vm1, %v2443_v14  ;;  %2460 = vrcp.f32 %v1670_v5  ;;  %v1054_v25 = vpop.f32.mrb[75].mxu0  ;;  %v1485_v63 = vsub.f32 0.0, %v1339_v29  ;;  %v1106_v5 = vadd.f32 %v3077_v53, %v3022_v60  ;;  %v1101_v60 = vadd.f32 %v3077_v53, %v3020_v56 }
 0x1aa   :  { %v2447_v21 = vpop.eup %2446  ;;  %1858 = vst.msk [vmem:[%s3515_s3 + $0xc0] sm:$0xff] %vm1833_vm1, %v2445_v7  ;;  %2462 = vpow2.f32 %v1581_v1  ;;  %v3275_v26 = vpop.f32.mrb[75].mxu1  ;;  %v1342_v19 = vadd.f32 %v1341_v3, %v1053_v22 }
 0x1ab   :  { %v2449_v27 = vpop.eup %2448  ;;  %1861 = vst.msk [vmem:[%s3515_s3 + $0xd8] sm:$0xff] %vm1833_vm1, %v2447_v21  ;;  %2464 = vpow2.f32 %v1583_v43  ;;  %v1585_v37 = vmul.f32 1.442695, %v1485_v63 }
 0x1ac   :  { %v2451_v49 = vpop.eup %2450  ;;  %1859 = vst.msk [vmem:[%s3515_s3 + $0xc8] sm:$0xff] %vm1833_vm1, %v2449_v27  ;;  %v1486_v38 = vsub.f32 0.0, %v1342_v19  ;;  %v1057_v41 = vpop.f32.mrb[76].mxu0  ;;  %v1109_v27 = vadd.f32 %v3077_v53, %v3024_v0 }
 0x1ad   :  { %v2453_v30 = vpop.eup %2452  ;;  %v1673_v55 = vadd.f32 1.0, %v2451_v49  ;;  %v3285_v50 = vpop.f32.mrb[76].mxu1  ;;  %v1058_v39 = vadd.f32 %v3077_v53, %v1057_v41 }
 0x1ae   :  { %v1674_v33 = vadd.f32 1.0, %v2453_v30  ;;  %v1587_v42 = vmul.f32 1.442695, %v1486_v38  ;;  %v1059_v15 = vpop.f32.mrb[77].mxu0  ;;  %v3288_v11 = vpop.f32.mrb[77].mxu1 }
 0x1af   :  { %2466 = vrcp.f32 %v1673_v55  ;;  %v1060_v3 = vpop.f32.mrb[78].mxu0  ;;  %v3294_v23 = vpop.f32.mrb[78].mxu1  ;;  %v1347_v54 = vadd.f32 %v3237_v47, %v1058_v39  ;;  %v1122_v39 = vadd.f32 %v3077_v53, %v3036_v12 }
 0x1b0   :  { %v2455_v31 = vpop.eup %2454  ;;  %2468 = vrcp.f32 %v1674_v33  ;;  %v1061_v9 = vadd.f32 %v3077_v53, %v1060_v3  ;;  %v1062_v34 = vpop.f32.mrb[79].mxu0 }
 0x1b1   :  { %v2457_v46 = vpop.eup %2456  ;;  %1864 = vst.msk [vmem:[%s3515_s3 + $0xf0] sm:$0xff] %vm1833_vm1, %v2455_v31  ;;  %2470 = vpow2.f32 %v1585_v37  ;;  %v3302_v61 = vpop.f32.mrb[79].mxu1  ;;  %v1487_v57 = vsub.f32 0.0, %v1347_v54 }
 0x1b2   :  { %v2459_v59 = vpop.eup %2458  ;;  %1862 = vst.msk [vmem:[%s3515_s3 + $0xe0] sm:$0xff] %vm1833_vm1, %v2457_v46  ;;  %2472 = vpow2.f32 %v1587_v42  ;;  %v1350_v47 = vadd.f32 %v3248_v45, %v1061_v9 }
 0x1b3   :  { %v2461_v58 = vpop.eup %2460  ;;  %1865 = vst.msk [vmem:[%s3515_s3 + $0xf8] sm:$0xff] %vm1833_vm1, %v2459_v59  ;;  %v1589_v14 = vmul.f32 1.442695, %v1487_v57  ;;  %v1114_v57 = vadd.f32 %v3077_v53, %v3028_v4 }
 0x1b4   :  { %v2463_v62 = vpop.eup %2462  ;;  %1863 = vst.msk [vmem:[%s3515_s3 + $0xe8] sm:$0xff] %vm1833_vm1, %v2461_v58  ;;  %v1488_v43 = vsub.f32 0.0, %v1350_v47  ;;  %v1065_v17 = vpop.f32.mrb[80].mxu0  ;;  %v1117_v47 = vadd.f32 %v3077_v53, %v3032_v8 }
 0x1b5   :  { %v2465_v1 = vpop.eup %2464  ;;  %v1675_v2 = vadd.f32 1.0, %v2463_v62  ;;  %v2137_v7 = vpop.f32.mrb[80].mxu1  ;;  %v1066_v21 = vadd.f32 %v3077_v53, %v1065_v17 }
 0x1b6   :  { %v1676_v6 = vadd.f32 1.0, %v2465_v1  ;;  %v1591_v10 = vmul.f32 1.442695, %v1488_v43  ;;  %v1395_v29 = vadd.f32 %v2137_v7, %v1106_v5  ;;  %v1067_v45 = vpop.f32.mrb[81].mxu0  ;;  %v1386_v22 = vpop.f32.mrb[81].mxu1 }
 0x1b7   :  { %2474 = vrcp.f32 %v1675_v2  ;;  %v1387_v49 = vadd.f32 %v1386_v22, %v1098_v51  ;;  %v1068_v52 = vpop.f32.mrb[82].mxu0  ;;  %v2138_v63 = vpop.f32.mrb[82].mxu1  ;;  %v1355_v30 = vadd.f32 %v3262_v18, %v1066_v21  ;;  %v3342_v5 = vld [vmem:[%s3514_s2] ss:$0 sm:$0xff] }
 0x1b8   :  { %2476 = vrcp.f32 %v1676_v6  ;;  %v1499_v55 = vsub.f32 0.0, %v1395_v29  ;;  %v1069_v33 = vadd.f32 %v3077_v53, %v1068_v52  ;;  %v1070_v56 = vpop.f32.mrb[83].mxu0  ;;  %v1389_v37 = vpop.f32.mrb[83].mxu1  ;;  %v1398_v41 = vadd.f32 %v2138_v63, %v1109_v27 }
 0x1b9   :  { %v2467_v25 = vpop.eup %2466  ;;  %2478 = vpow2.f32 %v1589_v14  ;;  %v1497_v0 = vsub.f32 0.0, %v1387_v49  ;;  %v1390_v31 = vadd.f32 %v1389_v37, %v1101_v60  ;;  %v1489_v18 = vsub.f32 0.0, %v1355_v30 }
 0x1ba   :  { %v2469_v19 = vpop.eup %2468  ;;  %1866 = vst.msk [vmem:[%s3515_s3 + $0x100] sm:$0xff] %vm1833_vm1, %v2467_v25  ;;  %2480 = vpow2.f32 %v1591_v10  ;;  %v1358_v46 = vadd.f32 %v3275_v26, %v1069_v33  ;;  %v1613_v59 = vmul.f32 1.442695, %v1499_v55  ;;  %v1500_v54 = vsub.f32 0.0, %v1398_v41 }
 0x1bb   :  { %v2471_v38 = vpop.eup %2470  ;;  %1867 = vst.msk [vmem:[%s3515_s3 + $0x108] sm:$0xff] %vm1833_vm1, %v2469_v19  ;;  %v1498_v9 = vsub.f32 0.0, %v1390_v31  ;;  %v1593_v34 = vmul.f32 1.442695, %v1489_v18  ;;  %v1609_v58 = vmul.f32 1.442695, %v1497_v0  ;;  %v1125_v8 = vadd.f32 %v3342_v5, %v3040_v16 }
 0x1bc   :  { %v2473_v42 = vpop.eup %2472  ;;  %v1677_v15 = vadd.f32 1.0, %v2471_v38  ;;  %v1490_v62 = vsub.f32 0.0, %v1358_v46  ;;  %v1615_v12 = vmul.f32 1.442695, %v1500_v54  ;;  %v1073_v1 = vpop.f32.mrb[84].mxu0  ;;  %v1130_v19 = vadd.f32 %v3342_v5, %v3044_v20 }
 0x1bd   :  { %v1678_v3 = vadd.f32 1.0, %v2473_v42  ;;  %v2141_v2 = vpop.f32.mrb[84].mxu1  ;;  %v1074_v6 = vadd.f32 %v3342_v5, %v1073_v1  ;;  %v1075_v43 = vpop.f32.mrb[85].mxu0  ;;  %v1611_v53 = vmul.f32 1.442695, %v1498_v9  ;;  %v1138_v41 = vadd.f32 %v3342_v5, %v3052_v28 }
 0x1be   :  { %2482 = vrcp.f32 %v1677_v15  ;;  %v1595_v26 = vmul.f32 1.442695, %v1490_v62  ;;  %v1411_v14 = vadd.f32 %v2141_v2, %v1122_v39  ;;  %v1402_v51 = vpop.f32.mrb[85].mxu1  ;;  %v1076_v7 = vpop.f32.mrb[86].mxu0  ;;  %v1141_v31 = vadd.f32 %v3342_v5, %v3056_v32 }
 0x1bf   :  { %2484 = vrcp.f32 %v1678_v3  ;;  %v1403_v17 = vadd.f32 %v1402_v51, %v1114_v57  ;;  %v2142_v10 = vpop.f32.mrb[86].mxu1  ;;  %v1363_v29 = vadd.f32 %v3259_v13, %v1074_v6  ;;  %v1077_v22 = vadd.f32 %v3342_v5, %v1076_v7  ;;  %v1078_v25 = vpop.f32.mrb[87].mxu0 }
 0x1c0   :  { %2486 = vpow2.f32 %v1593_v34  ;;  %v1503_v45 = vsub.f32 0.0, %v1411_v14  ;;  %v1405_v60 = vpop.f32.mrb[87].mxu1  ;;  %v1414_v49 = vadd.f32 %v2142_v10, %v1125_v8  ;;  %v1154_v10 = vadd.f32 %v3342_v5, %v3068_v44 }
 0x1c1   :  { %v2475_v4 = vpop.eup %2474  ;;  %2488 = vpow2.f32 %v1613_v59  ;;  %v1501_v27 = vsub.f32 0.0, %v1403_v17  ;;  %v1406_v52 = vadd.f32 %v1405_v60, %v1117_v47  ;;  %v1491_v30 = vsub.f32 0.0, %v1363_v29 }
 0x1c2   :  { %v2477_v21 = vpop.eup %2476  ;;  %1868 = vst.msk [vmem:[%s3515_s3 + $0x110] sm:$0xff] %vm1833_vm1, %v2475_v4  ;;  %2490 = vpow2.f32 %v1609_v58  ;;  %v1621_v33 = vmul.f32 1.442695, %v1503_v45  ;;  %v1366_v56 = vadd.f32 %v3268_v35, %v1077_v22  ;;  %v1504_v0 = vsub.f32 0.0, %v1414_v49 }
 0x1c3   :  { %v2479_v16 = vpop.eup %2478  ;;  %1869 = vst.msk [vmem:[%s3515_s3 + $0x118] sm:$0xff] %vm1833_vm1, %v2477_v21  ;;  %2492 = vpow2.f32 %v1595_v26  ;;  %v1597_v37 = vmul.f32 1.442695, %v1491_v30  ;;  %v1617_v38 = vmul.f32 1.442695, %v1501_v27  ;;  %v1502_v46 = vsub.f32 0.0, %v1406_v52 }
 0x1c4   :  { %v2481_v63 = vpop.eup %2480  ;;  %v1679_v13 = vadd.f32 1.0, %v2479_v16  ;;  %2494 = vpow2.f32 %v1615_v12  ;;  %v1492_v20 = vsub.f32 0.0, %v1366_v56  ;;  %v1081_v42 = vpop.f32.mrb[88].mxu0  ;;  %v1623_v18 = vmul.f32 1.442695, %v1504_v0 }
 0x1c5   :  { %v1680_v55 = vadd.f32 1.0, %v2481_v63  ;;  %2496 = vpow2.f32 %v1611_v53  ;;  %v2145_v39 = vpop.f32.mrb[88].mxu1  ;;  %v1082_v35 = vadd.f32 %v3342_v5, %v1081_v42  ;;  %v1083_v3 = vpop.f32.mrb[89].mxu0  ;;  %v1146_v53 = vadd.f32 %v3342_v5, %v3060_v36 }
 0x1c6   :  { %2498 = vrcp.f32 %v1679_v13  ;;  %v1418_v59 = vpop.f32.mrb[89].mxu1  ;;  %v1599_v28 = vmul.f32 1.442695, %v1492_v20  ;;  %v3369_v32 = vadd.f32 %v2145_v39, %v1138_v41  ;;  %v1084_v34 = vpop.f32.mrb[90].mxu0  ;;  %v1619_v29 = vmul.f32 1.442695, %v1502_v46 }
 0x1c7   :  { %2500 = vrcp.f32 %v1680_v55  ;;  %v3371_v9 = vadd.f32 %v1418_v59, %v1130_v19  ;;  %v2146_v58 = vpop.f32.mrb[90].mxu1  ;;  %v1371_v57 = vadd.f32 %v3288_v11, %v1082_v35  ;;  %v1085_v47 = vadd.f32 %v3342_v5, %v1084_v34  ;;  %v1086_v1 = vpop.f32.mrb[91].mxu0 }
 0x1c8   :  { %v2483_v15 = vpop.eup %2482  ;;  %2502 = vpow2.f32 %v1597_v37  ;;  %v3379_v12 = vadd.f32 %v2146_v58, %v1141_v31  ;;  %v1421_v2 = vpop.f32.mrb[91].mxu1  ;;  %v1133_v11 = vadd.f32 %v3342_v5, %v3048_v24  ;;  %v1507_v22 = vsub.f32 0.0, %v3369_v32 }
 0x1c9   :  { %v2485_v54 = vpop.eup %2484  ;;  %1870 = vst.msk [vmem:[%s3515_s3 + $0x120] sm:$0xff] %vm1833_vm1, %v2483_v15  ;;  %2504 = vpow2.f32 %v1621_v33  ;;  %v1493_v51 = vsub.f32 0.0, %v1371_v57  ;;  %v3382_v4 = vadd.f32 %v3302_v61, %v1085_v47  ;;  %v1505_v19 = vsub.f32 0.0, %v3371_v9 }
 0x1ca   :  { %v2487_v62 = vpop.eup %2486  ;;  %1871 = vst.msk [vmem:[%s3515_s3 + $0x128] sm:$0xff] %vm1833_vm1, %v2485_v54  ;;  %2506 = vpow2.f32 %v1617_v38  ;;  %v1422_v25 = vadd.f32 %v1421_v2, %v1133_v11  ;;  %v1149_v20 = vadd.f32 %v3342_v5, %v3064_v40  ;;  %v1157_v42 = vadd.f32 %v3342_v5, %v3072_v48 }
 0x1cb   :  { %v2489_v26 = vpop.eup %2488  ;;  %v1681_v6 = vadd.f32 1.0, %v2487_v62  ;;  %2508 = vpow2.f32 %v1599_v28  ;;  %v1601_v27 = vmul.f32 1.442695, %v1493_v51  ;;  %v1629_v46 = vmul.f32 1.442695, %v1507_v22 }
 0x1cc   :  { %v2491_v14 = vpop.eup %2490  ;;  %v1691_v43 = vadd.f32 1.0, %v2489_v26  ;;  %2510 = vpow2.f32 %v1623_v18  ;;  %v1089_v60 = vpop.f32.mrb[92].mxu0  ;;  %v1508_v59 = vsub.f32 0.0, %v3379_v12  ;;  %v1625_v32 = vmul.f32 1.442695, %v1505_v19 }
 0x1cd   :  { %v2493_v8 = vpop.eup %2492  ;;  %2512 = vrcp.f32 %v1681_v6  ;;  %v1689_v17 = vadd.f32 1.0, %v2491_v14  ;;  %v2149_v24 = vpop.f32.mrb[92].mxu1  ;;  %v1090_v49 = vadd.f32 %v3342_v5, %v1089_v60  ;;  %v1506_v48 = vsub.f32 0.0, %v1422_v25 }
 0x1ce   :  { %v2495_v7 = vpop.eup %2494  ;;  %2514 = vrcp.f32 %v1691_v43  ;;  %v1682_v21 = vadd.f32 1.0, %v2493_v8  ;;  %v1091_v52 = vpop.f32.mrb[93].mxu0  ;;  %v3397_v13 = vadd.f32 %v2149_v24, %v1154_v10  ;;  %v1631_v12 = vmul.f32 1.442695, %v1508_v59 }
 0x1cf   :  { %v2497_v45 = vpop.eup %2496  ;;  %2516 = vrcp.f32 %v1689_v17  ;;  %v1692_v61 = vadd.f32 1.0, %v2495_v7  ;;  %v1434_v63 = vpop.f32.mrb[93].mxu1  ;;  %v1379_v56 = vadd.f32 %v3285_v50, %v1090_v49  ;;  %v1494_v50 = vsub.f32 0.0, %v3382_v4 }
 0x1d0   :  { %v2499_v16 = vpop.eup %2498  ;;  %2518 = vrcp.f32 %v1682_v21  ;;  %v1690_v36 = vadd.f32 1.0, %v2497_v45  ;;  %v1092_v30 = vpop.f32.mrb[94].mxu0  ;;  %v3404_v37 = vadd.f32 %v1434_v63, %v1146_v53  ;;  %v1627_v2 = vmul.f32 1.442695, %v1506_v48 }
 0x1d1   :  { %v2501_v44 = vpop.eup %2500  ;;  %1872 = vst.msk [vmem:[%s3515_s3 + $0x130] sm:$0xff] %vm1833_vm1, %v2499_v16  ;;  %2520 = vrcp.f32 %v1692_v61  ;;  %v2150_v55 = vpop.f32.mrb[94].mxu1  ;;  %v1093_v38 = vadd.f32 %v3342_v5, %v1092_v30  ;;  %v1495_v34 = vsub.f32 0.0, %v1379_v56  ;;  %v1603_v57 = vmul.f32 1.442695, %v1494_v50 }
 0x1d2   :  { %v2503_v33 = vpop.eup %2502  ;;  %1873 = vst.msk [vmem:[%s3515_s3 + $0x138] sm:$0xff] %vm1833_vm1, %v2501_v44  ;;  %2522 = vrcp.f32 %v1690_v36  ;;  %v1094_v0 = vpop.f32.mrb[95].mxu0  ;;  %v1446_v58 = vadd.f32 %v2150_v55, %v1157_v42  ;;  %v1511_v26 = vsub.f32 0.0, %v3397_v13  ;;  %v1509_v43 = vsub.f32 0.0, %v3404_v37 }
 0x1d3   :  { %v1437_v41 = vpop.f32.mrb[95].mxu1  ;;  %v2505_v31 = vpop.eup %2504  ;;  %v1683_v39 = vadd.f32 1.0, %v2503_v33  ;;  %2524 = vpow2.f32 %v1619_v29  ;;  %v1382_v54 = vadd.f32 %v3294_v23, %v1093_v38  ;;  %v1605_v14 = vmul.f32 1.442695, %v1495_v34 }
 0x1d4   :  { %v2507_v15 = vpop.eup %2506  ;;  %v1695_v18 = vadd.f32 1.0, %v2505_v31  ;;  %2526 = vpow2.f32 %v1601_v27  ;;  %v1438_v47 = vadd.f32 %v1437_v41, %v1149_v20  ;;  %v1512_v11 = vsub.f32 0.0, %v1446_v58 }
 0x1d5   :  { %v2509_v35 = vpop.eup %2508  ;;  %2528 = vrcp.f32 %v1683_v39  ;;  %v1693_v3 = vadd.f32 1.0, %v2507_v15  ;;  %v1496_v4 = vsub.f32 0.0, %v1382_v54  ;;  %v1637_v7 = vmul.f32 1.442695, %v1511_v26 }
 0x1d6   :  { %v2511_v28 = vpop.eup %2510  ;;  %2530 = vrcp.f32 %v1695_v18  ;;  %v1684_v40 = vadd.f32 1.0, %v2509_v35  ;;  %v1510_v10 = vsub.f32 0.0, %v1438_v47  ;;  %v1633_v45 = vmul.f32 1.442695, %v1509_v43 }
 0x1d7   :  { %v2513_v5 = vpop.eup %2512  ;;  %2532 = vrcp.f32 %v1693_v3  ;;  %v1696_v9 = vadd.f32 1.0, %v2511_v28  ;;  %v1607_v22 = vmul.f32 1.442695, %v1496_v4  ;;  %v1639_v60 = vmul.f32 1.442695, %v1512_v11 }
 0x1d8   :  { %v2515_v62 = vpop.eup %2514  ;;  %1874 = vst.msk [vmem:[%s3515_s3 + $0x140] sm:$0xff] %vm1833_vm1, %v2513_v5  ;;  %2534 = vrcp.f32 %v1684_v40  ;;  %v1635_v16 = vmul.f32 1.442695, %v1510_v10 }
 0x1d9   :  { %v2517_v23 = vpop.eup %2516  ;;  %1884 = vst.msk [vmem:[%s3515_s3 + $0x190] sm:$0xff] %vm1833_vm1, %v2515_v62  ;;  %2536 = vrcp.f32 %v1696_v9 }
 0x1da   :  { %v2519_v1 = vpop.eup %2518  ;;  %1882 = vst.msk [vmem:[%s3515_s3 + $0x180] sm:$0xff] %vm1833_vm1, %v2517_v23  ;;  %2538 = vpow2.f32 %v1629_v46 }
 0x1db   :  { %v2521_v6 = vpop.eup %2520  ;;  %1875 = vst.msk [vmem:[%s3515_s3 + $0x148] sm:$0xff] %vm1833_vm1, %v2519_v1  ;;  %2540 = vpow2.f32 %v1625_v32 }
 0x1dc   :  { %v2523_v51 = vpop.eup %2522  ;;  %1885 = vst.msk [vmem:[%s3515_s3 + $0x198] sm:$0xff] %vm1833_vm1, %v2521_v6  ;;  %2542 = vpow2.f32 %v1603_v57 }
 0x1dd   :  { %v2525_v8 = vpop.eup %2524  ;;  %1883 = vst.msk [vmem:[%s3515_s3 + $0x188] sm:$0xff] %vm1833_vm1, %v2523_v51  ;;  %2544 = vpow2.f32 %v1631_v12 }
 0x1de   :  { %v2527_v53 = vpop.eup %2526  ;;  %v1694_v17 = vadd.f32 1.0, %v2525_v8  ;;  %2546 = vpow2.f32 %v1627_v2 }
 0x1df   :  { %v2529_v21 = vpop.eup %2528  ;;  %v1685_v29 = vadd.f32 1.0, %v2527_v53  ;;  %2548 = vpow2.f32 %v1605_v14 }
 0x1e0   :  { %v2531_v61 = vpop.eup %2530  ;;  %1876 = vst.msk [vmem:[%s3515_s3 + $0x150] sm:$0xff] %vm1833_vm1, %v2529_v21  ;;  %2550 = vrcp.f32 %v1694_v17 }
 0x1e1   :  { %v2533_v25 = vpop.eup %2532  ;;  %1888 = vst.msk [vmem:[%s3515_s3 + $0x1b0] sm:$0xff] %vm1833_vm1, %v2531_v61  ;;  %2552 = vrcp.f32 %v1685_v29 }
 0x1e2   :  { %v2535_v24 = vpop.eup %2534  ;;  %1886 = vst.msk [vmem:[%s3515_s3 + $0x1a0] sm:$0xff] %vm1833_vm1, %v2533_v25  ;;  %2554 = vpow2.f32 %v1637_v7 }
 0x1e3   :  { %v2537_v36 = vpop.eup %2536  ;;  %1877 = vst.msk [vmem:[%s3515_s3 + $0x158] sm:$0xff] %vm1833_vm1, %v2535_v24  ;;  %2556 = vpow2.f32 %v1633_v45 }
 0x1e4   :  { %v2539_v27 = vpop.eup %2538  ;;  %1889 = vst.msk [vmem:[%s3515_s3 + $0x1b8] sm:$0xff] %vm1833_vm1, %v2537_v36  ;;  %2558 = vpow2.f32 %v1607_v22 }
 0x1e5   :  { %v2541_v49 = vpop.eup %2540  ;;  %v1699_v52 = vadd.f32 1.0, %v2539_v27  ;;  %2560 = vpow2.f32 %v1639_v60 }
 0x1e6   :  { %v2543_v63 = vpop.eup %2542  ;;  %v1697_v44 = vadd.f32 1.0, %v2541_v49  ;;  %2562 = vpow2.f32 %v1635_v16 }
 0x1e7   :  { %v2545_v19 = vpop.eup %2544  ;;  %2564 = vrcp.f32 %v1699_v52  ;;  %v1686_v13 = vadd.f32 1.0, %v2543_v63 }
 0x1e8   :  { %v2547_v30 = vpop.eup %2546  ;;  %2566 = vrcp.f32 %v1697_v44  ;;  %v1700_v55 = vadd.f32 1.0, %v2545_v19 }
 0x1e9   :  { %v2549_v33 = vpop.eup %2548  ;;  %2568 = vrcp.f32 %v1686_v13  ;;  %v1698_v56 = vadd.f32 1.0, %v2547_v30 }
 0x1ea   :  { %v2551_v37 = vpop.eup %2550  ;;  %2570 = vrcp.f32 %v1700_v55  ;;  %v1687_v38 = vadd.f32 1.0, %v2549_v33 }
 0x1eb   :  { %v2553_v0 = vpop.eup %2552  ;;  %1887 = vst.msk [vmem:[%s3515_s3 + $0x1a8] sm:$0xff] %vm1833_vm1, %v2551_v37  ;;  %2572 = vrcp.f32 %v1698_v56 }
 0x1ec   :  { %v2555_v41 = vpop.eup %2554  ;;  %1878 = vst.msk [vmem:[%s3515_s3 + $0x160] sm:$0xff] %vm1833_vm1, %v2553_v0  ;;  %2574 = vrcp.f32 %v1687_v38 }
 0x1ed   :  { %v2557_v31 = vpop.eup %2556  ;;  %v1703_v20 = vadd.f32 1.0, %v2555_v41 }
 0x1ee   :  { %v2559_v42 = vpop.eup %2558  ;;  %v1701_v39 = vadd.f32 1.0, %v2557_v31 }
 0x1ef   :  { %v2561_v15 = vpop.eup %2560  ;;  %2576 = vrcp.f32 %v1703_v20  ;;  %v1688_v18 = vadd.f32 1.0, %v2559_v42 }
 0x1f0   :  { %v2563_v46 = vpop.eup %2562  ;;  %2578 = vrcp.f32 %v1701_v39  ;;  %v1704_v50 = vadd.f32 1.0, %v2561_v15 }
 0x1f1   :  { %v2565_v35 = vpop.eup %2564  ;;  %2580 = vrcp.f32 %v1688_v18  ;;  %v1702_v3 = vadd.f32 1.0, %v2563_v46 }
 0x1f2   :  { %v2567_v59 = vpop.eup %2566  ;;  %1892 = vst.msk [vmem:[%s3515_s3 + $0x1d0] sm:$0xff] %vm1833_vm1, %v2565_v35  ;;  %2582 = vrcp.f32 %v1704_v50 }
 0x1f3   :  { %v2569_v54 = vpop.eup %2568  ;;  %1890 = vst.msk [vmem:[%s3515_s3 + $0x1c0] sm:$0xff] %vm1833_vm1, %v2567_v59  ;;  %2584 = vrcp.f32 %v1702_v3 }
 0x1f4   :  { %v2571_v28 = vpop.eup %2570  ;;  %1879 = vst.msk [vmem:[%s3515_s3 + $0x168] sm:$0xff] %vm1833_vm1, %v2569_v54 }
 0x1f5   :  { %v2573_v40 = vpop.eup %2572  ;;  %1893 = vst.msk [vmem:[%s3515_s3 + $0x1d8] sm:$0xff] %vm1833_vm1, %v2571_v28 }
 0x1f6   :  { %v2575_v32 = vpop.eup %2574  ;;  %1891 = vst.msk [vmem:[%s3515_s3 + $0x1c8] sm:$0xff] %vm1833_vm1, %v2573_v40 }
 0x1f7   :  { %1880 = vst.msk [vmem:[%s3515_s3 + $0x170] sm:$0xff] %vm1833_vm1, %v2575_v32 }
 0x1f9   :  { %v2577_v48 = vpop.eup %2576 }
 0x1fa   :  { %v2579_v5 = vpop.eup %2578  ;;  %1896 = vst.msk [vmem:[%s3515_s3 + $0x1f0] sm:$0xff] %vm1833_vm1, %v2577_v48 }
 0x1fb   :  { %v2581_v9 = vpop.eup %2580  ;;  %1894 = vst.msk [vmem:[%s3515_s3 + $0x1e0] sm:$0xff] %vm1833_vm1, %v2579_v5 }
 0x1fc   :  { %v2583_v34 = vpop.eup %2582  ;;  %1881 = vst.msk [vmem:[%s3515_s3 + $0x178] sm:$0xff] %vm1833_vm1, %v2581_v9 }
 0x1fd   :  { %v2585_v58 = vpop.eup %2584  ;;  %1897 = vst.msk [vmem:[%s3515_s3 + $0x1f8] sm:$0xff] %vm1833_vm1, %v2583_v34 }
 0x1fe   :  { %1895 = vst.msk [vmem:[%s3515_s3 + $0x1e8] sm:$0xff] %vm1833_vm1, %v2585_v58 }

</bundles_post_ra>
